<compile_context>
chip_gen: v5e
topology: v5e:2x2
jax: 0.10.0
libtpu: 0.0.40
codegen_flags: <defaults>
</compile_context>

<pallas_src>
import functools
import math

import numpy as np
import jax
import jax.numpy as jnp
from jax import lax
from jax.experimental import pallas as pl
from jax.experimental.pallas import tpu as pltpu

_CIN_PAD = 8          # contraction depth for the first 1x1 conv (3 -> 8 zero-pad)
_EPS = 1e-5           # InstanceNorm2d eps (PyTorch default)
_NEG_SLOPE = 0.2      # LeakyReLU negative slope


# ----------------------------- fused Pallas kernel ---------------------------

def _fused_kernel(*refs, norm_flags, cs_flags):
    """Whole Color_ConditionLT forward for one sample (one grid step).

    refs = (x_ref,
            per block: [poolT_or_pool, W(T), bias_map, (gamma/beta packed)],
            head_w, head_b,
            vec_ref, feat_ref)

    cs_flags[k]  : True  -> block k runs channels-on-sublanes / spatial-on-lanes
                   False -> block k runs channels-last (spatial on sublanes)
    norm_flags[k]: block k has InstanceNorm2d(affine=True).
    """
    nb = len(norm_flags)
    x_ref = refs[0]
    vec_ref, feat_ref = refs[-2], refs[-1]

    a = x_ref[0]                      # block-0 activation (bf16), layout per cs_flags[0]
    idx = 1
    z = None
    for k in range(nb):
        p_ref, w_ref, bm_ref = refs[idx], refs[idx + 1], refs[idx + 2]
        idx += 3
        gb_ref = None
        if norm_flags[k]:
            gb_ref = refs[idx]
            idx += 1

        if cs_flags[k]:
            # a: (Cin, S) — channels on sublanes, spatial on lanes.
            # AvgPool2d(3,2,1,count_include_pad=True) commuted BEFORE the conv:
            # pooled = (a @ P^T)/9 ; the fixed /9 is applied in f32.
            pooled = jnp.dot(a, p_ref[...],
                             preferred_element_type=jnp.float32) * (1.0 / 9.0)
            # 1x1 conv on the pooled grid; bias map = b (Cout,1) * rowsum(P)/9 (1,So).
            y = jnp.dot(w_ref[...], pooled.astype(jnp.bfloat16),
                        preferred_element_type=jnp.float32) + bm_ref[...]
            sp_axis = 1
        else:
            # a: (S, Cin) — channels-last.
            pooled = jnp.dot(p_ref[...], a,
                             preferred_element_type=jnp.float32) * (1.0 / 9.0)
            y = jnp.dot(pooled.astype(jnp.bfloat16), w_ref[...],
                        preferred_element_type=jnp.float32) + bm_ref[...]
            sp_axis = 0

        # LeakyReLU(0.2)
        z = jnp.where(y >= 0, y, _NEG_SLOPE * y)

        if norm_flags[k]:
            # InstanceNorm2d(affine=True): per-(sample, channel) stats over the
            # spatial axis, biased variance, single pass (sum + sum of squares).
            n_sp = z.shape[sp_axis]
            inv_n = 1.0 / n_sp
            zsum = jnp.sum(z, axis=sp_axis, keepdims=True)
            zsq = jnp.sum(z * z, axis=sp_axis, keepdims=True)
            mean = zsum * inv_n
            var = jnp.maximum(zsq * inv_n - mean * mean, 0.0)
            z = (z - mean) * lax.rsqrt(var + _EPS)
            cout = z.shape[1 - sp_axis]
            if cs_flags[k]:
                gamma = gb_ref[0:cout, :]          # (Cout, 1)
                beta = gb_ref[cout:2 * cout, :]
            else:
                gamma = gb_ref[0:1, :]             # (1, Cout)
                beta = gb_ref[1:2, :]
            z = z * gamma + beta

        # Single layout switch (small f32 tile, one XLU transpose) when the
        # next block flips orientation (here: before block 3).
        if k + 1 < nb and cs_flags[k + 1] != cs_flags[k]:
            z = jnp.transpose(z)

        a = z.astype(jnp.bfloat16)

    if cs_flags[-1]:                   # keep the feat output channels-last
        z = jnp.transpose(z)

    # nn.Dropout(p=0.5): identity at inference.
    feat_ref[0] = z.astype(feat_ref.dtype)          # lane-dense (s_f, 128) store

    # globalvector head: AdaptiveAvgPool2d(1) commutes with the 1x1 conv:
    # mean(xW + b) = mean(x) W + b.
    hw_ref, hb_ref = refs[idx], refs[idx + 1]
    n_sp = z.shape[0]
    fmean = jnp.sum(z, axis=0, keepdims=True) * (1.0 / n_sp)
    v = jnp.dot(fmean.astype(jnp.bfloat16), hw_ref[...],
                preferred_element_type=jnp.float32) + hb_ref[...]
    vec_ref[0] = v.astype(vec_ref.dtype)


# ----------------------------- wrappers ---------------------------------------

def _pool_matrix(H, W):
    """Dense (Ho*Wo, H*W) 0/1 pooling-indicator matrix and per-output scale
    s = rowsum(P)/9 implementing AvgPool2d(3, stride=2, padding=1,
    count_include_pad=True).  Exact in bf16 (0/1 entries; /9 applied in f32)."""
    Ho = (H - 1) // 2 + 1
    Wo = (W - 1) // 2 + 1
    P = np.zeros((Ho * Wo, H * W), dtype=np.float32)
    for oi in range(Ho):
        for oj in range(Wo):
            for di in (-1, 0, 1):
                for dj in (-1, 0, 1):
                    i, j = 2 * oi + di, 2 * oj + dj
                    if 0 <= i < H and 0 <= j < W:
                        P[oi * Wo + oj, i * W + j] = 1.0
    s = P.sum(axis=1) / 9.0
    return P, s, Ho, Wo


def init_params(key, out_c=3):
    """Deterministic synthetic parameters matching Color_ConditionLT's shapes.

    Conv weights are stored as (Cin, Cout) == PyTorch (Cout, Cin, 1, 1).T squeezed.
    """
    blocks_cfg = [(3, 16, True), (16, 32, True), (32, 64, True),
                  (64, 128, True), (128, 128, False)]
    blocks = []
    for cin, cout, norm in blocks_cfg:
        key, k1, k2, k3, k4 = jax.random.split(key, 5)
        bound = 1.0 / math.sqrt(cin)
        blocks.append(dict(
            w=jax.random.uniform(k1, (cin, cout), jnp.float32, -bound, bound),
            b=jax.random.uniform(k2, (1, cout), jnp.float32, -bound, bound),
            gamma=1.0 + 0.1 * jax.random.normal(k3, (1, cout), jnp.float32),
            beta=0.1 * jax.random.normal(k4, (1, cout), jnp.float32),
            norm=norm,
        ))
    key, k1, k2 = jax.random.split(key, 3)
    bound = 1.0 / math.sqrt(128)
    head = dict(
        w=jax.random.uniform(k1, (128, out_c), jnp.float32, -bound, bound),
        b=jax.random.uniform(k2, (1, out_c), jnp.float32, -bound, bound),
    )
    return dict(blocks=blocks, head=head)


def color_condition_forward(img_nchw, params):
    """Fused Pallas forward.  img_nchw: (N, 3, H, W) float32.

    Returns (vector, localfeat) matching Color_ConditionLT.forward:
      vector:    (N, out_c, 1, 1)
      localfeat: (N, 128, 2*Hf, 2*Wf)  -- nearest 2x upsample of the feature map.
    """
    N, C, H, W = img_nchw.shape
    blocks = params["blocks"]
    nb = len(blocks)

    # --- plan per-block orientation: channels-on-sublanes while the block's
    #     input spatial extent still dominates its output channel count. ------
    h, w = H, W
    cs_flags, shapes = [], []
    for blk in blocks:
        cout = blk["w"].shape[1]
        cs_flags.append(h * w >= cout)
        ho, wo = (h - 1) // 2 + 1, (w - 1) // 2 + 1
        shapes.append((h, w, ho, wo, cout))
        h, w = ho, wo

    # --- input: NCHW flattens natively to (C, H*W); zero-pad channels 3 -> 8
    #     so the first conv has a legal contraction depth. ---------------------
    x = img_nchw.reshape(N, C, H * W)
    x = jnp.pad(x, ((0, 0), (0, _CIN_PAD - C), (0, 0)))
    if not cs_flags[0]:
        x = jnp.transpose(x, (0, 2, 1))
    x = x.astype(jnp.bfloat16)

    inputs = [x]
    in_specs = [pl.BlockSpec((1,) + tuple(x.shape[1:]), lambda n: (n, 0, 0))]
    norm_flags = []

    cin = _CIN_PAD
    for k, blk in enumerate(blocks):
        hi, wi, ho, wo, cout = shapes[k]
        wmat = blk["w"]
        if wmat.shape[0] < cin:        # first block: pad contraction depth 3 -> 8
            wmat = jnp.pad(wmat, ((0, cin - wmat.shape[0]), (0, 0)))
        P, s, _, _ = _pool_matrix(hi, wi)
        s = jnp.asarray(s, jnp.float32)
        b = blk["b"].reshape(1, cout).astype(jnp.float32)

        if cs_flags[k]:
            p_op = jnp.asarray(P.T, dtype=jnp.bfloat16)            # (S, So)
            w_op = jnp.transpose(wmat).astype(jnp.bfloat16)        # (Cout, Cin)
            bmap = (b.reshape(cout, 1) * s.reshape(1, ho * wo))    # (Cout, So)
        else:
            p_op = jnp.asarray(P, dtype=jnp.bfloat16)              # (So, S)
            w_op = wmat.astype(jnp.bfloat16)                       # (Cin, Cout)
            bmap = (s.reshape(ho * wo, 1) * b)                     # (So, Cout)
        ops = [p_op, w_op, bmap.astype(jnp.float32)]

        if blk["norm"]:
            g = blk["gamma"].reshape(1, cout).astype(jnp.float32)
            be = blk["beta"].reshape(1, cout).astype(jnp.float32)
            if cs_flags[k]:
                gb = jnp.concatenate([g.reshape(cout, 1),
                                      be.reshape(cout, 1)], axis=0)  # (2*Cout, 1)
            else:
                gb = jnp.concatenate([g, be], axis=0)                # (2, Cout)
            ops.append(gb)

        inputs += ops
        in_specs += [pl.BlockSpec(op.shape, lambda n: (0, 0)) for op in ops]
        norm_flags.append(bool(blk["norm"]))
        cin = cout

    head_w = params["head"]["w"].astype(jnp.bfloat16)
    head_b = params["head"]["b"].astype(jnp.float32)
    out_c = head_w.shape[1]
    inputs += [head_w, head_b]
    in_specs += [pl.BlockSpec(head_w.shape, lambda n: (0, 0)),
                 pl.BlockSpec(head_b.shape, lambda n: (0, 0))]

    hf, wf = shapes[-1][2], shapes[-1][3]
    s_f, c_f = hf * wf, cin            # final spatial size and channel count

    kern = functools.partial(_fused_kernel,
                             norm_flags=tuple(norm_flags),
                             cs_flags=tuple(cs_flags))
    vec, feat = pl.pallas_call(
        kern,
        out_shape=(jax.ShapeDtypeStruct((N, 1, out_c), jnp.float32),
                   jax.ShapeDtypeStruct((N, s_f, c_f), jnp.float32)),
        grid=(N,),
        in_specs=in_specs,
        out_specs=(pl.BlockSpec((1, 1, out_c), lambda n: (n, 0, 0)),
                   pl.BlockSpec((1, s_f, c_f), lambda n: (n, 0, 0))),
        compiler_params=pltpu.CompilerParams(
            dimension_semantics=("parallel",)),
    )(*inputs)

    vector = vec.reshape(N, out_c, 1, 1)

    # localft = nn.Upsample(scale_factor=2) (nearest): pure data movement,
    # applied to the kernel's channels-last feature map in the wrapper.
    feat_nhwc = feat.reshape(N, hf, wf, c_f)
    up = jnp.repeat(jnp.repeat(feat_nhwc, 2, axis=1), 2, axis=2)
    localfeat = jnp.transpose(up, (0, 3, 1, 2))
    return vector, localfeat


# ------------------------- plain-JAX reference (f32) --------------------------

def reference_forward(img_nchw, params):
    x = img_nchw
    for blk in params["blocks"]:
        x = jnp.einsum('nchw,cd->ndhw', x, blk["w"]) + blk["b"].reshape(1, -1, 1, 1)
        x = lax.reduce_window(x, 0.0, lax.add, (1, 1, 3, 3), (1, 1, 2, 2),
                              [(0, 0), (0, 0), (1, 1), (1, 1)]) / 9.0
        x = jnp.where(x >= 0, x, _NEG_SLOPE * x)
        if blk["norm"]:
            mean = jnp.mean(x, axis=(2, 3), keepdims=True)
            var = jnp.mean((x - mean) ** 2, axis=(2, 3), keepdims=True)
            x = (x - mean) * lax.rsqrt(var + _EPS)
            x = x * blk["gamma"].reshape(1, -1, 1, 1) + blk["beta"].reshape(1, -1, 1, 1)
    feat = x
    vec = jnp.einsum('nchw,cd->ndhw', feat, params["head"]["w"]) \
        + params["head"]["b"].reshape(1, -1, 1, 1)
    vec = jnp.mean(vec, axis=(2, 3), keepdims=True)
    localfeat = jnp.repeat(jnp.repeat(feat, 2, axis=2), 2, axis=3)
    return vec, localfeat


# --------------------------------- main ----------------------------------------

if __name__ == "__main__":
    key = jax.random.PRNGKey(0)
    k_img, k_par = jax.random.split(key)

    # Spatial 32 so every normalized block still sees >1 spatial element
    # (32 -> 16 -> 8 -> 4 -> 2 -> 1 across the five color_blocks); batch 2 is
    # even so both v7x TensorCores get a grid step.
    img = jax.random.normal(k_img, (2, 3, 32, 32), jnp.float32)
    params = init_params(k_par, out_c=3)

    vector, localfeat = jax.block_until_ready(color_condition_forward(img, params))
    assert vector.shape == (2, 3, 1, 1), vector.shape
    assert localfeat.shape == (2, 128, 2, 2), localfeat.shape

    vec_ref, local_ref = jax.block_until_ready(reference_forward(img, params))
    np.testing.assert_allclose(np.asarray(vector), np.asarray(vec_ref),
                               rtol=5e-2, atol=5e-2)
    np.testing.assert_allclose(np.asarray(localfeat), np.asarray(local_ref),
                               rtol=5e-2, atol=5e-2)

    print("KERNEL_OK")
</pallas_src>

<mosaic_0001>
module attributes {stable_mosaic.version = 11 : i64} {
  func.func @_fused_kernel(%arg0: i32, %arg1: memref<1x8x1024xbf16, #tpu.memory_space<vmem>>, %arg2: memref<1024x256xbf16, #tpu.memory_space<vmem>>, %arg3: memref<16x8xbf16, #tpu.memory_space<vmem>>, %arg4: memref<16x256xf32, #tpu.memory_space<vmem>>, %arg5: memref<32x1xf32, #tpu.memory_space<vmem>>, %arg6: memref<256x64xbf16, #tpu.memory_space<vmem>>, %arg7: memref<32x16xbf16, #tpu.memory_space<vmem>>, %arg8: memref<32x64xf32, #tpu.memory_space<vmem>>, %arg9: memref<64x1xf32, #tpu.memory_space<vmem>>, %arg10: memref<64x16xbf16, #tpu.memory_space<vmem>>, %arg11: memref<64x32xbf16, #tpu.memory_space<vmem>>, %arg12: memref<64x16xf32, #tpu.memory_space<vmem>>, %arg13: memref<128x1xf32, #tpu.memory_space<vmem>>, %arg14: memref<4x16xbf16, #tpu.memory_space<vmem>>, %arg15: memref<64x128xbf16, #tpu.memory_space<vmem>>, %arg16: memref<4x128xf32, #tpu.memory_space<vmem>>, %arg17: memref<2x128xf32, #tpu.memory_space<vmem>>, %arg18: memref<1x4xbf16, #tpu.memory_space<vmem>>, %arg19: memref<128x128xbf16, #tpu.memory_space<vmem>>, %arg20: memref<1x128xf32, #tpu.memory_space<vmem>>, %arg21: memref<128x3xbf16, #tpu.memory_space<vmem>>, %arg22: memref<1x3xf32, #tpu.memory_space<vmem>>, %arg23: memref<1x1x3xf32, #tpu.memory_space<vmem>>, %arg24: memref<1x1x128xf32, #tpu.memory_space<vmem>>) attributes {dimension_semantics = [#tpu.dimension_semantics<parallel>], iteration_bounds = array<i64: 2>, scalar_prefetch = 0 : i64, scratch_operands = 0 : i64, tpu.core_type = #tpu.core_type<tc>, window_params = [{transform_indices = @transform_0, window_bounds = array<i64: 1, 8, 1024>}, {pipeline_mode = #tpu.pipeline_mode<synchronous>, transform_indices = @transform_1, window_bounds = array<i64: 1024, 256>}, {pipeline_mode = #tpu.pipeline_mode<synchronous>, transform_indices = @transform_2, window_bounds = array<i64: 16, 8>}, {pipeline_mode = #tpu.pipeline_mode<synchronous>, transform_indices = @transform_3, window_bounds = array<i64: 16, 256>}, {pipeline_mode = #tpu.pipeline_mode<synchronous>, transform_indices = @transform_4, window_bounds = array<i64: 32, 1>}, {pipeline_mode = #tpu.pipeline_mode<synchronous>, transform_indices = @transform_5, window_bounds = array<i64: 256, 64>}, {pipeline_mode = #tpu.pipeline_mode<synchronous>, transform_indices = @transform_6, window_bounds = array<i64: 32, 16>}, {pipeline_mode = #tpu.pipeline_mode<synchronous>, transform_indices = @transform_7, window_bounds = array<i64: 32, 64>}, {pipeline_mode = #tpu.pipeline_mode<synchronous>, transform_indices = @transform_8, window_bounds = array<i64: 64, 1>}, {pipeline_mode = #tpu.pipeline_mode<synchronous>, transform_indices = @transform_9, window_bounds = array<i64: 64, 16>}, {pipeline_mode = #tpu.pipeline_mode<synchronous>, transform_indices = @transform_10, window_bounds = array<i64: 64, 32>}, {pipeline_mode = #tpu.pipeline_mode<synchronous>, transform_indices = @transform_11, window_bounds = array<i64: 64, 16>}, {pipeline_mode = #tpu.pipeline_mode<synchronous>, transform_indices = @transform_12, window_bounds = array<i64: 128, 1>}, {pipeline_mode = #tpu.pipeline_mode<synchronous>, transform_indices = @transform_13, window_bounds = array<i64: 4, 16>}, {pipeline_mode = #tpu.pipeline_mode<synchronous>, transform_indices = @transform_14, window_bounds = array<i64: 64, 128>}, {pipeline_mode = #tpu.pipeline_mode<synchronous>, transform_indices = @transform_15, window_bounds = array<i64: 4, 128>}, {pipeline_mode = #tpu.pipeline_mode<synchronous>, transform_indices = @transform_16, window_bounds = array<i64: 2, 128>}, {pipeline_mode = #tpu.pipeline_mode<synchronous>, transform_indices = @transform_17, window_bounds = array<i64: 1, 4>}, {pipeline_mode = #tpu.pipeline_mode<synchronous>, transform_indices = @transform_18, window_bounds = array<i64: 128, 128>}, {pipeline_mode = #tpu.pipeline_mode<synchronous>, transform_indices = @transform_19, window_bounds = array<i64: 1, 128>}, {pipeline_mode = #tpu.pipeline_mode<synchronous>, transform_indices = @transform_20, window_bounds = array<i64: 128, 3>}, {pipeline_mode = #tpu.pipeline_mode<synchronous>, transform_indices = @transform_21, window_bounds = array<i64: 1, 3>}, {transform_indices = @transform_22, window_bounds = array<i64: 1, 1, 3>}, {transform_indices = @transform_23, window_bounds = array<i64: 1, 1, 128>}]} {
    %c0 = arith.constant 0 : index
    %c0_0 = arith.constant 0 : index
    %c0_1 = arith.constant 0 : index
    %0 = vector.load %arg1[%c0, %c0_0, %c0_1] : memref<1x8x1024xbf16, #tpu.memory_space<vmem>>, vector<1x8x1024xbf16>
    %1 = vector.shape_cast %0 : vector<1x8x1024xbf16> to vector<8x1024xbf16>
    %c0_2 = arith.constant 0 : index
    %c0_3 = arith.constant 0 : index
    %2 = vector.load %arg2[%c0_2, %c0_3] : memref<1024x256xbf16, #tpu.memory_space<vmem>>, vector<1024x256xbf16>
    %cst = arith.constant dense<0.000000e+00> : vector<8x256xf32>
    %3 = tpu.matmul %1, %2, %cst {dimension_numbers = #tpu.dot_dimension_numbers<[1], [0], [0], [1], [0, 0, 1, 1], [], []>} : vector<8x1024xbf16>, vector<1024x256xbf16>, vector<8x256xf32> -> vector<8x256xf32>
    %cst_4 = arith.constant 0.111111112 : f32
    %4 = vector.broadcast %cst_4 : f32 to vector<8x256xf32>
    %5 = arith.mulf %3, %4 : vector<8x256xf32>
    %c0_5 = arith.constant 0 : index
    %c0_6 = arith.constant 0 : index
    %6 = vector.load %arg3[%c0_5, %c0_6] : memref<16x8xbf16, #tpu.memory_space<vmem>>, vector<16x8xbf16>
    %7 = arith.truncf %5 : vector<8x256xf32> to vector<8x256xbf16>
    %cst_7 = arith.constant dense<0.000000e+00> : vector<16x256xf32>
    %8 = tpu.matmul %6, %7, %cst_7 {dimension_numbers = #tpu.dot_dimension_numbers<[1], [0], [0], [1], [0, 0, 1, 1], [], []>} : vector<16x8xbf16>, vector<8x256xbf16>, vector<16x256xf32> -> vector<16x256xf32>
    %c0_8 = arith.constant 0 : index
    %c0_9 = arith.constant 0 : index
    %9 = vector.load %arg4[%c0_8, %c0_9] : memref<16x256xf32, #tpu.memory_space<vmem>>, vector<16x256xf32>
    %10 = arith.addf %8, %9 : vector<16x256xf32>
    %cst_10 = arith.constant 0.000000e+00 : f32
    %11 = vector.broadcast %cst_10 : f32 to vector<16x256xf32>
    %12 = arith.cmpf oge, %10, %11 : vector<16x256xf32>
    %cst_11 = arith.constant 2.000000e-01 : f32
    %13 = vector.broadcast %cst_11 : f32 to vector<16x256xf32>
    %14 = arith.mulf %13, %10 : vector<16x256xf32>
    %15 = arith.select %12, %10, %14 : vector<16x256xi1>, vector<16x256xf32>
    %cst_12 = arith.constant dense<0.000000e+00> : vector<16xf32>
    %16 = vector.multi_reduction <add>, %15, %cst_12 [1] : vector<16x256xf32> to vector<16xf32>
    %17 = vector.shape_cast %16 : vector<16xf32> to vector<16x1xf32>
    %18 = arith.mulf %15, %15 : vector<16x256xf32>
    %cst_13 = arith.constant dense<0.000000e+00> : vector<16xf32>
    %19 = vector.multi_reduction <add>, %18, %cst_13 [1] : vector<16x256xf32> to vector<16xf32>
    %20 = vector.shape_cast %19 : vector<16xf32> to vector<16x1xf32>
    %cst_14 = arith.constant 3.906250e-03 : f32
    %21 = vector.broadcast %cst_14 : f32 to vector<16x1xf32>
    %22 = arith.mulf %17, %21 : vector<16x1xf32>
    %cst_15 = arith.constant 3.906250e-03 : f32
    %23 = vector.broadcast %cst_15 : f32 to vector<16x1xf32>
    %24 = arith.mulf %20, %23 : vector<16x1xf32>
    %25 = arith.mulf %22, %22 : vector<16x1xf32>
    %26 = arith.subf %24, %25 : vector<16x1xf32>
    %cst_16 = arith.constant 0.000000e+00 : f32
    %27 = vector.broadcast %cst_16 : f32 to vector<16x1xf32>
    %28 = arith.maximumf %26, %27 : vector<16x1xf32>
    %29 = vector.broadcast %22 : vector<16x1xf32> to vector<16x256xf32>
    %30 = arith.subf %15, %29 : vector<16x256xf32>
    %cst_17 = arith.constant 9.99999974E-6 : f32
    %31 = vector.broadcast %cst_17 : f32 to vector<16x1xf32>
    %32 = arith.addf %28, %31 : vector<16x1xf32>
    %33 = math.rsqrt %32 : vector<16x1xf32>
    %34 = vector.broadcast %33 : vector<16x1xf32> to vector<16x256xf32>
    %35 = arith.mulf %30, %34 : vector<16x256xf32>
    %c0_18 = arith.constant 0 : index
    %c0_19 = arith.constant 0 : index
    %36 = vector.load %arg5[%c0_18, %c0_19] : memref<32x1xf32, #tpu.memory_space<vmem>>, vector<16x1xf32>
    %c16 = arith.constant 16 : index
    %c0_20 = arith.constant 0 : index
    %37 = vector.load %arg5[%c16, %c0_20] : memref<32x1xf32, #tpu.memory_space<vmem>>, vector<16x1xf32>
    %38 = vector.broadcast %36 : vector<16x1xf32> to vector<16x256xf32>
    %39 = arith.mulf %35, %38 : vector<16x256xf32>
    %40 = vector.broadcast %37 : vector<16x1xf32> to vector<16x256xf32>
    %41 = arith.addf %39, %40 : vector<16x256xf32>
    %42 = arith.truncf %41 : vector<16x256xf32> to vector<16x256xbf16>
    %c0_21 = arith.constant 0 : index
    %c0_22 = arith.constant 0 : index
    %43 = vector.load %arg6[%c0_21, %c0_22] : memref<256x64xbf16, #tpu.memory_space<vmem>>, vector<256x64xbf16>
    %cst_23 = arith.constant dense<0.000000e+00> : vector<16x64xf32>
    %44 = tpu.matmul %42, %43, %cst_23 {dimension_numbers = #tpu.dot_dimension_numbers<[1], [0], [0], [1], [0, 0, 1, 1], [], []>} : vector<16x256xbf16>, vector<256x64xbf16>, vector<16x64xf32> -> vector<16x64xf32>
    %cst_24 = arith.constant 0.111111112 : f32
    %45 = vector.broadcast %cst_24 : f32 to vector<16x64xf32>
    %46 = arith.mulf %44, %45 : vector<16x64xf32>
    %c0_25 = arith.constant 0 : index
    %c0_26 = arith.constant 0 : index
    %47 = vector.load %arg7[%c0_25, %c0_26] : memref<32x16xbf16, #tpu.memory_space<vmem>>, vector<32x16xbf16>
    %48 = arith.truncf %46 : vector<16x64xf32> to vector<16x64xbf16>
    %cst_27 = arith.constant dense<0.000000e+00> : vector<32x64xf32>
    %49 = tpu.matmul %47, %48, %cst_27 {dimension_numbers = #tpu.dot_dimension_numbers<[1], [0], [0], [1], [0, 0, 1, 1], [], []>} : vector<32x16xbf16>, vector<16x64xbf16>, vector<32x64xf32> -> vector<32x64xf32>
    %c0_28 = arith.constant 0 : index
    %c0_29 = arith.constant 0 : index
    %50 = vector.load %arg8[%c0_28, %c0_29] : memref<32x64xf32, #tpu.memory_space<vmem>>, vector<32x64xf32>
    %51 = arith.addf %49, %50 : vector<32x64xf32>
    %cst_30 = arith.constant 0.000000e+00 : f32
    %52 = vector.broadcast %cst_30 : f32 to vector<32x64xf32>
    %53 = arith.cmpf oge, %51, %52 : vector<32x64xf32>
    %cst_31 = arith.constant 2.000000e-01 : f32
    %54 = vector.broadcast %cst_31 : f32 to vector<32x64xf32>
    %55 = arith.mulf %54, %51 : vector<32x64xf32>
    %56 = arith.select %53, %51, %55 : vector<32x64xi1>, vector<32x64xf32>
    %cst_32 = arith.constant dense<0.000000e+00> : vector<32xf32>
    %57 = vector.multi_reduction <add>, %56, %cst_32 [1] : vector<32x64xf32> to vector<32xf32>
    %58 = vector.shape_cast %57 : vector<32xf32> to vector<32x1xf32>
    %59 = arith.mulf %56, %56 : vector<32x64xf32>
    %cst_33 = arith.constant dense<0.000000e+00> : vector<32xf32>
    %60 = vector.multi_reduction <add>, %59, %cst_33 [1] : vector<32x64xf32> to vector<32xf32>
    %61 = vector.shape_cast %60 : vector<32xf32> to vector<32x1xf32>
    %cst_34 = arith.constant 1.562500e-02 : f32
    %62 = vector.broadcast %cst_34 : f32 to vector<32x1xf32>
    %63 = arith.mulf %58, %62 : vector<32x1xf32>
    %cst_35 = arith.constant 1.562500e-02 : f32
    %64 = vector.broadcast %cst_35 : f32 to vector<32x1xf32>
    %65 = arith.mulf %61, %64 : vector<32x1xf32>
    %66 = arith.mulf %63, %63 : vector<32x1xf32>
    %67 = arith.subf %65, %66 : vector<32x1xf32>
    %cst_36 = arith.constant 0.000000e+00 : f32
    %68 = vector.broadcast %cst_36 : f32 to vector<32x1xf32>
    %69 = arith.maximumf %67, %68 : vector<32x1xf32>
    %70 = vector.broadcast %63 : vector<32x1xf32> to vector<32x64xf32>
    %71 = arith.subf %56, %70 : vector<32x64xf32>
    %cst_37 = arith.constant 9.99999974E-6 : f32
    %72 = vector.broadcast %cst_37 : f32 to vector<32x1xf32>
    %73 = arith.addf %69, %72 : vector<32x1xf32>
    %74 = math.rsqrt %73 : vector<32x1xf32>
    %75 = vector.broadcast %74 : vector<32x1xf32> to vector<32x64xf32>
    %76 = arith.mulf %71, %75 : vector<32x64xf32>
    %c0_38 = arith.constant 0 : index
    %c0_39 = arith.constant 0 : index
    %77 = vector.load %arg9[%c0_38, %c0_39] : memref<64x1xf32, #tpu.memory_space<vmem>>, vector<32x1xf32>
    %c32 = arith.constant 32 : index
    %c0_40 = arith.constant 0 : index
    %78 = vector.load %arg9[%c32, %c0_40] : memref<64x1xf32, #tpu.memory_space<vmem>>, vector<32x1xf32>
    %79 = vector.broadcast %77 : vector<32x1xf32> to vector<32x64xf32>
    %80 = arith.mulf %76, %79 : vector<32x64xf32>
    %81 = vector.broadcast %78 : vector<32x1xf32> to vector<32x64xf32>
    %82 = arith.addf %80, %81 : vector<32x64xf32>
    %83 = arith.truncf %82 : vector<32x64xf32> to vector<32x64xbf16>
    %c0_41 = arith.constant 0 : index
    %c0_42 = arith.constant 0 : index
    %84 = vector.load %arg10[%c0_41, %c0_42] : memref<64x16xbf16, #tpu.memory_space<vmem>>, vector<64x16xbf16>
    %cst_43 = arith.constant dense<0.000000e+00> : vector<32x16xf32>
    %85 = tpu.matmul %83, %84, %cst_43 {dimension_numbers = #tpu.dot_dimension_numbers<[1], [0], [0], [1], [0, 0, 1, 1], [], []>} : vector<32x64xbf16>, vector<64x16xbf16>, vector<32x16xf32> -> vector<32x16xf32>
    %cst_44 = arith.constant 0.111111112 : f32
    %86 = vector.broadcast %cst_44 : f32 to vector<32x16xf32>
    %87 = arith.mulf %85, %86 : vector<32x16xf32>
    %c0_45 = arith.constant 0 : index
    %c0_46 = arith.constant 0 : index
    %88 = vector.load %arg11[%c0_45, %c0_46] : memref<64x32xbf16, #tpu.memory_space<vmem>>, vector<64x32xbf16>
    %89 = arith.truncf %87 : vector<32x16xf32> to vector<32x16xbf16>
    %cst_47 = arith.constant dense<0.000000e+00> : vector<64x16xf32>
    %90 = tpu.matmul %88, %89, %cst_47 {dimension_numbers = #tpu.dot_dimension_numbers<[1], [0], [0], [1], [0, 0, 1, 1], [], []>} : vector<64x32xbf16>, vector<32x16xbf16>, vector<64x16xf32> -> vector<64x16xf32>
    %c0_48 = arith.constant 0 : index
    %c0_49 = arith.constant 0 : index
    %91 = vector.load %arg12[%c0_48, %c0_49] : memref<64x16xf32, #tpu.memory_space<vmem>>, vector<64x16xf32>
    %92 = arith.addf %90, %91 : vector<64x16xf32>
    %cst_50 = arith.constant 0.000000e+00 : f32
    %93 = vector.broadcast %cst_50 : f32 to vector<64x16xf32>
    %94 = arith.cmpf oge, %92, %93 : vector<64x16xf32>
    %cst_51 = arith.constant 2.000000e-01 : f32
    %95 = vector.broadcast %cst_51 : f32 to vector<64x16xf32>
    %96 = arith.mulf %95, %92 : vector<64x16xf32>
    %97 = arith.select %94, %92, %96 : vector<64x16xi1>, vector<64x16xf32>
    %cst_52 = arith.constant dense<0.000000e+00> : vector<64xf32>
    %98 = vector.multi_reduction <add>, %97, %cst_52 [1] : vector<64x16xf32> to vector<64xf32>
    %99 = vector.shape_cast %98 : vector<64xf32> to vector<64x1xf32>
    %100 = arith.mulf %97, %97 : vector<64x16xf32>
    %cst_53 = arith.constant dense<0.000000e+00> : vector<64xf32>
    %101 = vector.multi_reduction <add>, %100, %cst_53 [1] : vector<64x16xf32> to vector<64xf32>
    %102 = vector.shape_cast %101 : vector<64xf32> to vector<64x1xf32>
    %cst_54 = arith.constant 6.250000e-02 : f32
    %103 = vector.broadcast %cst_54 : f32 to vector<64x1xf32>
    %104 = arith.mulf %99, %103 : vector<64x1xf32>
    %cst_55 = arith.constant 6.250000e-02 : f32
    %105 = vector.broadcast %cst_55 : f32 to vector<64x1xf32>
    %106 = arith.mulf %102, %105 : vector<64x1xf32>
    %107 = arith.mulf %104, %104 : vector<64x1xf32>
    %108 = arith.subf %106, %107 : vector<64x1xf32>
    %cst_56 = arith.constant 0.000000e+00 : f32
    %109 = vector.broadcast %cst_56 : f32 to vector<64x1xf32>
    %110 = arith.maximumf %108, %109 : vector<64x1xf32>
    %111 = vector.broadcast %104 : vector<64x1xf32> to vector<64x16xf32>
    %112 = arith.subf %97, %111 : vector<64x16xf32>
    %cst_57 = arith.constant 9.99999974E-6 : f32
    %113 = vector.broadcast %cst_57 : f32 to vector<64x1xf32>
    %114 = arith.addf %110, %113 : vector<64x1xf32>
    %115 = math.rsqrt %114 : vector<64x1xf32>
    %116 = vector.broadcast %115 : vector<64x1xf32> to vector<64x16xf32>
    %117 = arith.mulf %112, %116 : vector<64x16xf32>
    %c0_58 = arith.constant 0 : index
    %c0_59 = arith.constant 0 : index
    %118 = vector.load %arg13[%c0_58, %c0_59] : memref<128x1xf32, #tpu.memory_space<vmem>>, vector<64x1xf32>
    %c64 = arith.constant 64 : index
    %c0_60 = arith.constant 0 : index
    %119 = vector.load %arg13[%c64, %c0_60] : memref<128x1xf32, #tpu.memory_space<vmem>>, vector<64x1xf32>
    %120 = vector.broadcast %118 : vector<64x1xf32> to vector<64x16xf32>
    %121 = arith.mulf %117, %120 : vector<64x16xf32>
    %122 = vector.broadcast %119 : vector<64x1xf32> to vector<64x16xf32>
    %123 = arith.addf %121, %122 : vector<64x16xf32>
    %124 = tpu.transpose %123, [1, 0] : vector<64x16xf32> -> vector<16x64xf32>
    %125 = arith.truncf %124 : vector<16x64xf32> to vector<16x64xbf16>
    %c0_61 = arith.constant 0 : index
    %c0_62 = arith.constant 0 : index
    %126 = vector.load %arg14[%c0_61, %c0_62] : memref<4x16xbf16, #tpu.memory_space<vmem>>, vector<4x16xbf16>
    %cst_63 = arith.constant dense<0.000000e+00> : vector<4x64xf32>
    %127 = tpu.matmul %126, %125, %cst_63 {dimension_numbers = #tpu.dot_dimension_numbers<[1], [0], [0], [1], [0, 0, 1, 1], [], []>} : vector<4x16xbf16>, vector<16x64xbf16>, vector<4x64xf32> -> vector<4x64xf32>
    %cst_64 = arith.constant 0.111111112 : f32
    %128 = vector.broadcast %cst_64 : f32 to vector<4x64xf32>
    %129 = arith.mulf %127, %128 : vector<4x64xf32>
    %130 = arith.truncf %129 : vector<4x64xf32> to vector<4x64xbf16>
    %c0_65 = arith.constant 0 : index
    %c0_66 = arith.constant 0 : index
    %131 = vector.load %arg15[%c0_65, %c0_66] : memref<64x128xbf16, #tpu.memory_space<vmem>>, vector<64x128xbf16>
    %cst_67 = arith.constant dense<0.000000e+00> : vector<4x128xf32>
    %132 = tpu.matmul %130, %131, %cst_67 {dimension_numbers = #tpu.dot_dimension_numbers<[1], [0], [0], [1], [0, 0, 1, 1], [], []>} : vector<4x64xbf16>, vector<64x128xbf16>, vector<4x128xf32> -> vector<4x128xf32>
    %c0_68 = arith.constant 0 : index
    %c0_69 = arith.constant 0 : index
    %133 = vector.load %arg16[%c0_68, %c0_69] : memref<4x128xf32, #tpu.memory_space<vmem>>, vector<4x128xf32>
    %134 = arith.addf %132, %133 : vector<4x128xf32>
    %cst_70 = arith.constant 0.000000e+00 : f32
    %135 = vector.broadcast %cst_70 : f32 to vector<4x128xf32>
    %136 = arith.cmpf oge, %134, %135 : vector<4x128xf32>
    %cst_71 = arith.constant 2.000000e-01 : f32
    %137 = vector.broadcast %cst_71 : f32 to vector<4x128xf32>
    %138 = arith.mulf %137, %134 : vector<4x128xf32>
    %139 = arith.select %136, %134, %138 : vector<4x128xi1>, vector<4x128xf32>
    %cst_72 = arith.constant dense<0.000000e+00> : vector<128xf32>
    %140 = vector.multi_reduction <add>, %139, %cst_72 [0] : vector<4x128xf32> to vector<128xf32>
    %141 = vector.shape_cast %140 : vector<128xf32> to vector<1x128xf32>
    %142 = arith.mulf %139, %139 : vector<4x128xf32>
    %cst_73 = arith.constant dense<0.000000e+00> : vector<128xf32>
    %143 = vector.multi_reduction <add>, %142, %cst_73 [0] : vector<4x128xf32> to vector<128xf32>
    %144 = vector.shape_cast %143 : vector<128xf32> to vector<1x128xf32>
    %cst_74 = arith.constant 2.500000e-01 : f32
    %145 = vector.broadcast %cst_74 : f32 to vector<1x128xf32>
    %146 = arith.mulf %141, %145 : vector<1x128xf32>
    %cst_75 = arith.constant 2.500000e-01 : f32
    %147 = vector.broadcast %cst_75 : f32 to vector<1x128xf32>
    %148 = arith.mulf %144, %147 : vector<1x128xf32>
    %149 = arith.mulf %146, %146 : vector<1x128xf32>
    %150 = arith.subf %148, %149 : vector<1x128xf32>
    %cst_76 = arith.constant 0.000000e+00 : f32
    %151 = vector.broadcast %cst_76 : f32 to vector<1x128xf32>
    %152 = arith.maximumf %150, %151 : vector<1x128xf32>
    %153 = vector.broadcast %146 : vector<1x128xf32> to vector<4x128xf32>
    %154 = arith.subf %139, %153 : vector<4x128xf32>
    %cst_77 = arith.constant 9.99999974E-6 : f32
    %155 = vector.broadcast %cst_77 : f32 to vector<1x128xf32>
    %156 = arith.addf %152, %155 : vector<1x128xf32>
    %157 = math.rsqrt %156 : vector<1x128xf32>
    %158 = vector.broadcast %157 : vector<1x128xf32> to vector<4x128xf32>
    %159 = arith.mulf %154, %158 : vector<4x128xf32>
    %c0_78 = arith.constant 0 : index
    %c0_79 = arith.constant 0 : index
    %160 = vector.load %arg17[%c0_78, %c0_79] : memref<2x128xf32, #tpu.memory_space<vmem>>, vector<1x128xf32>
    %c1 = arith.constant 1 : index
    %c0_80 = arith.constant 0 : index
    %161 = vector.load %arg17[%c1, %c0_80] : memref<2x128xf32, #tpu.memory_space<vmem>>, vector<1x128xf32>
    %162 = vector.broadcast %160 : vector<1x128xf32> to vector<4x128xf32>
    %163 = arith.mulf %159, %162 : vector<4x128xf32>
    %164 = vector.broadcast %161 : vector<1x128xf32> to vector<4x128xf32>
    %165 = arith.addf %163, %164 : vector<4x128xf32>
    %166 = arith.truncf %165 : vector<4x128xf32> to vector<4x128xbf16>
    %c0_81 = arith.constant 0 : index
    %c0_82 = arith.constant 0 : index
    %167 = vector.load %arg18[%c0_81, %c0_82] : memref<1x4xbf16, #tpu.memory_space<vmem>>, vector<1x4xbf16>
    %cst_83 = arith.constant dense<0.000000e+00> : vector<1x128xf32>
    %168 = tpu.matmul %167, %166, %cst_83 {dimension_numbers = #tpu.dot_dimension_numbers<[1], [0], [0], [1], [0, 0, 1, 1], [], []>} : vector<1x4xbf16>, vector<4x128xbf16>, vector<1x128xf32> -> vector<1x128xf32>
    %cst_84 = arith.constant 0.111111112 : f32
    %169 = vector.broadcast %cst_84 : f32 to vector<1x128xf32>
    %170 = arith.mulf %168, %169 : vector<1x128xf32>
    %171 = arith.truncf %170 : vector<1x128xf32> to vector<1x128xbf16>
    %c0_85 = arith.constant 0 : index
    %c0_86 = arith.constant 0 : index
    %172 = vector.load %arg19[%c0_85, %c0_86] : memref<128x128xbf16, #tpu.memory_space<vmem>>, vector<128x128xbf16>
    %cst_87 = arith.constant dense<0.000000e+00> : vector<1x128xf32>
    %173 = tpu.matmul %171, %172, %cst_87 {dimension_numbers = #tpu.dot_dimension_numbers<[1], [0], [0], [1], [0, 0, 1, 1], [], []>} : vector<1x128xbf16>, vector<128x128xbf16>, vector<1x128xf32> -> vector<1x128xf32>
    %c0_88 = arith.constant 0 : index
    %c0_89 = arith.constant 0 : index
    %174 = vector.load %arg20[%c0_88, %c0_89] : memref<1x128xf32, #tpu.memory_space<vmem>>, vector<1x128xf32>
    %175 = arith.addf %173, %174 : vector<1x128xf32>
    %cst_90 = arith.constant 0.000000e+00 : f32
    %176 = vector.broadcast %cst_90 : f32 to vector<1x128xf32>
    %177 = arith.cmpf oge, %175, %176 : vector<1x128xf32>
    %cst_91 = arith.constant 2.000000e-01 : f32
    %178 = vector.broadcast %cst_91 : f32 to vector<1x128xf32>
    %179 = arith.mulf %178, %175 : vector<1x128xf32>
    %180 = arith.select %177, %175, %179 : vector<1x128xi1>, vector<1x128xf32>
    %c0_92 = arith.constant 0 : index
    %c0_93 = arith.constant 0 : index
    %c0_94 = arith.constant 0 : index
    %181 = vector.load %arg24[%c0_92, %c0_93, %c0_94] : memref<1x1x128xf32, #tpu.memory_space<vmem>>, vector<1x1x128xf32>
    %182 = vector.shape_cast %181 : vector<1x1x128xf32> to vector<1x128xf32>
    %183 = vector.shape_cast %180 : vector<1x128xf32> to vector<1x1x128xf32>
    tpu.vector_store %arg24[%c0_92, %c0_93, %c0_94], %183 {strides = array<i32>} : memref<1x1x128xf32, #tpu.memory_space<vmem>>, vector<1x1x128xf32>,
    %cst_95 = arith.constant dense<0.000000e+00> : vector<128xf32>
    %184 = vector.multi_reduction <add>, %180, %cst_95 [0] : vector<1x128xf32> to vector<128xf32>
    %185 = vector.shape_cast %184 : vector<128xf32> to vector<1x128xf32>
    %cst_96 = arith.constant 1.000000e+00 : f32
    %186 = vector.broadcast %cst_96 : f32 to vector<1x128xf32>
    %187 = arith.mulf %185, %186 : vector<1x128xf32>
    %188 = arith.truncf %187 : vector<1x128xf32> to vector<1x128xbf16>
    %c0_97 = arith.constant 0 : index
    %c0_98 = arith.constant 0 : index
    %189 = vector.load %arg21[%c0_97, %c0_98] : memref<128x3xbf16, #tpu.memory_space<vmem>>, vector<128x3xbf16>
    %cst_99 = arith.constant dense<0.000000e+00> : vector<1x3xf32>
    %190 = tpu.matmul %188, %189, %cst_99 {dimension_numbers = #tpu.dot_dimension_numbers<[1], [0], [0], [1], [0, 0, 1, 1], [], []>} : vector<1x128xbf16>, vector<128x3xbf16>, vector<1x3xf32> -> vector<1x3xf32>
    %c0_100 = arith.constant 0 : index
    %c0_101 = arith.constant 0 : index
    %191 = vector.load %arg22[%c0_100, %c0_101] : memref<1x3xf32, #tpu.memory_space<vmem>>, vector<1x3xf32>
    %192 = arith.addf %190, %191 : vector<1x3xf32>
    %c0_102 = arith.constant 0 : index
    %c0_103 = arith.constant 0 : index
    %c0_104 = arith.constant 0 : index
    %193 = vector.load %arg23[%c0_102, %c0_103, %c0_104] : memref<1x1x3xf32, #tpu.memory_space<vmem>>, vector<1x1x3xf32>
    %194 = vector.shape_cast %193 : vector<1x1x3xf32> to vector<1x3xf32>
    %195 = vector.shape_cast %192 : vector<1x3xf32> to vector<1x1x3xf32>
    tpu.vector_store %arg23[%c0_102, %c0_103, %c0_104], %195 {strides = array<i32>} : memref<1x1x3xf32, #tpu.memory_space<vmem>>, vector<1x1x3xf32>,
    return
  }
  func.func @transform_0(%arg0: i32) -> (i32, i32, i32) {
    %c0_i32 = arith.constant 0 : i32
    %c0_i32_0 = arith.constant 0 : i32
    %c0_i32_1 = arith.constant 0 : i32
    return %arg0, %c0_i32, %c0_i32_0 : i32, i32, i32
  }
  func.func @transform_1(%arg0: i32) -> (i32, i32) {
    %c0_i32 = arith.constant 0 : i32
    %c0_i32_0 = arith.constant 0 : i32
    %c0_i32_1 = arith.constant 0 : i32
    return %c0_i32, %c0_i32_0 : i32, i32
  }
  func.func @transform_2(%arg0: i32) -> (i32, i32) {
    %c0_i32 = arith.constant 0 : i32
    %c0_i32_0 = arith.constant 0 : i32
    %c0_i32_1 = arith.constant 0 : i32
    return %c0_i32, %c0_i32_0 : i32, i32
  }
  func.func @transform_3(%arg0: i32) -> (i32, i32) {
    %c0_i32 = arith.constant 0 : i32
    %c0_i32_0 = arith.constant 0 : i32
    %c0_i32_1 = arith.constant 0 : i32
    return %c0_i32, %c0_i32_0 : i32, i32
  }
  func.func @transform_4(%arg0: i32) -> (i32, i32) {
    %c0_i32 = arith.constant 0 : i32
    %c0_i32_0 = arith.constant 0 : i32
    %c0_i32_1 = arith.constant 0 : i32
    return %c0_i32, %c0_i32_0 : i32, i32
  }
  func.func @transform_5(%arg0: i32) -> (i32, i32) {
    %c0_i32 = arith.constant 0 : i32
    %c0_i32_0 = arith.constant 0 : i32
    %c0_i32_1 = arith.constant 0 : i32
    return %c0_i32, %c0_i32_0 : i32, i32
  }
  func.func @transform_6(%arg0: i32) -> (i32, i32) {
    %c0_i32 = arith.constant 0 : i32
    %c0_i32_0 = arith.constant 0 : i32
    %c0_i32_1 = arith.constant 0 : i32
    return %c0_i32, %c0_i32_0 : i32, i32
  }
  func.func @transform_7(%arg0: i32) -> (i32, i32) {
    %c0_i32 = arith.constant 0 : i32
    %c0_i32_0 = arith.constant 0 : i32
    %c0_i32_1 = arith.constant 0 : i32
    return %c0_i32, %c0_i32_0 : i32, i32
  }
  func.func @transform_8(%arg0: i32) -> (i32, i32) {
    %c0_i32 = arith.constant 0 : i32
    %c0_i32_0 = arith.constant 0 : i32
    %c0_i32_1 = arith.constant 0 : i32
    return %c0_i32, %c0_i32_0 : i32, i32
  }
  func.func @transform_9(%arg0: i32) -> (i32, i32) {
    %c0_i32 = arith.constant 0 : i32
    %c0_i32_0 = arith.constant 0 : i32
    %c0_i32_1 = arith.constant 0 : i32
    return %c0_i32, %c0_i32_0 : i32, i32
  }
  func.func @transform_10(%arg0: i32) -> (i32, i32) {
    %c0_i32 = arith.constant 0 : i32
    %c0_i32_0 = arith.constant 0 : i32
    %c0_i32_1 = arith.constant 0 : i32
    return %c0_i32, %c0_i32_0 : i32, i32
  }
  func.func @transform_11(%arg0: i32) -> (i32, i32) {
    %c0_i32 = arith.constant 0 : i32
    %c0_i32_0 = arith.constant 0 : i32
    %c0_i32_1 = arith.constant 0 : i32
    return %c0_i32, %c0_i32_0 : i32, i32
  }
  func.func @transform_12(%arg0: i32) -> (i32, i32) {
    %c0_i32 = arith.constant 0 : i32
    %c0_i32_0 = arith.constant 0 : i32
    %c0_i32_1 = arith.constant 0 : i32
    return %c0_i32, %c0_i32_0 : i32, i32
  }
  func.func @transform_13(%arg0: i32) -> (i32, i32) {
    %c0_i32 = arith.constant 0 : i32
    %c0_i32_0 = arith.constant 0 : i32
    %c0_i32_1 = arith.constant 0 : i32
    return %c0_i32, %c0_i32_0 : i32, i32
  }
  func.func @transform_14(%arg0: i32) -> (i32, i32) {
    %c0_i32 = arith.constant 0 : i32
    %c0_i32_0 = arith.constant 0 : i32
    %c0_i32_1 = arith.constant 0 : i32
    return %c0_i32, %c0_i32_0 : i32, i32
  }
  func.func @transform_15(%arg0: i32) -> (i32, i32) {
    %c0_i32 = arith.constant 0 : i32
    %c0_i32_0 = arith.constant 0 : i32
    %c0_i32_1 = arith.constant 0 : i32
    return %c0_i32, %c0_i32_0 : i32, i32
  }
  func.func @transform_16(%arg0: i32) -> (i32, i32) {
    %c0_i32 = arith.constant 0 : i32
    %c0_i32_0 = arith.constant 0 : i32
    %c0_i32_1 = arith.constant 0 : i32
    return %c0_i32, %c0_i32_0 : i32, i32
  }
  func.func @transform_17(%arg0: i32) -> (i32, i32) {
    %c0_i32 = arith.constant 0 : i32
    %c0_i32_0 = arith.constant 0 : i32
    %c0_i32_1 = arith.constant 0 : i32
    return %c0_i32, %c0_i32_0 : i32, i32
  }
  func.func @transform_18(%arg0: i32) -> (i32, i32) {
    %c0_i32 = arith.constant 0 : i32
    %c0_i32_0 = arith.constant 0 : i32
    %c0_i32_1 = arith.constant 0 : i32
    return %c0_i32, %c0_i32_0 : i32, i32
  }
  func.func @transform_19(%arg0: i32) -> (i32, i32) {
    %c0_i32 = arith.constant 0 : i32
    %c0_i32_0 = arith.constant 0 : i32
    %c0_i32_1 = arith.constant 0 : i32
    return %c0_i32, %c0_i32_0 : i32, i32
  }
  func.func @transform_20(%arg0: i32) -> (i32, i32) {
    %c0_i32 = arith.constant 0 : i32
    %c0_i32_0 = arith.constant 0 : i32
    %c0_i32_1 = arith.constant 0 : i32
    return %c0_i32, %c0_i32_0 : i32, i32
  }
  func.func @transform_21(%arg0: i32) -> (i32, i32) {
    %c0_i32 = arith.constant 0 : i32
    %c0_i32_0 = arith.constant 0 : i32
    %c0_i32_1 = arith.constant 0 : i32
    return %c0_i32, %c0_i32_0 : i32, i32
  }
  func.func @transform_22(%arg0: i32) -> (i32, i32, i32) {
    %c0_i32 = arith.constant 0 : i32
    %c0_i32_0 = arith.constant 0 : i32
    %c0_i32_1 = arith.constant 0 : i32
    return %arg0, %c0_i32, %c0_i32_0 : i32, i32, i32
  }
  func.func @transform_23(%arg0: i32) -> (i32, i32, i32) {
    %c0_i32 = arith.constant 0 : i32
    %c0_i32_0 = arith.constant 0 : i32
    %c0_i32_1 = arith.constant 0 : i32
    return %arg0, %c0_i32, %c0_i32_0 : i32, i32, i32
  }
}

</mosaic_0001>

<bundles_post_ra>
// kernel: tpu_custom_call.1
= control target key start
LH: loop header
LB: loop body
LE: loop exit
PB: predicated region body
PF: predicated region fallthrough
CT: control target
= control target key end

     0   :  { %s5120_s0 = inlined_call_operand.vmem [shape: bf16[2,8,1024], index: 0, kind: input, shape index: {}]   ;;  %s5121_s1 = inlined_call_operand.hbm [shape: bf16[1024,256], index: 1, kind: input, shape index: {}]   ;;  %s5122_s2 = inlined_call_operand.vmem [shape: bf16[16,8], index: 2, kind: input, shape index: {}]   ;;  %s5123_s3 = inlined_call_operand.vmem [shape: f32[16,256], index: 3, kind: input, shape index: {}]   ;;  %s5124_s4 = inlined_call_operand.vmem [shape: f32[32,1], index: 4, kind: input, shape index: {}]   ;;  %s5125_s5 = inlined_call_operand.vmem [shape: bf16[256,64], index: 5, kind: input, shape index: {}]   ;;  %s5126_s6 = inlined_call_operand.vmem [shape: bf16[32,16], index: 6, kind: input, shape index: {}]   ;;  %s5127_s7 = inlined_call_operand.vmem [shape: f32[32,64], index: 7, kind: input, shape index: {}]   ;;  %s5128_s8 = inlined_call_operand.vmem [shape: f32[64,1], index: 8, kind: input, shape index: {}]   ;;  %s5129_s9 = inlined_call_operand.vmem [shape: bf16[64,16], index: 9, kind: input, shape index: {}]   ;;  %s5130_s10 = inlined_call_operand.vmem [shape: bf16[64,32], index: 10, kind: input, shape index: {}]   ;;  %s5131_s11 = inlined_call_operand.vmem [shape: f32[64,16], index: 11, kind: input, shape index: {}]   ;;  %s5132_s12 = inlined_call_operand.vmem [shape: f32[128,1], index: 12, kind: input, shape index: {}]   ;;  %s5133_s13 = inlined_call_operand.vmem [shape: bf16[4,16], index: 13, kind: input, shape index: {}]   ;;  %s5134_s14 = inlined_call_operand.vmem [shape: bf16[64,128], index: 14, kind: input, shape index: {}]   ;;  %s5135_s15 = inlined_call_operand.vmem [shape: f32[4,128], index: 15, kind: input, shape index: {}]   ;;  %s5136_s16 = inlined_call_operand.vmem [shape: f32[2,128], index: 16, kind: input, shape index: {}]   ;;  %s5137_s17 = inlined_call_operand.vmem [shape: bf16[1,4], index: 17, kind: input, shape index: {}]   ;;  %s5138_s18 = inlined_call_operand.vmem [shape: bf16[128,128], index: 18, kind: input, shape index: {}]   ;;  %s5139_s19 = inlined_call_operand.vmem [shape: f32[1,128], index: 19, kind: input, shape index: {}]   ;;  %s5140_s20 = inlined_call_operand.vmem [shape: bf16[128,3], index: 20, kind: input, shape index: {}]   ;;  %s5141_s21 = inlined_call_operand.vmem [shape: f32[1,3], index: 21, kind: input, shape index: {}]   ;;  %s5142_s22 = inlined_call_operand.hbm [shape: f32[2,1,3], index: 22, kind: output, shape index: {0}]   ;;  %s5143_s23 = inlined_call_operand.hbm [shape: f32[2,1,128], index: 23, kind: output, shape index: {1}]  }
   0x1   :  { %5159 = sst [smem:[#allocation17_spill]] %s5120_s0 }
   0x2   :  { %5160 = sst [smem:[#allocation18_spill]] %s5121_s1 }
   0x3   :  { %5161 = sst [smem:[#allocation19_spill]] %s5122_s2 }
   0x4   :  { %5162 = sst [smem:[#allocation20_spill]] %s5123_s3 }
   0x5   :  { %5163 = sst [smem:[#allocation21_spill]] %s5124_s4 }
   0x6   :  { %5164 = sst [smem:[#allocation22_spill]] %s5125_s5 }
   0x7   :  { %5165 = sst [smem:[#allocation23_spill]] %s5126_s6 }
   0x8   :  { %5166 = sst [smem:[#allocation24_spill]] %s5127_s7 }
   0x9   :  { %5167 = sst [smem:[#allocation25_spill]] %s5128_s8 }
   0xa   :  { %5168 = sst [smem:[#allocation26_spill]] %s5129_s9 }
   0xb   :  { %5169 = sst [smem:[#allocation27_spill]] %s5130_s10 }
   0xc   :  { %5170 = sst [smem:[#allocation28_spill]] %s5131_s11 }
   0xd   :  { %29 = vsyncpa [#allocation3], 0 }
   0xe   :  { %30 = vsyncpa [#allocation4], 0 }
   0xf   :  { %32 = vsyncpa [#allocation4 + $0x1], 0 }
  0x10   :  { %33 = vsyncpa [#allocation7], 0 }
  0x11   :  { %35 = vsyncpa [#allocation7 + $0x1], 0  ;;  %s4455_s4 = smov 0   ;;  %s4457_s30 = smov 0  }
  0x12   :  { %s4459_s24 = smov 0   ;;  %s4461_s25 = smov 0  }
  0x13 LB: > { %5171 = sst [smem:[#allocation11_spill]] %s4317_s4  ;;  %s4476_s5 = sadd.s32 4294967295, %s4329_s25   ;;  %s4329_s25 = sphi %s4461_s25, %s5194_s25   ;;  %s4325_s24 = sphi %s4459_s24, %s5196_s24   ;;  %s4321_s30 = sphi %s4457_s30, %s5198_s30   ;;  %s4317_s4 = sphi %s4455_s4, %s5197_s4  }
  0x14   : > { %5172 = sst [smem:[#allocation12_spill]] %s4325_s24  ;;  %s3208_s1 = sadd.s32 4294967294, %s4329_s25  }
  0x15   : > { %5173 = sst [smem:[#allocation13_spill]] %s4329_s25  ;;  %s4480_s26 = sadd.s32 1, %s4329_s25  }
  0x16   : > { %5174 = sst [smem:[#allocation14_spill]] %s4480_s26  ;;  %s515_s2 = sadd.s32 1, %s4325_s24 }
  0x17   : > { %s512_s6 = ssub.s32 %s4329_s25, %s4480_s26  ;;  %p525_p0 = scmp.ne.s32.totalorder %s4325_s24, %s4321_s30 }
  0x18   : > { %p513_p1 = scmp.eq.s32.totalorder %s512_s6, 0  ;;  %p526_p2 = scmp.eq.s32.totalorder %s4476_s5, 1 }
  0x19   : > { %p531_p3 = scmp.ne.s32.totalorder %s4321_s30, %s4317_s4  ;;  %p532_p4 = scmp.eq.s32.totalorder %s3208_s1, 1 }
  0x1a   : > { %s4491_s27 = scalar_select %p513_p1, %s4325_s24, %s515_s2  }
  0x1b   : > { %p4493_p5 = por %p526_p2, %p525_p0  ;;  %p4497_p6 = por %p532_p4, %p531_p3 }
  0x1c   : > { %5175 = sst [smem:[#allocation15_spill]] %s4491_s27  ;;  %p3209_p7 = scmp.ge.s32.totalorder %s4329_s25, 1 }
  0x1d   : > { %s5177_s28 = scalar_select %p4497_p6, 1, 0 }
  0x1e   : > { %p565_p8 = scmp.lt.s32.totalorder %s4329_s25, 3  ;;  %p4126_p9 = scmp.eq.s32.totalorder %s4476_s5, 0 }
  0x1f   : > { %5178 = sst [smem:[#allocation16_spill]] %s5177_s28  ;;  %s4331_s1 = smov [#allocation2]  }
  0x20   : > { %p566_p10 = pnand %p3209_p7, %p565_p8  ;;  %s5179_s0 = sld [smem:[#allocation18_spill]] }
  0x21   : > { %s578_s2 = sshll.u32 %s4331_s1, 4  ;;  %s4332_s27 = smov 128   ;;  %s579_s2 = int_to_ptr.vmem [resolvable:$true] %s578_s2 }
  0x22   : > { %p4115_p11 = pneg %p566_p10  ;;  %s4333_s24 = smov 8  }
  0x23   : > { %662 = sbr.rel (%p566_p10) target bundleno = 2466 (0x9a2), region = 108 }
  0x24   : > { %p4116_p12 = pnand %p4126_p9, %p4115_p11 }
  0x26   : > { %s576_s6 = sshll.u32 %s5179_s0, 4  ;;  %s577_s6 = int_to_ptr.hbm [resolvable:$true] %s576_s6 }
  0x27   : > { %4118 = dma.hbm_to_vmem [thread:$0]  (!%p4116_p12), %s577_s6, 16384, %s579_s2, [#allocation3], %s4332_s27, %s4332_s27, %s4333_s24  }
  0x28   : > { %4304 = dma.done.wait (%p4126_p9), [#allocation3], 16384  }
  0x29   : > { %4306 = vsyncadd (%p4126_p9), [#allocation3], 4294950912  ;;  %v3274_v0 = vld [vmem:[#allocation2 + $0x70] sm:$0xf]  ;;  %v3947_v1 = vld [vmem:[#allocation2 + $0x74] sm:$0xf0]  ;;  %s3109_s28 = scalar_lea.hbm %s5143_s23, %s4476_s5 }
  0x2a   : > { %v3338_v2 = vld [vmem:[#allocation2 + $0xf0] sm:$0xf]  ;;  %v3275_v3 = vor.u32 %v3947_v1, %v3274_v0  ;;  %v3963_v4 = vld [vmem:[#allocation2 + $0xf4] sm:$0xf0]  ;;  %v3266_v11 = vld [vmem:[#allocation2 + $0x60] sm:$0xf] }
  0x2b   : > { %v3402_v5 = vld [vmem:[#allocation2 + $0x170] sm:$0xf]  ;;  %v3979_v6 = vld [vmem:[#allocation2 + $0x174] sm:$0xf0]  ;;  %v3339_v7 = vor.u32 %v3963_v4, %v3338_v2  ;;  %v3945_v13 = vld [vmem:[#allocation2 + $0x64] sm:$0xf0] }
  0x2c   : > { %v3403_v8 = vor.u32 %v3979_v6, %v3402_v5  ;;  %v3466_v9 = vld [vmem:[#allocation2 + $0x1f0] sm:$0xf]  ;;  %v3995_v10 = vld [vmem:[#allocation2 + $0x1f4] sm:$0xf0]  ;;  %1536 = vmatpush.bf16.msra.mxu0 %v3275_v3  ;;  %v3330_v14 = vld [vmem:[#allocation2 + $0xe0] sm:$0xf]  ;;  %v3267_v16 = vor.u32 %v3945_v13, %v3266_v11 }
  0x2d   : > { %v3467_v12 = vor.u32 %v3995_v10, %v3466_v9  ;;  %v3961_v15 = vld [vmem:[#allocation2 + $0xe4] sm:$0xf0]  ;;  %1549 = vmatpush.bf16.msra.mxu1 %v3339_v7  ;;  %v3394_v18 = vld [vmem:[#allocation2 + $0x160] sm:$0xf]  ;;  %v3258_v23 = vld [vmem:[#allocation2 + $0x50] sm:$0xf] }
  0x2e   : > { %1562 = vmatpush.bf16.msra.mxu2 %v3403_v8  ;;  %v3331_v17 = vor.u32 %v3961_v15, %v3330_v14  ;;  %v3977_v19 = vld [vmem:[#allocation2 + $0x164] sm:$0xf0]  ;;  %v3458_v20 = vld [vmem:[#allocation2 + $0x1e0] sm:$0xf]  ;;  %v3943_v24 = vld [vmem:[#allocation2 + $0x54] sm:$0xf0] }
  0x2f   : > { %1575 = vmatpush.bf16.msra.mxu3 %v3467_v12  ;;  %v3395_v21 = vor.u32 %v3977_v19, %v3394_v18  ;;  %v3993_v22 = vld [vmem:[#allocation2 + $0x1e4] sm:$0xf0]  ;;  %v3322_v26 = vld [vmem:[#allocation2 + $0xd0] sm:$0xf]  ;;  %v3959_v27 = vld [vmem:[#allocation2 + $0xd4] sm:$0xf0]  ;;  %v3259_v29 = vor.u32 %v3943_v24, %v3258_v23 }
  0x30   : > { %v3459_v25 = vor.u32 %v3993_v22, %v3458_v20  ;;  %v3386_v28 = vld [vmem:[#allocation2 + $0x150] sm:$0xf]  ;;  %1537 = vmatpush.bf16.msra.mxu0 %v3267_v16  ;;  %v3975_v30 = vld [vmem:[#allocation2 + $0x154] sm:$0xf0]  ;;  %v3323_v33 = vor.u32 %v3959_v27, %v3322_v26  ;;  %v3250_v35 = vld [vmem:[#allocation2 + $0x40] sm:$0xf] }
  0x31   : > { %v3450_v31 = vld [vmem:[#allocation2 + $0x1d0] sm:$0xf]  ;;  %v3991_v32 = vld [vmem:[#allocation2 + $0x1d4] sm:$0xf0]  ;;  %1550 = vmatpush.bf16.msra.mxu1 %v3331_v17  ;;  %v3387_v34 = vor.u32 %v3975_v30, %v3386_v28  ;;  %v3941_v36 = vld [vmem:[#allocation2 + $0x44] sm:$0xf0] }
  0x32   : > { %1563 = vmatpush.bf16.msra.mxu2 %v3395_v21  ;;  %v3314_v37 = vld [vmem:[#allocation2 + $0xc0] sm:$0xf]  ;;  %v3451_v38 = vor.u32 %v3991_v32, %v3450_v31  ;;  %v3957_v39 = vld [vmem:[#allocation2 + $0xc4] sm:$0xf0]  ;;  %v3251_v44 = vor.u32 %v3941_v36, %v3250_v35  ;;  %v3242_v47 = vld [vmem:[#allocation2 + $0x30] sm:$0xf] }
  0x33   : > { %1576 = vmatpush.bf16.msra.mxu3 %v3459_v25  ;;  %v3378_v40 = vld [vmem:[#allocation2 + $0x140] sm:$0xf]  ;;  %v3973_v41 = vld [vmem:[#allocation2 + $0x144] sm:$0xf0]  ;;  %v3315_v45 = vor.u32 %v3957_v39, %v3314_v37  ;;  %v3939_v48 = vld [vmem:[#allocation2 + $0x34] sm:$0xf0] }
  0x34   : > { %v3442_v42 = vld [vmem:[#allocation2 + $0x1c0] sm:$0xf]  ;;  %v3989_v43 = vld [vmem:[#allocation2 + $0x1c4] sm:$0xf0]  ;;  %1538 = vmatpush.bf16.msra.mxu0 %v3259_v29  ;;  %v3379_v46 = vor.u32 %v3973_v41, %v3378_v40  ;;  %v3306_v49 = vld [vmem:[#allocation2 + $0xb0] sm:$0xf]  ;;  %v3243_v56 = vor.u32 %v3939_v48, %v3242_v47 }
  0x35   : > { %1551 = vmatpush.bf16.msra.mxu1 %v3323_v33  ;;  %v3443_v50 = vor.u32 %v3989_v43, %v3442_v42  ;;  %v3955_v51 = vld [vmem:[#allocation2 + $0xb4] sm:$0xf0]  ;;  %v3370_v52 = vld [vmem:[#allocation2 + $0x130] sm:$0xf]  ;;  %v3234_v59 = vld [vmem:[#allocation2 + $0x20] sm:$0xf] }
  0x36   : > { %1564 = vmatpush.bf16.msra.mxu2 %v3387_v34  ;;  %v3971_v53 = vld [vmem:[#allocation2 + $0x134] sm:$0xf0]  ;;  %v3434_v54 = vld [vmem:[#allocation2 + $0x1b0] sm:$0xf]  ;;  %v3307_v57 = vor.u32 %v3955_v51, %v3306_v49  ;;  %v3937_v60 = vld [vmem:[#allocation2 + $0x24] sm:$0xf0] }
  0x37   : > { %1577 = vmatpush.bf16.msra.mxu3 %v3451_v38  ;;  %v3987_v55 = vld [vmem:[#allocation2 + $0x1b4] sm:$0xf0]  ;;  %v3371_v58 = vor.u32 %v3971_v53, %v3370_v52  ;;  %v3298_v61 = vld [vmem:[#allocation2 + $0xa0] sm:$0xf]  ;;  %v3953_v63 = vld [vmem:[#allocation2 + $0xa4] sm:$0xf0]  ;;  %v3235_v4 = vor.u32 %v3937_v60, %v3234_v59 }
  0x38   : > { %1539 = vmatpush.bf16.msra.mxu0 %v3251_v44  ;;  %v3435_v62 = vor.u32 %v3987_v55, %v3434_v54  ;;  %v3362_v0 = vld [vmem:[#allocation2 + $0x120] sm:$0xf]  ;;  %v3969_v1 = vld [vmem:[#allocation2 + $0x124] sm:$0xf0]  ;;  %p730_p13 = scmp.lt.s32.totalorder %s4476_s5, 1  ;;  %v3299_v5 = vor.u32 %v3953_v63, %v3298_v61  ;;  %s5180_s0 = sld [smem:[#allocation17_spill]] }
  0x39   : > { %1552 = vmatpush.bf16.msra.mxu1 %v3315_v45  ;;  %v3426_v2 = vld [vmem:[#allocation2 + $0x1a0] sm:$0xf]  ;;  %v3985_v3 = vld [vmem:[#allocation2 + $0x1a4] sm:$0xf0]  ;;  %v3363_v6 = vor.u32 %v3969_v1, %v3362_v0  ;;  %v3226_v7 = vld [vmem:[#allocation2 + $0x10] sm:$0xf] }
  0x3a   : > { %1565 = vmatpush.bf16.msra.mxu2 %v3379_v46  ;;  %v3935_v8 = vld [vmem:[#allocation2 + $0x14] sm:$0xf0]  ;;  %v3290_v9 = vld [vmem:[#allocation2 + $0x90] sm:$0xf]  ;;  %v3427_v10 = vor.u32 %v3985_v3, %v3426_v2  ;;  %v3218_v17 = vld [vmem:[#allocation2] sm:$0xf] }
  0x3b   : > { %1578 = vmatpush.bf16.msra.mxu3 %v3443_v50  ;;  %v3951_v11 = vld [vmem:[#allocation2 + $0x94] sm:$0xf0]  ;;  %v3354_v12 = vld [vmem:[#allocation2 + $0x110] sm:$0xf]  ;;  %v3227_v16 = vor.u32 %v3935_v8, %v3226_v7  ;;  %v3933_v18 = vld [vmem:[#allocation2 + $0x4] sm:$0xf0] }
  0x3c   : > { %1540 = vmatpush.bf16.msra.mxu0 %v3243_v56  ;;  %v3967_v13 = vld [vmem:[#allocation2 + $0x114] sm:$0xf0]  ;;  %v3418_v14 = vld [vmem:[#allocation2 + $0x190] sm:$0xf]  ;;  %s4517_s24 = scalar_select %p730_p13, %s4476_s5, 1  ;;  %v3291_v19 = vor.u32 %v3951_v11, %v3290_v9  ;;  %v3219_v31 = vor.u32 %v3933_v18, %v3218_v17  ;;  %vm1763_vm0 = vcmask 1043456  }
  0x3d   : > { %1553 = vmatpush.bf16.msra.mxu1 %v3307_v57  ;;  %v3983_v15 = vld [vmem:[#allocation2 + $0x194] sm:$0xf0]  ;;  %v3355_v20 = vor.u32 %v3967_v13, %v3354_v12  ;;  %v3282_v21 = vld [vmem:[#allocation2 + $0x80] sm:$0xf]  ;;  %v3949_v22 = vld [vmem:[#allocation2 + $0x84] sm:$0xf0] }
  0x3e   : > { %1566 = vmatpush.bf16.msra.mxu2 %v3371_v58  ;;  %v3346_v23 = vld [vmem:[#allocation2 + $0x100] sm:$0xf]  ;;  %v3419_v24 = vor.u32 %v3983_v15, %v3418_v14  ;;  %v3965_v25 = vld [vmem:[#allocation2 + $0x104] sm:$0xf0]  ;;  %v3530_v28 = vld [vmem:[#allocation2 + $0x270] sm:$0xf]  ;;  %v3283_v35 = vor.u32 %v3949_v22, %v3282_v21 }
  0x3f   : > { %1579 = vmatpush.bf16.msra.mxu3 %v3435_v62  ;;  %v3410_v26 = vld [vmem:[#allocation2 + $0x180] sm:$0xf]  ;;  %v3981_v27 = vld [vmem:[#allocation2 + $0x184] sm:$0xf0]  ;;  %v4011_v29 = vld [vmem:[#allocation2 + $0x274] sm:$0xf0]  ;;  %v3347_v36 = vor.u32 %v3965_v25, %v3346_v23 }
  0x40   : > { %1541 = vmatpush.bf16.msra.mxu0 %v3235_v4  ;;  %v3594_v30 = vld [vmem:[#allocation2 + $0x2f0] sm:$0xf]  ;;  %v4027_v32 = vld [vmem:[#allocation2 + $0x2f4] sm:$0xf0]  ;;  %s3931_s27 = sshll.u32 %s4517_s24, 5  ;;  %v3411_v39 = vor.u32 %v3981_v27, %v3410_v26  ;;  %v3531_v40 = vor.u32 %v4011_v29, %v3530_v28  ;;  %s5181_s24 = sld [smem:[#allocation19_spill]] }
  0x41   : > { %1554 = vmatpush.bf16.msra.mxu1 %v3299_v5  ;;  %v3658_v33 = vld [vmem:[#allocation2 + $0x370] sm:$0xf]  ;;  %v4043_v34 = vld [vmem:[#allocation2 + $0x374] sm:$0xf0]  ;;  %v3595_v41 = vor.u32 %v4027_v32, %v3594_v30  ;;  %v3522_v43 = vld [vmem:[#allocation2 + $0x260] sm:$0xf]  ;;  %s4523_s6 = scalar_lea.vmem %s5180_s0, %s3931_s27 }
  0x42   : > { %1567 = vmatpush.bf16.msra.mxu2 %v3363_v6  ;;  %v3722_v37 = vld [vmem:[#allocation2 + $0x3f0] sm:$0xf]  ;;  %v4059_v38 = vld [vmem:[#allocation2 + $0x3f4] sm:$0xf0]  ;;  %v3659_v42 = vor.u32 %v4043_v34, %v3658_v33  ;;  %v4009_v44 = vld [vmem:[#allocation2 + $0x264] sm:$0xf0] }
  0x43   : > { %1580 = vmatpush.bf16.msra.mxu3 %v3427_v10  ;;  %v3586_v45 = vld [vmem:[#allocation2 + $0x2e0] sm:$0xf]  ;;  %v3723_v46 = vor.u32 %v4059_v38, %v3722_v37  ;;  %v4025_v47 = vld [vmem:[#allocation2 + $0x2e4] sm:$0xf0]  ;;  %v3523_v52 = vor.u32 %v4009_v44, %v3522_v43  ;;  %v3514_v53 = vld [vmem:[#allocation2 + $0x250] sm:$0xf] }
  0x44   : > { %1542 = vmatpush.bf16.msra.mxu0 %v3227_v16  ;;  %v3650_v48 = vld [vmem:[#allocation2 + $0x360] sm:$0xf]  ;;  %v4041_v49 = vld [vmem:[#allocation2 + $0x364] sm:$0xf0]  ;;  %v3587_v54 = vor.u32 %v4025_v47, %v3586_v45  ;;  %v4007_v56 = vld [vmem:[#allocation2 + $0x254] sm:$0xf0] }
  0x45   : > { %1555 = vmatpush.bf16.msra.mxu1 %v3291_v19  ;;  %v3714_v50 = vld [vmem:[#allocation2 + $0x3e0] sm:$0xf]  ;;  %v4057_v51 = vld [vmem:[#allocation2 + $0x3e4] sm:$0xf0]  ;;  %v3651_v55 = vor.u32 %v4041_v49, %v3650_v48  ;;  %v3578_v57 = vld [vmem:[#allocation2 + $0x2d0] sm:$0xf]  ;;  %v3515_v3 = vor.u32 %v4007_v56, %v3514_v53 }
  0x46   : > { %1568 = vmatpush.bf16.msra.mxu2 %v3355_v20  ;;  %v737_v58 = vld [vmem:[%s4523_s6 + $0x8] sm:$0xff]  ;;  %v3715_v59 = vor.u32 %v4057_v51, %v3714_v50  ;;  %v4023_v60 = vld [vmem:[#allocation2 + $0x2d4] sm:$0xf0]  ;;  %v3642_v61 = vld [vmem:[#allocation2 + $0x350] sm:$0xf]  ;;  %vm1759_vm1 = vcmask 64512  }
  0x47   : > { %1581 = vmatpush.bf16.msra.mxu3 %v3419_v24  ;;  %v4039_v62 = vld [vmem:[#allocation2 + $0x354] sm:$0xf0]  ;;  %v874_v63 = vunpack.c.l.b16 %v737_v58  ;;  %v875_v0 = vunpack.c.h.b16 %v737_v58  ;;  %v3706_v1 = vld [vmem:[#allocation2 + $0x3d0] sm:$0xf]  ;;  %v736_v5 = vld [vmem:[%s4523_s6] sm:$0xff]  ;;  %v3579_v7 = vor.u32 %v4023_v60, %v3578_v57  ;;  %s5182_s3 = sld [smem:[#allocation20_spill]] }
  0x48   : > { %1543 = vmatpush.bf16.msra.mxu0 %v3219_v31  ;;  %v4055_v2 = vld [vmem:[#allocation2 + $0x3d4] sm:$0xf0]  ;;  %v3643_v8 = vor.u32 %v4039_v62, %v3642_v61  ;;  %v3506_v9 = vld [vmem:[#allocation2 + $0x240] sm:$0xf]  ;;  %v4005_v10 = vld [vmem:[#allocation2 + $0x244] sm:$0xf0]  ;;  %v872_v12 = vunpack.c.l.b16 %v736_v5  ;;  %v873_v13 = vunpack.c.h.b16 %v736_v5 }
  0x49   : > { %1556 = vmatpush.bf16.msra.mxu1 %v3283_v35  ;;  %v4526_v4 = vpack.c.b16 %v874_v63, %v874_v63  ;;  %v4529_v6 = vpack.c.b16 %v875_v0, %v875_v0  ;;  %v3570_v11 = vld [vmem:[#allocation2 + $0x2c0] sm:$0xf]  ;;  %v3707_v14 = vor.u32 %v4055_v2, %v3706_v1  ;;  %v4021_v15 = vld [vmem:[#allocation2 + $0x2c4] sm:$0xf0]  ;;  %v3507_v22 = vor.u32 %v4005_v10, %v3506_v9  ;;  %v3498_v25 = vld [vmem:[#allocation2 + $0x230] sm:$0xf] }
  0x4a   : > { %1569 = vmatpush.bf16.msra.mxu2 %v3347_v36  ;;  %v3634_v16 = vld [vmem:[#allocation2 + $0x340] sm:$0xf]  ;;  %v4037_v17 = vld [vmem:[#allocation2 + $0x344] sm:$0xf0]  ;;  %v4532_v20 = vpack.c.b16 %v872_v12, %v872_v12  ;;  %v4535_v21 = vpack.c.b16 %v873_v13, %v873_v13  ;;  %v3571_v23 = vor.u32 %v4021_v15, %v3570_v11  ;;  %v4003_v26 = vld [vmem:[#allocation2 + $0x234] sm:$0xf0] }
  0x4b   : > { %1582 = vmatpush.bf16.msra.mxu3 %v3411_v39  ;;  %v3698_v18 = vld [vmem:[#allocation2 + $0x3c0] sm:$0xf]  ;;  %v4053_v19 = vld [vmem:[#allocation2 + $0x3c4] sm:$0xf0]  ;;  %v3635_v24 = vor.u32 %v4037_v17, %v3634_v16  ;;  %v3562_v27 = vld [vmem:[#allocation2 + $0x2b0] sm:$0xf]  ;;  %v3499_v34 = vor.u32 %v4003_v26, %v3498_v25 }
  0x4c   : > { %1588 = vmatpush.bf16.msrb.mxu0 %v3531_v40  ;;  %v3699_v28 = vor.u32 %v4053_v19, %v3698_v18  ;;  %v4019_v29 = vld [vmem:[#allocation2 + $0x2b4] sm:$0xf0]  ;;  %v3626_v30 = vld [vmem:[#allocation2 + $0x330] sm:$0xf]  ;;  %1557 = vmatmul.bf16.vlgmr.msra.gmra.mxu1 %v4535_v21  ;;  %v3490_v37 = vld [vmem:[#allocation2 + $0x220] sm:$0xf] }
  0x4d   : > { %1601 = vmatpush.bf16.msrb.mxu1 %v3595_v41  ;;  %1570 = vmatmul.bf16.vlgmr.msra.gmra.mxu2 %v4526_v4  ;;  %v4035_v31 = vld [vmem:[#allocation2 + $0x334] sm:$0xf0]  ;;  %v3690_v32 = vld [vmem:[#allocation2 + $0x3b0] sm:$0xf]  ;;  %v3563_v35 = vor.u32 %v4019_v29, %v3562_v27  ;;  %v4001_v38 = vld [vmem:[#allocation2 + $0x224] sm:$0xf0] }
  0x4e   : > { %1614 = vmatpush.bf16.msrb.mxu2 %v3659_v42  ;;  %1583 = vmatmul.bf16.vlgmr.msra.gmra.mxu3 %v4529_v6  ;;  %v4051_v33 = vld [vmem:[#allocation2 + $0x3b4] sm:$0xf0]  ;;  %v3627_v36 = vor.u32 %v4035_v31, %v3626_v30  ;;  %v3554_v39 = vld [vmem:[#allocation2 + $0x2a0] sm:$0xf]  ;;  %v4017_v41 = vld [vmem:[#allocation2 + $0x2a4] sm:$0xf0] }
  0x4f   : > { %1627 = vmatpush.bf16.msrb.mxu3 %v3723_v46  ;;  %1544 = vmatmul.bf16.vlgmr.msra.gmra.mxu0 %v4532_v20  ;;  %v3691_v40 = vor.u32 %v4051_v33, %v3690_v32  ;;  %v3618_v42 = vld [vmem:[#allocation2 + $0x320] sm:$0xf]  ;;  %v4033_v43 = vld [vmem:[#allocation2 + $0x324] sm:$0xf0]  ;;  %v3491_v46 = vor.u32 %v4001_v38, %v3490_v37  ;;  %v3555_v47 = vor.u32 %v4017_v41, %v3554_v39  ;;  %v3482_v49 = vld [vmem:[#allocation2 + $0x210] sm:$0xf] }
  0x50   : > { %1589 = vmatpush.bf16.msrb.mxu0 %v3523_v52  ;;  %v3682_v44 = vld [vmem:[#allocation2 + $0x3a0] sm:$0xf]  ;;  %v4049_v45 = vld [vmem:[#allocation2 + $0x3a4] sm:$0xf0]  ;;  %v3619_v48 = vor.u32 %v4033_v43, %v3618_v42  ;;  %v3999_v50 = vld [vmem:[#allocation2 + $0x214] sm:$0xf0] }
  0x51   : > { %1602 = vmatpush.bf16.msrb.mxu1 %v3587_v54  ;;  %v3546_v51 = vld [vmem:[#allocation2 + $0x290] sm:$0xf]  ;;  %v3683_v52 = vor.u32 %v4049_v45, %v3682_v44  ;;  %v4015_v53 = vld [vmem:[#allocation2 + $0x294] sm:$0xf0]  ;;  %v3474_v58 = vld [vmem:[#allocation2 + $0x200] sm:$0xf] }
  0x52   : > { %1615 = vmatpush.bf16.msrb.mxu2 %v3651_v55  ;;  %v3610_v54 = vld [vmem:[#allocation2 + $0x310] sm:$0xf]  ;;  %v4031_v55 = vld [vmem:[#allocation2 + $0x314] sm:$0xf0]  ;;  %v3997_v60 = vld [vmem:[#allocation2 + $0x204] sm:$0xf0]  ;;  %v3547_v63 = vor.u32 %v4015_v53, %v3546_v51 }
  0x53   : > { %1628 = vmatpush.bf16.msrb.mxu3 %v3715_v59  ;;  %v3674_v56 = vld [vmem:[#allocation2 + $0x390] sm:$0xf]  ;;  %v4047_v57 = vld [vmem:[#allocation2 + $0x394] sm:$0xf0]  ;;  %v3483_v59 = vor.u32 %v3999_v50, %v3482_v49  ;;  %v3538_v61 = vld [vmem:[#allocation2 + $0x280] sm:$0xf]  ;;  %v3611_v0 = vor.u32 %v4031_v55, %v3610_v54  ;;  %v3475_v13 = vor.u32 %v3997_v60, %v3474_v58 }
  0x54   : > { %1590 = vmatpush.bf16.msrb.mxu0 %v3515_v3  ;;  %v4013_v62 = vld [vmem:[#allocation2 + $0x284] sm:$0xf0]  ;;  %v3602_v1 = vld [vmem:[#allocation2 + $0x300] sm:$0xf]  ;;  %v739_v3 = vld [vmem:[%s4523_s6 + $0x18] sm:$0xff]  ;;  %v3675_v5 = vor.u32 %v4047_v57, %v3674_v56  ;;  %s5184_s8 = sld [smem:[#allocation25_spill]] }
  0x55   : > { %1603 = vmatpush.bf16.msrb.mxu1 %v3579_v7  ;;  %v4029_v2 = vld [vmem:[#allocation2 + $0x304] sm:$0xf0]  ;;  %v3666_v7 = vld [vmem:[#allocation2 + $0x380] sm:$0xf]  ;;  %v738_v9 = vld [vmem:[%s4523_s6 + $0x10] sm:$0xff]  ;;  %v878_v17 = vunpack.c.l.b16 %v739_v3  ;;  %v3539_v18 = vor.u32 %v4013_v62, %v3538_v61  ;;  %v879_v25 = vunpack.c.h.b16 %v739_v3  ;;  %s5183_s6 = sld [smem:[#allocation21_spill]] }
  0x56   : > { %1616 = vmatpush.bf16.msrb.mxu2 %v3643_v8  ;;  %v4045_v8 = vld [vmem:[#allocation2 + $0x384] sm:$0xf0]  ;;  %v3946_v10 = vld [vmem:[#allocation2 + $0x74] sm:$0xf]  ;;  %v3276_v11 = vld [vmem:[#allocation2 + $0x78] sm:$0xf0]  ;;  %v3603_v19 = vor.u32 %v4029_v2, %v3602_v1 }
  0x57   : > { %1629 = vmatpush.bf16.msrb.mxu3 %v3707_v14  ;;  %v3962_v12 = vld [vmem:[#allocation2 + $0xf4] sm:$0xf]  ;;  %v3340_v14 = vld [vmem:[#allocation2 + $0xf8] sm:$0xf0]  ;;  %v3667_v26 = vor.u32 %v4045_v8, %v3666_v7  ;;  %v3279_v27 = vor.u32 %v3946_v10, %v3276_v11  ;;  %v3944_v31 = vld [vmem:[#allocation2 + $0x64] sm:$0xf]  ;;  %v4541_v38 = vpack.c.b16 %v878_v17, %v878_v17  ;;  %v4545_v42 = vpack.c.b16 %v879_v25, %v879_v25 }
  0x58   : > { %1591 = vmatpush.bf16.msrb.mxu0 %v3507_v22  ;;  %v3978_v15 = vld [vmem:[#allocation2 + $0x174] sm:$0xf]  ;;  %v3404_v16 = vld [vmem:[#allocation2 + $0x178] sm:$0xf0]  ;;  %v3343_v29 = vor.u32 %v3962_v12, %v3340_v14  ;;  %v3268_v32 = vld [vmem:[#allocation2 + $0x68] sm:$0xf0] }
  0x59   : > { %1604 = vmatpush.bf16.msrb.mxu1 %v3571_v23  ;;  %v3994_v22 = vld [vmem:[#allocation2 + $0x1f4] sm:$0xf]  ;;  %v3468_v23 = vld [vmem:[#allocation2 + $0x1f8] sm:$0xf0]  ;;  %v3407_v30 = vor.u32 %v3978_v15, %v3404_v16  ;;  %v3960_v33 = vld [vmem:[#allocation2 + $0xe4] sm:$0xf]  ;;  %v3271_v43 = vor.u32 %v3944_v31, %v3268_v32 }
  0x5a   : > { %1617 = vmatpush.bf16.msrb.mxu2 %v3635_v24  ;;  %v876_v24 = vunpack.c.l.b16 %v738_v9  ;;  %v3396_v37 = vld [vmem:[#allocation2 + $0x168] sm:$0xf0]  ;;  %v3992_v39 = vld [vmem:[#allocation2 + $0x1e4] sm:$0xf]  ;;  %v3958_v49 = vld [vmem:[#allocation2 + $0xd4] sm:$0xf] }
  0x5b   : > { %1630 = vmatpush.bf16.msrb.mxu3 %v3699_v28  ;;  %v877_v28 = vunpack.c.h.b16 %v738_v9  ;;  %v3324_v51 = vld [vmem:[#allocation2 + $0xd8] sm:$0xf0]  ;;  %v3990_v54 = vld [vmem:[#allocation2 + $0x1d4] sm:$0xf]  ;;  %v3252_v60 = vld [vmem:[#allocation2 + $0x48] sm:$0xf0] }
  0x5c   : > { %1592 = vmatpush.bf16.msrb.mxu0 %v3499_v34  ;;  %v3471_v34 = vor.u32 %v3994_v22, %v3468_v23  ;;  %v4543_v41 = vpack.c.b16 %v876_v24, %v876_v24  ;;  %v3388_v53 = vld [vmem:[#allocation2 + $0x158] sm:$0xf0]  ;;  %v3327_v57 = vor.u32 %v3958_v49, %v3324_v51  ;;  %v3956_v61 = vld [vmem:[#allocation2 + $0xc4] sm:$0xf]  ;;  %v3380_v1 = vld [vmem:[#allocation2 + $0x148] sm:$0xf0] }
  0x5d   : > { %1605 = vmatpush.bf16.msrb.mxu1 %v3563_v35  ;;  %v3332_v35 = vld [vmem:[#allocation2 + $0xe8] sm:$0xf0]  ;;  %v4547_v44 = vpack.c.b16 %v877_v28, %v877_v28  ;;  %v3452_v55 = vld [vmem:[#allocation2 + $0x1d8] sm:$0xf0]  ;;  %v3988_v2 = vld [vmem:[#allocation2 + $0x1c4] sm:$0xf] }
  0x5e   : > { %1618 = vmatpush.bf16.msrb.mxu2 %v3627_v36  ;;  %v3976_v36 = vld [vmem:[#allocation2 + $0x164] sm:$0xf]  ;;  %v3335_v45 = vor.u32 %v3960_v33, %v3332_v35  ;;  %v3455_v62 = vor.u32 %v3990_v54, %v3452_v55  ;;  %v3444_v3 = vld [vmem:[#allocation2 + $0x1c8] sm:$0xf0]  ;;  %v3938_v9 = vld [vmem:[#allocation2 + $0x34] sm:$0xf] }
  0x5f   : > { %1631 = vmatpush.bf16.msrb.mxu3 %v3691_v40  ;;  %v3460_v40 = vld [vmem:[#allocation2 + $0x1e8] sm:$0xf0]  ;;  %v3244_v10 = vld [vmem:[#allocation2 + $0x38] sm:$0xf0]  ;;  %v3954_v11 = vld [vmem:[#allocation2 + $0xb4] sm:$0xf]  ;;  %v3447_v12 = vor.u32 %v3988_v2, %v3444_v3 }
  0x60   : > { %1593 = vmatpush.bf16.msrb.mxu0 %v3491_v46  ;;  %v3399_v46 = vor.u32 %v3976_v36, %v3396_v37  ;;  %v3463_v50 = vor.u32 %v3992_v39, %v3460_v40  ;;  %v3970_v14 = vld [vmem:[#allocation2 + $0x134] sm:$0xf]  ;;  %v3372_v15 = vld [vmem:[#allocation2 + $0x138] sm:$0xf0]  ;;  %v3936_v23 = vld [vmem:[#allocation2 + $0x24] sm:$0xf] }
  0x61   : > { %1606 = vmatpush.bf16.msrb.mxu1 %v3555_v47  ;;  %v3942_v47 = vld [vmem:[#allocation2 + $0x54] sm:$0xf]  ;;  %v3436_v17 = vld [vmem:[#allocation2 + $0x1b8] sm:$0xf0]  ;;  %v3375_v22 = vor.u32 %v3970_v14, %v3372_v15  ;;  %v3236_v24 = vld [vmem:[#allocation2 + $0x28] sm:$0xf0] }
  0x62   : > { %1619 = vmatpush.bf16.msrb.mxu2 %v3619_v48  ;;  %v3260_v48 = vld [vmem:[#allocation2 + $0x58] sm:$0xf0]  ;;  %v3986_v16 = vld [vmem:[#allocation2 + $0x1b4] sm:$0xf]  ;;  %v3952_v25 = vld [vmem:[#allocation2 + $0xa4] sm:$0xf]  ;;  %v3239_v32 = vor.u32 %v3936_v23, %v3236_v24 }
  0x63   : > { %1632 = vmatpush.bf16.msrb.mxu3 %v3683_v52  ;;  %v3974_v52 = vld [vmem:[#allocation2 + $0x154] sm:$0xf]  ;;  %v3263_v56 = vor.u32 %v3942_v47, %v3260_v48  ;;  %v3968_v28 = vld [vmem:[#allocation2 + $0x124] sm:$0xf]  ;;  %v3428_v31 = vld [vmem:[#allocation2 + $0x1a8] sm:$0xf0] }
  0x64   : > { %1594 = vmatpush.bf16.msrb.mxu0 %v3483_v59  ;;  %v3391_v58 = vor.u32 %v3974_v52, %v3388_v53  ;;  %v3940_v59 = vld [vmem:[#allocation2 + $0x44] sm:$0xf]  ;;  %v3934_v35 = vld [vmem:[#allocation2 + $0x14] sm:$0xf]  ;;  %v3228_v36 = vld [vmem:[#allocation2 + $0x18] sm:$0xf0] }
  0x65   : > { %1607 = vmatpush.bf16.msrb.mxu1 %v3547_v63  ;;  %v3316_v63 = vld [vmem:[#allocation2 + $0xc8] sm:$0xf0]  ;;  %v3950_v37 = vld [vmem:[#allocation2 + $0x94] sm:$0xf]  ;;  %v3292_v40 = vld [vmem:[#allocation2 + $0x98] sm:$0xf0]  ;;  %v3231_v48 = vor.u32 %v3934_v35, %v3228_v36 }
  0x66   : > { %1620 = vmatpush.bf16.msrb.mxu2 %v3611_v0  ;;  %v3972_v0 = vld [vmem:[#allocation2 + $0x144] sm:$0xf]  ;;  %v3319_v7 = vor.u32 %v3956_v61, %v3316_v63  ;;  %v3420_v47 = vld [vmem:[#allocation2 + $0x198] sm:$0xf0]  ;;  %v3295_v51 = vor.u32 %v3950_v37, %v3292_v40  ;;  %v3284_v54 = vld [vmem:[#allocation2 + $0x88] sm:$0xf0] }
  0x67   : > { %1633 = vmatpush.bf16.msrb.mxu3 %v3675_v5  ;;  %v3255_v5 = vor.u32 %v3940_v59, %v3252_v60  ;;  %v3383_v8 = vor.u32 %v3972_v0, %v3380_v1  ;;  %v3932_v49 = vld [vmem:[#allocation2 + $0x4] sm:$0xf]  ;;  %v3412_v59 = vld [vmem:[#allocation2 + $0x188] sm:$0xf0]  ;;  %v4010_v60 = vld [vmem:[#allocation2 + $0x274] sm:$0xf] }
  0x68   : > { %1595 = vmatpush.bf16.msrb.mxu0 %v3475_v13  ;;  %v3308_v13 = vld [vmem:[#allocation2 + $0xb8] sm:$0xf0]  ;;  %v3948_v53 = vld [vmem:[#allocation2 + $0x84] sm:$0xf]  ;;  %v4042_v1 = vld [vmem:[#allocation2 + $0x374] sm:$0xf] }
  0x69   : > { %1608 = vmatpush.bf16.msrb.mxu1 %v3539_v18  ;;  %v3247_v18 = vor.u32 %v3938_v9, %v3244_v10  ;;  %v3964_v55 = vld [vmem:[#allocation2 + $0x104] sm:$0xf]  ;;  %v3532_v61 = vld [vmem:[#allocation2 + $0x278] sm:$0xf0]  ;;  %v3287_v3 = vor.u32 %v3948_v53, %v3284_v54  ;;  %v3524_v14 = vld [vmem:[#allocation2 + $0x268] sm:$0xf0] }
  0x6a   : > { %1621 = vmatpush.bf16.msrb.mxu2 %v3603_v19  ;;  %v3311_v19 = vor.u32 %v3954_v11, %v3308_v13  ;;  %v3596_v0 = vld [vmem:[#allocation2 + $0x2f8] sm:$0xf0]  ;;  %v3535_v10 = vor.u32 %v4010_v60, %v3532_v61  ;;  %v4008_v13 = vld [vmem:[#allocation2 + $0x264] sm:$0xf]  ;;  %v3716_v23 = vld [vmem:[#allocation2 + $0x3e8] sm:$0xf0] }
  0x6b   : > { %1634 = vmatpush.bf16.msrb.mxu3 %v3667_v26  ;;  %1596 = vmatmul.bf16.vlgmr.msrb.gmra.mxu0 %v4543_v41  ;;  %v3439_v26 = vor.u32 %v3986_v16, %v3436_v17  ;;  %v3660_v2 = vld [vmem:[#allocation2 + $0x378] sm:$0xf0]  ;;  %v4024_v15 = vld [vmem:[#allocation2 + $0x2e4] sm:$0xf]  ;;  %v3588_v17 = vld [vmem:[#allocation2 + $0x2e8] sm:$0xf0]  ;;  %v3527_v24 = vor.u32 %v4008_v13, %v3524_v14 }
  0x6c   : > { %1640 = vmatpush.bf16.msra.mxu0 %v3279_v27  ;;  %1609 = vmatmul.bf16.vlgmr.msrb.gmra.mxu1 %v4547_v44  ;;  %v3300_v27 = vld [vmem:[#allocation2 + $0xa8] sm:$0xf0]  ;;  %v3708_v35 = vld [vmem:[#allocation2 + $0x3d8] sm:$0xf0]  ;;  %v4004_v40 = vld [vmem:[#allocation2 + $0x244] sm:$0xf] }
  0x6d   : > { %1653 = vmatpush.bf16.msra.mxu1 %v3343_v29  ;;  %1622 = vmatmul.bf16.vlgmr.msrb.gmra.mxu2 %v4541_v38  ;;  %v3364_v29 = vld [vmem:[#allocation2 + $0x128] sm:$0xf0]  ;;  %v3303_v33 = vor.u32 %v3952_v25, %v3300_v27  ;;  %v3591_v25 = vor.u32 %v4024_v15, %v3588_v17  ;;  %v4006_v27 = vld [vmem:[#allocation2 + $0x254] sm:$0xf]  ;;  %v3484_v14 = vld [vmem:[#allocation2 + $0x218] sm:$0xf0] }
  0x6e   : > { %1666 = vmatpush.bf16.msra.mxu2 %v3407_v30  ;;  %1635 = vmatmul.bf16.vlgmr.msrb.gmra.mxu3 %v4545_v42  ;;  %v3984_v30 = vld [vmem:[#allocation2 + $0x1a4] sm:$0xf]  ;;  %v4018_v53 = vld [vmem:[#allocation2 + $0x2b4] sm:$0xf]  ;;  %v3548_v17 = vld [vmem:[#allocation2 + $0x298] sm:$0xf0] }
  0x6f   : > { %1679 = vmatpush.bf16.msra.mxu3 %v3471_v34  ;;  %v3367_v34 = vor.u32 %v3968_v28, %v3364_v29  ;;  %v3431_v39 = vor.u32 %v3984_v30, %v3428_v31  ;;  %v3516_v28 = vld [vmem:[#allocation2 + $0x258] sm:$0xf0]  ;;  %v4022_v29 = vld [vmem:[#allocation2 + $0x2d4] sm:$0xf]  ;;  %s5185_s29 = sld [smem:[#allocation22_spill]]  ;;  %vm2077_vm12 = vcmask 130048  }
  0x70   : > { %1641 = vmatpush.bf16.msra.mxu0 %v3271_v43  ;;  %v3966_v43 = vld [vmem:[#allocation2 + $0x114] sm:$0xf]  ;;  %v3580_v31 = vld [vmem:[#allocation2 + $0x2d8] sm:$0xf0]  ;;  %v3519_v36 = vor.u32 %v4006_v27, %v3516_v28  ;;  %v3996_v27 = vld [vmem:[#allocation2 + $0x204] sm:$0xf] }
  0x71   : > { %1654 = vmatpush.bf16.msra.mxu1 %v3335_v45  ;;  %v3356_v45 = vld [vmem:[#allocation2 + $0x118] sm:$0xf0]  ;;  %v3583_v37 = vor.u32 %v4022_v29, %v3580_v31  ;;  %v3998_v13 = vld [vmem:[#allocation2 + $0x214] sm:$0xf]  ;;  %v3476_v28 = vld [vmem:[#allocation2 + $0x208] sm:$0xf0] }
  0x72   : > { %1667 = vmatpush.bf16.msra.mxu2 %v3399_v46  ;;  %v3982_v46 = vld [vmem:[#allocation2 + $0x194] sm:$0xf]  ;;  %v3359_v52 = vor.u32 %v3966_v43, %v3356_v45  ;;  %v3508_v43 = vld [vmem:[#allocation2 + $0x248] sm:$0xf0]  ;;  %v4012_v29 = vld [vmem:[#allocation2 + $0x284] sm:$0xf] }
  0x73   : > { %1680 = vmatpush.bf16.msra.mxu3 %v3463_v50  ;;  %v3220_v50 = vld [vmem:[#allocation2 + $0x8] sm:$0xf0]  ;;  %v4014_v15 = vld [vmem:[#allocation2 + $0x294] sm:$0xf]  ;;  %s5186_s26 = sld [smem:[#allocation23_spill]]  ;;  %vm2115_vm14 = vcmask 523264  }
  0x74   : > { %1642 = vmatpush.bf16.msra.mxu0 %v3263_v56  ;;  %v3423_v56 = vor.u32 %v3982_v46, %v3420_v47  ;;  %v3223_v63 = vor.u32 %v3932_v49, %v3220_v50  ;;  %v3572_v46 = vld [vmem:[#allocation2 + $0x2c8] sm:$0xf0]  ;;  %v4036_v47 = vld [vmem:[#allocation2 + $0x344] sm:$0xf]  ;;  %s5187_s2 = sld [smem:[#allocation24_spill]] }
  0x75   : > { %1655 = vmatpush.bf16.msra.mxu1 %v3327_v57  ;;  %v3348_v57 = vld [vmem:[#allocation2 + $0x108] sm:$0xf0]  ;;  %v4052_v49 = vld [vmem:[#allocation2 + $0x3c4] sm:$0xf]  ;;  %s5188_s9 = sld [smem:[#allocation26_spill]] }
  0x76   : > { %1668 = vmatpush.bf16.msra.mxu2 %v3391_v58  ;;  %v3980_v58 = vld [vmem:[#allocation2 + $0x184] sm:$0xf]  ;;  %v3540_v31 = vld [vmem:[#allocation2 + $0x288] sm:$0xf0]  ;;  %s5189_s10 = sld [smem:[#allocation27_spill]] }
  0x77   : > { %1681 = vmatpush.bf16.msra.mxu3 %v3455_v62  ;;  %v4026_v62 = vld [vmem:[#allocation2 + $0x2f4] sm:$0xf]  ;;  %v3415_v9 = vor.u32 %v3980_v58, %v3412_v59  ;;  %v3692_v59 = vld [vmem:[#allocation2 + $0x3b8] sm:$0xf0]  ;;  %s5190_s11 = sld [smem:[#allocation28_spill]] }
  0x78   : > { %1643 = vmatpush.bf16.msra.mxu0 %v3255_v5  ;;  %v3351_v5 = vor.u32 %v3964_v55, %v3348_v57  ;;  %v3599_v11 = vor.u32 %v4026_v62, %v3596_v0  ;;  %v3564_v55 = vld [vmem:[#allocation2 + $0x2b8] sm:$0xf0]  ;;  %v4050_v58 = vld [vmem:[#allocation2 + $0x3b4] sm:$0xf]  ;;  %v3492_v0 = vld [vmem:[#allocation2 + $0x228] sm:$0xf0] }
  0x79   : > { %1656 = vmatpush.bf16.msra.mxu1 %v3319_v7  ;;  %v4058_v7 = vld [vmem:[#allocation2 + $0x3f4] sm:$0xf]  ;;  %v3628_v57 = vld [vmem:[#allocation2 + $0x338] sm:$0xf0]  ;;  %v3567_v61 = vor.u32 %v4018_v53, %v3564_v55 }
  0x7a   : > { %1669 = vmatpush.bf16.msra.mxu2 %v3383_v8  ;;  %v3724_v8 = vld [vmem:[#allocation2 + $0x3f8] sm:$0xf0] }
  0x7b   : > { %1682 = vmatpush.bf16.msra.mxu3 %v3447_v12  ;;  %v3663_v12 = vor.u32 %v4042_v1, %v3660_v2  ;;  %v3727_v16 = vor.u32 %v4058_v7, %v3724_v8  ;;  %v4016_v1 = vld [vmem:[#allocation2 + $0x2a4] sm:$0xf]  ;;  %v3695_v2 = vor.u32 %v4050_v58, %v3692_v59  ;;  %v3620_v7 = vld [vmem:[#allocation2 + $0x328] sm:$0xf0] }
  0x7c   : > { %1644 = vmatpush.bf16.msra.mxu0 %v3247_v18  ;;  %v4040_v18 = vld [vmem:[#allocation2 + $0x364] sm:$0xf] }
  0x7d   : > { %1657 = vmatpush.bf16.msra.mxu1 %v3311_v19  ;;  %v3652_v19 = vld [vmem:[#allocation2 + $0x368] sm:$0xf0]  ;;  %v4048_v8 = vld [vmem:[#allocation2 + $0x3a4] sm:$0xf] }
  0x7e   : > { %1670 = vmatpush.bf16.msra.mxu2 %v3375_v22  ;;  %v4056_v22 = vld [vmem:[#allocation2 + $0x3e4] sm:$0xf] }
  0x7f   : > { %1683 = vmatpush.bf16.msra.mxu3 %v3439_v26  ;;  %v3655_v26 = vor.u32 %v4040_v18, %v3652_v19  ;;  %v3719_v30 = vor.u32 %v4056_v22, %v3716_v23  ;;  %v4030_v18 = vld [vmem:[#allocation2 + $0x314] sm:$0xf]  ;;  %v3612_v19 = vld [vmem:[#allocation2 + $0x318] sm:$0xf0] }
  0x80   : > { %1645 = vmatpush.bf16.msra.mxu0 %v3239_v32  ;;  %v4038_v32 = vld [vmem:[#allocation2 + $0x354] sm:$0xf]  ;;  %v3676_v23 = vld [vmem:[#allocation2 + $0x398] sm:$0xf0] }
  0x81   : > { %1658 = vmatpush.bf16.msra.mxu1 %v3303_v33  ;;  %v3644_v33 = vld [vmem:[#allocation2 + $0x358] sm:$0xf0]  ;;  %v4046_v22 = vld [vmem:[#allocation2 + $0x394] sm:$0xf] }
  0x82   : > { %1671 = vmatpush.bf16.msra.mxu2 %v3367_v34  ;;  %v4054_v34 = vld [vmem:[#allocation2 + $0x3d4] sm:$0xf] }
  0x83   : > { %1684 = vmatpush.bf16.msra.mxu3 %v3431_v39  ;;  %v3647_v39 = vor.u32 %v4038_v32, %v3644_v33  ;;  %v3711_v45 = vor.u32 %v4054_v34, %v3708_v35  ;;  %v4028_v32 = vld [vmem:[#allocation2 + $0x304] sm:$0xf]  ;;  %v3604_v33 = vld [vmem:[#allocation2 + $0x308] sm:$0xf0] }
  0x84   : > { %1646 = vmatpush.bf16.msra.mxu0 %v3231_v48  ;;  %v3636_v48 = vld [vmem:[#allocation2 + $0x348] sm:$0xf0]  ;;  %v4044_v34 = vld [vmem:[#allocation2 + $0x384] sm:$0xf] }
  0x85   : > { %1659 = vmatpush.bf16.msra.mxu1 %v3295_v51  ;;  %v4002_v51 = vld [vmem:[#allocation2 + $0x234] sm:$0xf]  ;;  %v3668_v35 = vld [vmem:[#allocation2 + $0x388] sm:$0xf0] }
  0x86   : > { %1672 = vmatpush.bf16.msra.mxu2 %v3359_v52  ;;  %v3500_v52 = vld [vmem:[#allocation2 + $0x238] sm:$0xf0] }
  0x87   : > { %1685 = vmatpush.bf16.msra.mxu3 %v3423_v56  ;;  %v4034_v56 = vld [vmem:[#allocation2 + $0x334] sm:$0xf]  ;;  %v3503_v60 = vor.u32 %v4002_v51, %v3500_v52 }
  0x88   : > { %1647 = vmatpush.bf16.msra.mxu0 %v3223_v63  ;;  %v3631_v62 = vor.u32 %v4034_v56, %v3628_v57  ;;  %v4000_v63 = vld [vmem:[#allocation2 + $0x224] sm:$0xf] }
  0x89   : > { %1660 = vmatpush.bf16.msra.mxu1 %v3287_v3  ;;  %v3556_v3 = vld [vmem:[#allocation2 + $0x2a8] sm:$0xf0] }
  0x8a   : > { %1673 = vmatpush.bf16.msra.mxu2 %v3351_v5  ;;  %v4032_v5 = vld [vmem:[#allocation2 + $0x324] sm:$0xf] }
  0x8b   : > { %1686 = vmatpush.bf16.msra.mxu3 %v3415_v9  ;;  %1648 = vmatmul.bf16.vlgmr.msra.gmra.mxu0 %v4532_v20  ;;  %v3700_v20 = vld [vmem:[#allocation2 + $0x3c8] sm:$0xf0] }
  0x8c   : > { %1692 = vmatpush.bf16.msrb.mxu0 %v3535_v10  ;;  %1661 = vmatmul.bf16.vlgmr.msra.gmra.mxu1 %v4535_v21  ;;  %v3639_v21 = vor.u32 %v4036_v47, %v3636_v48  ;;  %v3703_v54 = vor.u32 %v4052_v49, %v3700_v20  ;;  %v3684_v9 = vld [vmem:[#allocation2 + $0x3a8] sm:$0xf0]  ;;  %v3495_v10 = vor.u32 %v4000_v63, %v3492_v0 }
  0x8d   : > { %1705 = vmatpush.bf16.msrb.mxu1 %v3599_v11  ;;  %1674 = vmatmul.bf16.vlgmr.msra.gmra.mxu2 %v4526_v4  ;;  %v4020_v4 = vld [vmem:[#allocation2 + $0x2c4] sm:$0xf]  ;;  %v3559_v11 = vor.u32 %v4016_v1, %v3556_v3 }
  0x8e   : > { %1718 = vmatpush.bf16.msrb.mxu2 %v3663_v12  ;;  %1687 = vmatmul.bf16.vlgmr.msra.gmra.mxu3 %v4529_v6  ;;  %v3511_v6 = vor.u32 %v4004_v40, %v3508_v43  ;;  %v3575_v50 = vor.u32 %v4020_v4, %v3572_v46  ;;  %v3623_v12 = vor.u32 %v4032_v5, %v3620_v7 }
  0x8f   : > { %1731 = vmatpush.bf16.msrb.mxu3 %v3727_v16  ;;  %v3687_v16 = vor.u32 %v4048_v8, %v3684_v9  ;;  %v3671_v40 = vor.u32 %v4044_v34, %v3668_v35  ;;  %v1751_v34 = vld [vmem:[%s5182_s3 + $0x8] sm:$0xff] }
  0x90   : > { %1693 = vmatpush.bf16.msrb.mxu0 %v3527_v24  ;;  %v3487_v24 = vor.u32 %v3998_v13, %v3484_v14 }
  0x91   : > { %1706 = vmatpush.bf16.msrb.mxu1 %v3591_v25  ;;  %v3551_v25 = vor.u32 %v4014_v15, %v3548_v17 }
  0x92   : > { %1719 = vmatpush.bf16.msrb.mxu2 %v3655_v26  ;;  %v3615_v26 = vor.u32 %v4030_v18, %v3612_v19 }
  0x93   : > { %1732 = vmatpush.bf16.msrb.mxu3 %v3719_v30  ;;  %v3679_v30 = vor.u32 %v4046_v22, %v3676_v23 }
  0x94   : > { %1694 = vmatpush.bf16.msrb.mxu0 %v3519_v36  ;;  %v3479_v36 = vor.u32 %v3996_v27, %v3476_v28 }
  0x95   : > { %1707 = vmatpush.bf16.msrb.mxu1 %v3583_v37  ;;  %v3543_v37 = vor.u32 %v4012_v29, %v3540_v31  ;;  %v1750_v31 = vld [vmem:[%s5182_s3] sm:$0xff] }
  0x96   : > { %1720 = vmatpush.bf16.msrb.mxu2 %v3647_v39  ;;  %v3607_v39 = vor.u32 %v4028_v32, %v3604_v33 }
  0x97   : > { %1733 = vmatpush.bf16.msrb.mxu3 %v3711_v45 }
  0x98   : > { %1695 = vmatpush.bf16.msrb.mxu0 %v3511_v6 }
  0x99   : > { %1708 = vmatpush.bf16.msrb.mxu1 %v3575_v50 }
  0x9a   : > { %1721 = vmatpush.bf16.msrb.mxu2 %v3639_v21 }
  0x9b   : > { %1734 = vmatpush.bf16.msrb.mxu3 %v3703_v54 }
  0x9c   : > { %1696 = vmatpush.bf16.msrb.mxu0 %v3503_v60 }
  0x9d   : > { %1709 = vmatpush.bf16.msrb.mxu1 %v3567_v61 }
  0x9e   : > { %1722 = vmatpush.bf16.msrb.mxu2 %v3631_v62  ;;  %v4060_v62 = vld [vmem:[%s5181_s24] sm:$0xff]  ;;  %s3113_s24 = sshll.u32 %s3109_s28, 4  ;;  %s3114_s24 = int_to_ptr.hbm [resolvable:$true] %s3113_s24 }
  0x9f   : > { %1735 = vmatpush.bf16.msrb.mxu3 %v3695_v2  ;;  %s4245_s25 = sshra.s32 %s3114_s24, 4  ;;  %s4246_s25 = int_to_ptr.hbm [resolvable:$true] %s4245_s25 }
  0xa0   : > { %1697 = vmatpush.bf16.msrb.mxu0 %v3495_v10  ;;  %s4247_s0 = scalar_lea.hbm %s4246_s25, 1  ;;  %p4252_p3 = scmp.lt.s32.totalorder %s4246_s25, %s5143_s23 }
  0xa1   : > { %1710 = vmatpush.bf16.msrb.mxu1 %v3559_v11  ;;  %p4248_p0 = scmp.ne.s32.totalorder %s4246_s25, %s4247_s0 }
  0xa2   : > { %1723 = vmatpush.bf16.msrb.mxu2 %v3623_v12 }
  0xa3   : > { %1736 = vmatpush.bf16.msrb.mxu3 %v3687_v16  ;;  %p4249_p1 = pnand %p4248_p0, %p4493_p5 }
  0xa4   : > { %1698 = vmatpush.bf16.msrb.mxu0 %v3487_v24 }
  0xa5   : > { %1711 = vmatpush.bf16.msrb.mxu1 %v3551_v25  ;;  %p4250_p2 = pneg %p4249_p1 }
  0xa6   : > { %1724 = vmatpush.bf16.msrb.mxu2 %v3615_v26 }
  0xa7   : > { %1737 = vmatpush.bf16.msrb.mxu3 %v3679_v30  ;;  %v4334_v30 = vmov 0  }
  0xa8   : > { %1699 = vmatpush.bf16.msrb.mxu0 %v3479_v36  ;;  %4167 = vset.pattern.permute.xlu0 %v4334_v30  ;;  %v1752_v36 = vld [vmem:[%s5182_s3 + $0x10] sm:$0xff] }
  0xa9   : > { %1712 = vmatpush.bf16.msrb.mxu1 %v3543_v37  ;;  %4168 = vset.pattern.permute.xlu1 %v4334_v30 }
  0xaa   : > { %1725 = vmatpush.bf16.msrb.mxu2 %v3607_v39  ;;  %4166 = vset.pattern.permute.xlu2 %v4334_v30 }
  0xab   : > { %1738 = vmatpush.bf16.msrb.mxu3 %v3671_v40  ;;  %1700 = vmatmul.bf16.vlgmr.msrb.gmra.mxu0 %v4543_v41 }
  0xac   : > { %1713 = vmatmul.bf16.vlgmr.msrb.gmra.mxu1 %v4547_v44 }
  0xad   : > { %1726 = vmatmul.bf16.vlgmr.msrb.gmra.mxu2 %v4541_v38 }
  0xae   : > { %1739 = vmatmul.bf16.vlgmr.msrb.gmra.mxu3 %v4545_v42 }
  0xc9   : > { %v1558_v4 = vpop.f32.mrf.mxu1 }
  0xcc   : > { %v1545_v43 = vpop.f32.mrf.mxu0 }
  0xcd   : > { %v1559_v6 = vadd.f32 %v1558_v4, %v1545_v43 }
  0xd0   : > { %v1571_v45 = vpop.f32.mrf.mxu2 }
  0xd1   : > { %v1584_v46 = vpop.f32.mrf.mxu3  ;;  %v1560_v48 = vpop.f32.mrf.mxu1  ;;  %v1572_v50 = vadd.f32 %v1571_v45, %v1559_v6 }
  0xd3   : > { %v1585_v21 = vadd.f32 %v1584_v46, %v1572_v50  ;;  %v1753_v46 = vld [vmem:[%s5182_s3 + $0x18] sm:$0xff]  ;;  %s5066_s3 = sand.u32 1, %s4321_s30  }
  0xd4   : > { %v1547_v47 = vpop.f32.mrf.mxu0  ;;  %s729_s4 = scalar_lea.vmem [#allocation6], %s5066_s3  ;;  %s3088_s27 = scalar_lea.sflag [#allocation7], %s5066_s3 }
  0xd5   : > { %s3111_s1 = sshll.u32 %s729_s4, 4  ;;  %s3112_s1 = int_to_ptr.vmem [resolvable:$true] %s3111_s1 }
  0xd8   : > { %v1573_v49 = vpop.f32.mrf.mxu2 }
  0xd9   : > { %v1586_v20 = vpop.f32.mrf.mxu3 }
  0xe8   : > { %v1597_v51 = vpop.f32.mrf.mxu0 }
  0xe9   : > { %v1598_v52 = vadd.f32 %v1597_v51, %v1585_v21  ;;  %v1610_v41 = vpop.f32.mrf.mxu1 }
  0xeb   : > { %v1611_v53 = vadd.f32 %v1610_v41, %v1598_v52  ;;  %v1866_v41 = vld [vmem:[%s5183_s6] sm:$0xff] }
  0xec   : > { %1872 = vperm.xlu2 %4166, %v1866_v41  }
  0xf0   : > { %v1623_v44 = vpop.f32.mrf.mxu2  ;;  %v1599_v42 = vpop.f32.mrf.mxu0 }
  0xf1   : > { %v1624_v54 = vadd.f32 %v1623_v44, %v1611_v53  ;;  %v1636_v38 = vpop.f32.mrf.mxu3  ;;  %v1612_v56 = vpop.f32.mrf.mxu1  ;;  %v1867_v42 = vld [vmem:[%s5183_s6 + $0x8] sm:$0xff] }
  0xf2   : > { %v2216_v56 = vld [vmem:[%s5184_s8] sm:$0xff] }
  0xf3   : > { %v1637_v55 = vadd.f32 %v1636_v38, %v1624_v54 }
  0xf4   : > { %1877 = vperm.xlu2 %4166, %v1867_v42  }
  0xf5   : > { %v1744_v57 = vmul.f32 0.11111111, %v1637_v55 }
  0xf7   : > { %v1748_v58 = vpack.c.bf16 %v1744_v57, %v1744_v57  ;;  %v1868_v57 = vld [vmem:[%s5183_s6 + $0x10] sm:$0xff] }
  0xf8   : > { %v1625_v59 = vpop.f32.mrf.mxu2 }
  0xf9   : > { %v1765_v60 = vsel %vm1763_vm0, %v1748_v58, 0  ;;  %v1638_v61 = vpop.f32.mrf.mxu3  ;;  %v1869_v58 = vld [vmem:[%s5183_s6 + $0x18] sm:$0xff]  ;;  %v2217_v59 = vld [vmem:[%s5184_s8 + $0x8] sm:$0xff] }
  0xfa   : > { %1777 = vmatpush.bf16.msra.mxu1 %v1765_v60  ;;  %v2218_v60 = vld [vmem:[%s5184_s8 + $0x10] sm:$0xff]  ;;  %v4068_v61 = vld [vmem:[%s5185_s29 + $0x38] sm:$0xff] }
  0xfb   : > { %2028 = vmatpush.bf16.msra.mxu2 %v4068_v61 }
  0xfc   : > { %2226 = vperm.xlu2 %4166, %v2216_v56  }
  0xfd   : > { %3732 = vmatmul.msk.bf16.vlgmr.msra.gmra.mxu1 %vm1759_vm1, %v4060_v62 }
 0x108   : > { %v1649_v63 = vpop.f32.mrf.mxu0 }
 0x109   : > { %v1662_v0 = vpop.f32.mrf.mxu1 }
 0x10a   : > { %v1663_v9 = vadd.f32 %v1662_v0, %v1649_v63  ;;  %v4067_v63 = vld [vmem:[%s5185_s29 + $0x30] sm:$0xff] }
 0x10b   : > { %v4075_v0 = vld [vmem:[%s5185_s29 + $0x70] sm:$0xff]  ;;  %2029 = vmatpush.bf16.msra.mxu2 %v4067_v63 }
 0x110   : > { %v1675_v1 = vpop.f32.mrf.mxu2  ;;  %v1651_v3 = vpop.f32.mrf.mxu0 }
 0x111   : > { %v1688_v2 = vpop.f32.mrf.mxu3  ;;  %v1664_v5 = vpop.f32.mrf.mxu1  ;;  %v1676_v10 = vadd.f32 %v1675_v1, %v1663_v9  ;;  %v4066_v1 = vld [vmem:[%s5185_s29 + $0x28] sm:$0xff]  ;;  %v4065_v3 = vld [vmem:[%s5185_s29 + $0x20] sm:$0xff] }
 0x112   : > { %2030 = vmatpush.bf16.msra.mxu2 %v4066_v1  ;;  %v4073_v5 = vld [vmem:[%s5185_s29 + $0x60] sm:$0xff] }
 0x113   : > { %v1689_v11 = vadd.f32 %v1688_v2, %v1676_v10  ;;  %v4074_v2 = vld [vmem:[%s5185_s29 + $0x68] sm:$0xff] }
 0x116   : > { %2031 = vmatpush.bf16.msra.mxu2 %v4065_v3 }
 0x118   : > { %v1677_v7 = vpop.f32.mrf.mxu2 }
 0x119   : > { %v1690_v8 = vpop.f32.mrf.mxu3  ;;  %v4064_v7 = vld [vmem:[%s5185_s29 + $0x18] sm:$0xff] }
 0x11a   : > { %v4072_v8 = vld [vmem:[%s5185_s29 + $0x58] sm:$0xff]  ;;  %2032 = vmatpush.bf16.msra.mxu2 %v4064_v7 }
 0x128   : > { %v1701_v12 = vpop.f32.mrf.mxu0 }
 0x129   : > { %v1714_v13 = vpop.f32.mrf.mxu1  ;;  %v1702_v14 = vadd.f32 %v1701_v12, %v1689_v11  ;;  %v4063_v11 = vld [vmem:[%s5185_s29 + $0x10] sm:$0xff] }
 0x12a   : > { %v4071_v12 = vld [vmem:[%s5185_s29 + $0x50] sm:$0xff]  ;;  %2033 = vmatpush.bf16.msra.mxu2 %v4063_v11 }
 0x12b   : > { %v1715_v15 = vadd.f32 %v1714_v13, %v1702_v14 }
 0x130   : > { %v1727_v16 = vpop.f32.mrf.mxu2  ;;  %v1703_v19 = vpop.f32.mrf.mxu0 }
 0x131   : > { %v1728_v17 = vadd.f32 %v1727_v16, %v1715_v15  ;;  %v1740_v18 = vpop.f32.mrf.mxu3  ;;  %v1716_v22 = vpop.f32.mrf.mxu1 }
 0x133   : > { %v1741_v23 = vadd.f32 %v1740_v18, %v1728_v17  ;;  %v4062_v17 = vld [vmem:[%s5185_s29 + $0x8] sm:$0xff] }
 0x134   : > { %v4070_v18 = vld [vmem:[%s5185_s29 + $0x48] sm:$0xff]  ;;  %2034 = vmatpush.bf16.msra.mxu2 %v4062_v17 }
 0x135   : > { %v1745_v24 = vmul.f32 0.11111111, %v1741_v23 }
 0x137   : > { %v1749_v25 = vpack.c.bf16 %v1745_v24, %v1745_v24 }
 0x138   : > { %v1729_v26 = vpop.f32.mrf.mxu2 }
 0x139   : > { %v1742_v27 = vpop.f32.mrf.mxu3  ;;  %v1768_v28 = vsel %vm1763_vm0, %v1749_v25, 0  ;;  %v4061_v25 = vld [vmem:[%s5185_s29] sm:$0xff] }
 0x13a   : > { %1791 = vmatpush.bf16.msrb.mxu1 %v1768_v28  ;;  %v4069_v26 = vld [vmem:[%s5185_s29 + $0x40] sm:$0xff]  ;;  %2035 = vmatpush.bf16.msra.mxu2 %v4061_v25 }
 0x13d   : > { %3733 = vmatmul.msk.bf16.vlgmr.msrb.gmra.mxu1 %vm1759_vm1, %v4060_v62  ;;  %v4076_v62 = vld [vmem:[%s5185_s29 + $0x78] sm:$0xff] }
 0x13e   : > { %2042 = vmatpush.bf16.msra.mxu3 %v4076_v62 }
 0x142   : > { %2043 = vmatpush.bf16.msra.mxu3 %v4075_v0 }
 0x146   : > { %2044 = vmatpush.bf16.msra.mxu3 %v4074_v2 }
 0x14a   : > { %2045 = vmatpush.bf16.msra.mxu3 %v4073_v5 }
 0x14e   : > { %2046 = vmatpush.bf16.msra.mxu3 %v4072_v8 }
 0x152   : > { %2047 = vmatpush.bf16.msra.mxu3 %v4071_v12  ;;  %v4077_v12 = vld [vmem:[%s5186_s26] sm:$0xff] }
 0x156   : > { %2048 = vmatpush.bf16.msra.mxu3 %v4070_v18 }
 0x15a   : > { %2049 = vmatpush.bf16.msra.mxu3 %v4069_v26 }
 0x17a   : > { %v1779_v29 = vpop.f32.mrf.mxu1 }
 0x17b   : > { %v1780_v33 = vadd.f32 %v1779_v29, %v1750_v31 }
 0x17d   : > { %v1802_v35 = vmul.f32 0.2, %v1780_v33  ;;  %vm1798_vm2 = vcmp.ge.f32.partialorder %v1780_v33, 0.0 }
 0x17f   : > { %v4577_v4 = vsel %vm1798_vm2, %v1780_v33, %v1802_v35 }
 0x180   : > { %v1816_v48 = vmul.f32 %v4577_v4, %v4577_v4 }
 0x182   : > { %v1781_v32 = vpop.f32.mrf.mxu1 }
 0x183   : > { %v1782_v40 = vadd.f32 %v1781_v32, %v1752_v36 }
 0x185   : > { %v1804_v20 = vmul.f32 0.2, %v1782_v40  ;;  %vm1800_vm4 = vcmp.ge.f32.partialorder %v1782_v40, 0.0 }
 0x187   : > { %v4590_v52 = vsel %vm1800_vm4, %v1782_v40, %v1804_v20 }
 0x188   : > { %v1818_v54 = vmul.f32 %v4590_v52, %v4590_v52 }
 0x1ba   : > { %v1793_v37 = vpop.f32.mrf.mxu1 }
 0x1bb   : > { %v1794_v39 = vadd.f32 %v1793_v37, %v1751_v34 }
 0x1bd   : > { %v1803_v43 = vmul.f32 0.2, %v1794_v39  ;;  %vm1799_vm3 = vcmp.ge.f32.partialorder %v1794_v39, 0.0 }
 0x1bf   : > { %v4579_v45 = vsel %vm1799_vm3, %v1794_v39, %v1803_v43 }
 0x1c0   : > { %v1810_v47 = vadd.f32 %v4579_v45, %v4577_v4  ;;  %v1817_v49 = vmul.f32 %v4579_v45, %v4579_v45 }
 0x1c2   : > { %v1795_v6 = vpop.f32.mrf.mxu1  ;;  %1811 = vadd.xlane.f32.xlu0 %v1810_v47  ;;  %v1820_v50 = vadd.f32 %v1817_v49, %v1816_v48  ;;  %v1873_v47 = vpop.permute.xlu2 %1872 }
 0x1c3   : > { %v1796_v21 = vadd.f32 %v1795_v6, %v1753_v46 }
 0x1c4   : > { %1821 = vadd.xlane.f32.xlu1 %v1820_v50 }
 0x1c5   : > { %vm1801_vm5 = vcmp.ge.f32.partialorder %v1796_v21, 0.0  ;;  %v1805_v51 = vmul.f32 0.2, %v1796_v21 }
 0x1c7   : > { %v4595_v53 = vsel %vm1801_vm5, %v1796_v21, %v1805_v51 }
 0x1c8   : > { %v1813_v44 = vadd.f32 %v4595_v53, %v4590_v52  ;;  %v1819_v38 = vmul.f32 %v4595_v53, %v4595_v53 }
 0x1ca   : > { %1814 = vadd.xlane.f32.xlu0 %v1813_v44  ;;  %v1823_v55 = vadd.f32 %v1819_v38, %v1818_v54 }
 0x1cc   : > { %1824 = vadd.xlane.f32.xlu1 %v1823_v55 }
 0x1de   : > { %1886 = vperm.xlu0 %4167, %v1868_v57  }
 0x1e5   : > { %1891 = vperm.xlu1 %4168, %v1869_v58   ;;  %v1878_v58 = vpop.permute.xlu2 %1877 }
 0x1ed   : > { %2231 = vperm.xlu1 %4168, %v2217_v59  }
 0x1f5   : > { %2236 = vperm.xlu1 %4168, %v2218_v60  }
 0x235   : > { %v1812_v9 = vpop.xlane.xlu0 %1811 }
 0x236   : > { %v1826_v10 = vmul.f32 0.00390625, %v1812_v9 }
 0x237   : > { %v1822_v13 = vpop.xlane.xlu1 %1821 }
 0x238   : > { %v1828_v14 = vmul.f32 0.00390625, %v1822_v13  ;;  %v1830_v15 = vmul.f32 %v1826_v10, %v1826_v10  ;;  %v1836_v20 = vsub.f32 %v4577_v4, %v1826_v10  ;;  %v1837_v6 = vsub.f32 %v4579_v45, %v1826_v10  ;;  %v4078_v13 = vld [vmem:[%s5186_s26 + $0x8] sm:$0xff] }
 0x23a   : > { %v1832_v16 = vsub.f32 %v1828_v14, %v1830_v15  ;;  %v2063_v14 = vld [vmem:[%s5187_s2] sm:$0xff] }
 0x23c   : > { %v1834_v19 = vmax.f32 %v1832_v16, 0.0 }
 0x23d   : > { %v1815_v22 = vpop.xlane.xlu0 %1814 }
 0x23e   : > { %v1840_v23 = vadd.f32 1e-05, %v1834_v19  ;;  %v1827_v24 = vmul.f32 0.00390625, %v1815_v22  ;;  %v2064_v22 = vld [vmem:[%s5187_s2 + $0x8] sm:$0xff] }
 0x23f   : > { %v1825_v27 = vpop.xlane.xlu1 %1824 }
 0x240   : > { %4171 = vrsqrt.f32 %v1840_v23  ;;  %v1829_v28 = vmul.f32 0.00390625, %v1825_v27  ;;  %v1831_v29 = vmul.f32 %v1827_v24, %v1827_v24  ;;  %vm1848_vm7 = vweird.f32 %v1840_v23 }
 0x241   : > { %v1838_v44 = vsub.f32 %v4590_v52, %v1827_v24  ;;  %v1839_v54 = vsub.f32 %v4595_v53, %v1827_v24 }
 0x242   : > { %v1833_v30 = vsub.f32 %v1829_v28, %v1831_v29 }
 0x244   : > { %v1835_v31 = vmax.f32 %v1833_v30, 0.0 }
 0x246   : > { %v4172_v32 = vpop.eup %4171  ;;  %v1841_v34 = vadd.f32 1e-05, %v1835_v31  ;;  %v2066_v31 = vld [vmem:[%s5187_s2 + $0x18] sm:$0xff] }
 0x247   : > { %v1843_v33 = vmul.f32 %v4172_v32, %v1840_v23  ;;  %vm1849_vm6 = vweird.f32 %v4172_v32 }
 0x248   : > { %4173 = vrsqrt.f32 %v1841_v34  ;;  %vm1850_vm8 = vmor %vm1848_vm7, %vm1849_vm6  ;;  %vm1858_vm10 = vweird.f32 %v1841_v34 }
 0x249   : > { %v1844_v35 = vmul.f32 %v4172_v32, %v1843_v33 }
 0x24b   : > { %v1845_v36 = vmul.f32 0.5, %v1844_v35 }
 0x24d   : > { %v1846_v37 = vsub.f32 1.5, %v1845_v36  ;;  %v2221_v36 = vld [vmem:[%s5184_s8 + $0x28] sm:$0xff] }
 0x24e   : > { %v4174_v39 = vpop.eup %4173 }
 0x24f   : > { %v1853_v40 = vmul.f32 %v4174_v39, %v1841_v34  ;;  %v1847_v43 = vmul.f32 %v4172_v32, %v1846_v37  ;;  %vm1859_vm9 = vweird.f32 %v4174_v39  ;;  %v2220_v34 = vld [vmem:[%s5184_s8 + $0x20] sm:$0xff] }
 0x250   : > { %vm1860_vm11 = vmor %vm1858_vm10, %vm1859_vm9  ;;  %v1887_v4 = vpop.permute.xlu0 %1886 }
 0x251   : > { %v1854_v46 = vmul.f32 %v4174_v39, %v1853_v40  ;;  %v1851_v49 = vsel %vm1850_vm8, %v4172_v32, %v1847_v43  ;;  %v2219_v43 = vld [vmem:[%s5184_s8 + $0x18] sm:$0xff] }
 0x252   : > { %v1862_v21 = vmul.f32 %v1851_v49, %v1836_v20  ;;  %v1863_v51 = vmul.f32 %v1851_v49, %v1837_v6  ;;  %v2650_v49 = vld [vmem:[%s5132_s12 + $0x58] sm:$0xff]  ;;  %v2647_v20 = vld [vmem:[%s5132_s12 + $0x40] sm:$0xff]  ;;  %v2065_v6 = vld [vmem:[%s5187_s2 + $0x10] sm:$0xff] }
 0x253   : > { %v1855_v48 = vmul.f32 0.5, %v1854_v46  ;;  %v2640_v46 = vld [vmem:[%s5132_s12 + $0x8] sm:$0xff] }
 0x254   : > { %v1880_v55 = vmul.f32 %v1873_v47, %v1862_v21  ;;  %v1881_v42 = vmul.f32 %v1873_v47, %v1863_v51  ;;  %v2641_v47 = vld [vmem:[%s5132_s12 + $0x10] sm:$0xff] }
 0x255   : > { %v1856_v50 = vsub.f32 1.5, %v1855_v48  ;;  %v2223_v48 = vld [vmem:[%s5184_s8 + $0x38] sm:$0xff] }
 0x256   : > { %v1894_v61 = vadd.f32 %v1887_v4, %v1880_v55  ;;  %v1895_v62 = vadd.f32 %v1887_v4, %v1881_v42  ;;  %v2652_v4 = vld [vmem:[%s5132_s12 + $0x68] sm:$0xff] }
 0x257   : > { %v1857_v41 = vmul.f32 %v4174_v39, %v1856_v50  ;;  %v1892_v60 = vpop.permute.xlu1 %1891  ;;  %v2644_v50 = vld [vmem:[%s5132_s12 + $0x28] sm:$0xff] }
 0x259   : > { %v1861_v38 = vsel %vm1860_vm11, %v4174_v39, %v1857_v41 }
 0x25a   : > { %v1864_v56 = vmul.f32 %v1861_v38, %v1838_v44  ;;  %v1865_v57 = vmul.f32 %v1861_v38, %v1839_v54  ;;  %v2649_v44 = vld [vmem:[%s5132_s12 + $0x50] sm:$0xff] }
 0x25b   : > { %v2653_v38 = vld [vmem:[%s5132_s12 + $0x70] sm:$0xff] }
 0x25c   : > { %v1882_v59 = vmul.f32 %v1878_v58, %v1864_v56  ;;  %v1883_v45 = vmul.f32 %v1878_v58, %v1865_v57  ;;  %v2643_v56 = vld [vmem:[%s5132_s12 + $0x20] sm:$0xff] }
 0x25e   : > { %v1896_v63 = vadd.f32 %v1892_v60, %v1882_v59  ;;  %v1897_v0 = vadd.f32 %v1892_v60, %v1883_v45  ;;  %v2222_v45 = vld [vmem:[%s5184_s8 + $0x30] sm:$0xff]  ;;  %v2639_v60 = vld [vmem:[%s5132_s12] sm:$0xff] }
 0x260   : > { %v1898_v1 = vpack.c.bf16 %v1896_v63, %v1894_v61  ;;  %v1899_v2 = vpack.c.bf16 %v1897_v0, %v1895_v62  ;;  %v2648_v61 = vld [vmem:[%s5132_s12 + $0x48] sm:$0xff]  ;;  %v2642_v62 = vld [vmem:[%s5132_s12 + $0x18] sm:$0xff]  ;;  %v4772_v63 = vpop.permute.xlu2 %2226  ;;  %v2651_v0 = vld [vmem:[%s5132_s12 + $0x60] sm:$0xff] }
 0x262   : > { %2036 = vmatmul.bf16.vlgmr.msra.gmra.mxu2 %v1898_v1  ;;  %2050 = vmatmul.bf16.vlgmr.msra.gmra.mxu3 %v1899_v2  ;;  %v2645_v2 = vld [vmem:[%s5132_s12 + $0x30] sm:$0xff] }
 0x2e5   : > { %v2037_v52 = vpop.f32.mrf.mxu2  ;;  %v2051_v53 = vpop.f32.mrf.mxu3 }
 0x2e6   : > { %v2052_v3 = vadd.f32 %v2051_v53, %v2037_v52 }
 0x2e8   : > { %v2056_v9 = vmul.f32 0.11111111, %v2052_v3 }
 0x2ed   : > { %v2039_v5 = vpop.f32.mrf.mxu2  ;;  %v2053_v7 = vpop.f32.mrf.mxu3 }
 0x2ee   : > { %v2054_v8 = vadd.f32 %v2053_v7, %v2039_v5  ;;  %v4780_v7 = vpop.permute.xlu1 %2231 }
 0x2f0   : > { %v2057_v10 = vmul.f32 0.11111111, %v2054_v8 }
 0x2f2   : > { %v2062_v11 = vpack.c.bf16 %v2057_v10, %v2056_v9 }
 0x2f4   : > { %2091 = vmatpush.bf16.msra.mxu0 %v2062_v11  ;;  %v4082_v11 = vld [vmem:[%s5188_s9 + $0x18] sm:$0xff] }
 0x2f5   : > { %2316 = vmatpush.bf16.msra.mxu1 %v4082_v11 }
 0x2f6   : > { %v4782_v10 = vpop.permute.xlu1 %2236 }
 0x2f7   : > { %3806 = vmatmul.msk.bf16.vlgmr.msra.gmra.mxu0 %vm2077_vm12, %v4077_v12 }
 0x307   : > { %3807 = vmatmul.msk.bf16.gmra.mxu0 %vm2077_vm12, %v4078_v13  ;;  %v4081_v13 = vld [vmem:[%s5188_s9 + $0x10] sm:$0xff] }
 0x308   : > { %2317 = vmatpush.bf16.msra.mxu1 %v4081_v13 }
 0x374   : > { %v2093_v15 = vpop.f32.mrf.mxu0 }
 0x375   : > { %v2094_v16 = vadd.f32 %v2093_v15, %v2063_v14 }
 0x377   : > { %v2107_v17 = vmul.f32 0.2, %v2094_v16  ;;  %vm2103_vm13 = vcmp.ge.f32.partialorder %v2094_v16, 0.0 }
 0x379   : > { %v4684_v18 = vsel %vm2103_vm13, %v2094_v16, %v2107_v17  ;;  %v4080_v16 = vld [vmem:[%s5188_s9 + $0x8] sm:$0xff] }
 0x37a   : > { %v2116_v19 = vsel %vm2115_vm14, %v4684_v18, 0.0  ;;  %v2128_v23 = vmul.f32 %v4684_v18, %v4684_v18  ;;  %2318 = vmatpush.bf16.msra.mxu1 %v4080_v16 }
 0x37b   : > { %2117 = vadd.xlane.f32.xlu2 %v2116_v19 }
 0x37c   : > { %v2095_v24 = vpop.f32.mrf.mxu0  ;;  %v2132_v25 = vsel %vm2115_vm14, %v2128_v23, 0.0 }
 0x37d   : > { %v2096_v26 = vadd.f32 %v2095_v24, %v2064_v22  ;;  %2133 = vadd.xlane.f32.xlu0 %v2132_v25  ;;  %v4079_v22 = vld [vmem:[%s5188_s9] sm:$0xff]  ;;  %s4251_s9 = scalar_lea.hbm %s5143_s23, 2 }
 0x37e   : > { %2319 = vmatpush.bf16.msra.mxu1 %v4079_v22  ;;  %p4253_p4 = scmp.lt.s32.totalorder %s4251_s9, %s4247_s0 }
 0x37f   : > { %v2108_v27 = vmul.f32 0.2, %v2096_v26  ;;  %vm2104_vm15 = vcmp.ge.f32.partialorder %v2096_v26, 0.0 }
 0x380   : > { %p4254_p7 = por %p4253_p4, %p4252_p3 }
 0x381   : > { %v4694_v28 = vsel %vm2104_vm15, %v2096_v26, %v2108_v27 }
 0x382   : > { %v2119_v29 = vsel %vm2115_vm14, %v4694_v28, 0.0  ;;  %v2129_v21 = vmul.f32 %v4694_v28, %v4694_v28  ;;  %p4255_p8 = pnand %p4254_p7, %p4250_p2 }
 0x383   : > { %2120 = vadd.xlane.f32.xlu1 %v2119_v29 }
 0x384   : > { %v2098_v30 = vpop.f32.mrf.mxu0  ;;  %v2135_v41 = vsel %vm2115_vm14, %v2129_v21, 0.0 }
 0x385   : > { %v2099_v51 = vadd.f32 %v2098_v30, %v2065_v6 }
 0x387   : > { %v2109_v54 = vmul.f32 0.2, %v2099_v51  ;;  %vm2105_vm2 = vcmp.ge.f32.partialorder %v2099_v51, 0.0 }
 0x389   : > { %v4745_v55 = vsel %vm2105_vm2, %v2099_v51, %v2109_v54  ;;  %vm2373_vm2 = vcmask 261120  }
 0x38a   : > { %v2122_v42 = vsel %vm2115_vm14, %v4745_v55, 0.0  ;;  %v2130_v57 = vmul.f32 %v4745_v55, %v4745_v55 }
 0x38c   : > { %v2100_v32 = vpop.f32.mrf.mxu0  ;;  %v2138_v58 = vsel %vm2115_vm14, %v2130_v57, 0.0 }
 0x38d   : > { %v2101_v33 = vadd.f32 %v2100_v32, %v2066_v31 }
 0x38f   : > { %vm2106_vm1 = vcmp.ge.f32.partialorder %v2101_v33, 0.0  ;;  %v2110_v35 = vmul.f32 0.2, %v2101_v33 }
 0x391   : > { %2250 = vperm.xlu0 %4167, %v2220_v34   ;;  %v4707_v37 = vsel %vm2106_vm1, %v2101_v33, %v2110_v35 }
 0x392   : > { %v2131_v39 = vmul.f32 %v4707_v37, %v4707_v37  ;;  %v2125_v59 = vsel %vm2115_vm14, %v4707_v37, 0.0 }
 0x393   : > { %2255 = vperm.xlu2 %4166, %v2221_v36  }
 0x394   : > { %v2141_v40 = vsel %vm2115_vm14, %v2131_v39, 0.0 }
 0x395   : > { %2142 = vadd.xlane.f32.xlu1 %v2141_v40 }
 0x399   : > { %2241 = vperm.xlu0 %4167, %v2219_v43  }
 0x3a1   : > { %2662 = vperm.xlu0 %4167, %v2640_v46  }
 0x3a9   : > { %2667 = vperm.xlu0 %4167, %v2641_v47  }
 0x3ae   : > { %2265 = vperm.xlu1 %4168, %v2223_v48  }
 0x3b1   : > { %2720 = vperm.xlu0 %4167, %v2650_v49  }
 0x3b6   : > { %2705 = vperm.xlu1 %4168, %v2647_v20  }
 0x3b9   : > { %2682 = vperm.xlu0 %4167, %v2644_v50  }
 0x3bc   : > { %2136 = vadd.xlane.f32.xlu2 %v2135_v41 }
 0x3be   : > { %2715 = vperm.xlu1 %4168, %v2649_v44  }
 0x3c1   : > { %2735 = vperm.xlu0 %4167, %v2653_v38  }
 0x3c4   : > { %2123 = vadd.xlane.f32.xlu2 %v2122_v42 }
 0x3c6   : > { %2677 = vperm.xlu1 %4168, %v2643_v56  }
 0x3cc   : > { %2139 = vadd.xlane.f32.xlu2 %v2138_v58 }
 0x3ce   : > { %2730 = vperm.xlu1 %4168, %v2652_v4  }
 0x3d4   : > { %2126 = vadd.xlane.f32.xlu2 %v2125_v59 }
 0x3ec   : > { %2260 = vperm.xlu2 %4166, %v2222_v45  }
 0x3ee   : > { %v2118_v1 = vpop.xlane.xlu2 %2117 }
 0x3ef   : > { %v2144_v52 = vmul.f32 0.015625, %v2118_v1 }
 0x3f0   : > { %v2134_v53 = vpop.xlane.xlu0 %2133 }
 0x3f1   : > { %v2152_v3 = vmul.f32 %v2144_v52, %v2144_v52  ;;  %v2148_v5 = vmul.f32 0.015625, %v2134_v53  ;;  %v2164_v50 = vsub.f32 %v4684_v18, %v2144_v52 }
 0x3f3   : > { %v2156_v8 = vsub.f32 %v2148_v5, %v2152_v3 }
 0x3f4   : > { %2657 = vperm.xlu2 %4166, %v2639_v60  }
 0x3f5   : > { %v2160_v9 = vmax.f32 %v2156_v8, 0.0 }
 0x3f6   : > { %v2256_v14 = vpop.permute.xlu2 %2255  ;;  %v2121_v15 = vpop.xlane.xlu1 %2120 }
 0x3f7   : > { %v2168_v12 = vadd.f32 1e-05, %v2160_v9  ;;  %v2145_v19 = vmul.f32 0.015625, %v2121_v15 }
 0x3f9   : > { %4175 = vrsqrt.f32 %v2168_v12  ;;  %v2153_v25 = vmul.f32 %v2145_v19, %v2145_v19  ;;  %vm2178_vm4 = vweird.f32 %v2168_v12  ;;  %v2165_v42 = vsub.f32 %v4694_v28, %v2145_v19 }
 0x3fc   : > { %2710 = vperm.xlu2 %4166, %v2648_v61  }
 0x3ff   : > { %v4176_v17 = vpop.eup %4175 }
 0x400   : > { %v2173_v23 = vmul.f32 %v4176_v17, %v2168_v12  ;;  %vm2179_vm3 = vweird.f32 %v4176_v17 }
 0x401   : > { %vm2180_vm5 = vmor %vm2178_vm4, %vm2179_vm3 }
 0x402   : > { %v2174_v29 = vmul.f32 %v4176_v17, %v2173_v23 }
 0x404   : > { %2672 = vperm.xlu2 %4166, %v2642_v62   ;;  %v2175_v32 = vmul.f32 0.5, %v2174_v29  ;;  %v2251_v62 = vpop.permute.xlu0 %2250 }
 0x406   : > { %v2176_v34 = vsub.f32 1.5, %v2175_v32 }
 0x408   : > { %v2177_v39 = vmul.f32 %v4176_v17, %v2176_v34  ;;  %v2143_v57 = vpop.xlane.xlu1 %2142 }
 0x409   : > { %v2151_v59 = vmul.f32 0.015625, %v2143_v57 }
 0x40a   : > { %v2181_v20 = vsel %vm2180_vm5, %v4176_v17, %v2177_v39 }
 0x40b   : > { %v2212_v41 = vmul.f32 %v2181_v20, %v2164_v50  ;;  %v4086_v20 = vld [vmem:[%s5189_s10 + $0x18] sm:$0xff] }
 0x40c   : > { %2725 = vperm.xlu2 %4166, %v2651_v0  }
 0x40d   : > { %v2244_v4 = vmul.f32 %v4772_v63, %v2212_v41 }
 0x40f   : > { %v2268_v1 = vadd.f32 %v2251_v62, %v2244_v4 }
 0x414   : > { %2687 = vperm.xlu2 %4166, %v2645_v2  }
 0x420   : > { %v2266_v29 = vpop.permute.xlu1 %2265 }
 0x42f   : > { %v2137_v24 = vpop.xlane.xlu2 %2136 }
 0x430   : > { %v2149_v26 = vmul.f32 0.015625, %v2137_v24 }
 0x432   : > { %v2157_v27 = vsub.f32 %v2149_v26, %v2153_v25  ;;  %v2242_v26 = vpop.permute.xlu0 %2241 }
 0x434   : > { %v2161_v30 = vmax.f32 %v2157_v27, 0.0 }
 0x436   : > { %v2169_v31 = vadd.f32 1e-05, %v2161_v30 }
 0x437   : > { %v2124_v33 = vpop.xlane.xlu2 %2123 }
 0x438   : > { %4177 = vrsqrt.f32 %v2169_v31  ;;  %v2146_v35 = vmul.f32 0.015625, %v2124_v33  ;;  %vm2188_vm7 = vweird.f32 %v2169_v31 }
 0x43a   : > { %v2154_v46 = vmul.f32 %v2146_v35, %v2146_v35 }
 0x43e   : > { %v4178_v36 = vpop.eup %4177 }
 0x43f   : > { %v2183_v40 = vmul.f32 %v4178_v36, %v2169_v31  ;;  %v2140_v43 = vpop.xlane.xlu2 %2139  ;;  %vm2189_vm6 = vweird.f32 %v4178_v36 }
 0x440   : > { %v2150_v47 = vmul.f32 0.015625, %v2140_v43  ;;  %vm2190_vm8 = vmor %vm2188_vm7, %vm2189_vm6 }
 0x441   : > { %v2184_v48 = vmul.f32 %v4178_v36, %v2183_v40 }
 0x442   : > { %v2158_v49 = vsub.f32 %v2150_v47, %v2154_v46  ;;  %v4083_v47 = vld [vmem:[%s5189_s10] sm:$0xff] }
 0x443   : > { %v2185_v6 = vmul.f32 0.5, %v2184_v48  ;;  %v4084_v48 = vld [vmem:[%s5189_s10 + $0x8] sm:$0xff] }
 0x444   : > { %v2162_v21 = vmax.f32 %v2158_v49, 0.0  ;;  %v4085_v49 = vld [vmem:[%s5189_s10 + $0x10] sm:$0xff] }
 0x445   : > { %v2186_v51 = vsub.f32 1.5, %v2185_v6  ;;  %v2345_v6 = vld [vmem:[%s5190_s11] sm:$0xff] }
 0x446   : > { %v2170_v44 = vadd.f32 1e-05, %v2162_v21 }
 0x447   : > { %v2187_v54 = vmul.f32 %v4178_v36, %v2186_v51  ;;  %v2127_v38 = vpop.xlane.xlu2 %2126 }
 0x448   : > { %4179 = vrsqrt.f32 %v2170_v44  ;;  %v2147_v56 = vmul.f32 0.015625, %v2127_v38  ;;  %vm2198_vm10 = vweird.f32 %v2170_v44 }
 0x449   : > { %v2191_v58 = vsel %vm2190_vm8, %v4178_v36, %v2187_v54  ;;  %v2346_v54 = vld [vmem:[%s5190_s11 + $0x8] sm:$0xff] }
 0x44a   : > { %v2213_v45 = vmul.f32 %v2191_v58, %v2165_v42  ;;  %v2155_v18 = vmul.f32 %v2147_v56, %v2147_v56  ;;  %v2167_v22 = vsub.f32 %v4707_v37, %v2147_v56 }
 0x44c   : > { %v2245_v60 = vmul.f32 %v4780_v7, %v2213_v45  ;;  %v2159_v61 = vsub.f32 %v2151_v59, %v2155_v18  ;;  %v2347_v45 = vld [vmem:[%s5190_s11 + $0x10] sm:$0xff] }
 0x44e   : > { %v4180_v0 = vpop.eup %4179  ;;  %v2163_v2 = vmax.f32 %v2159_v61, 0.0  ;;  %v2269_v52 = vadd.f32 %v2256_v14, %v2245_v60  ;;  %v2166_v14 = vsub.f32 %v4745_v55, %v2146_v35 }
 0x44f   : > { %v2193_v53 = vmul.f32 %v4180_v0, %v2170_v44  ;;  %vm2199_vm9 = vweird.f32 %v4180_v0  ;;  %v2261_v30 = vpop.permute.xlu2 %2260 }
 0x450   : > { %v2171_v28 = vadd.f32 1e-05, %v2163_v2  ;;  %v2272_v3 = vpack.c.bf16 %v2269_v52, %v2268_v1  ;;  %vm2200_vm11 = vmor %vm2198_vm10, %vm2199_vm9  ;;  %v2348_v52 = vld [vmem:[%s5190_s11 + $0x18] sm:$0xff] }
 0x451   : > { %v2194_v5 = vmul.f32 %v4180_v0, %v2193_v53 }
 0x452   : > { %4181 = vrsqrt.f32 %v2171_v28  ;;  %3824 = vmatmul.msk.bf16.vlgmr.msra.gmra.mxu1 %vm2115_vm14, %v2272_v3  ;;  %vm2208_vm15 = vweird.f32 %v2171_v28 }
 0x453   : > { %v2195_v8 = vmul.f32 0.5, %v2194_v5 }
 0x455   : > { %v2196_v63 = vsub.f32 1.5, %v2195_v8 }
 0x457   : > { %v2197_v12 = vmul.f32 %v4180_v0, %v2196_v63 }
 0x458   : > { %v4182_v9 = vpop.eup %4181 }
 0x459   : > { %v2203_v11 = vmul.f32 %v4182_v9, %v2171_v28  ;;  %v2201_v15 = vsel %vm2200_vm11, %v4180_v0, %v2197_v12  ;;  %vm2209_vm13 = vweird.f32 %v4182_v9 }
 0x45a   : > { %v2214_v17 = vmul.f32 %v2201_v15, %v2166_v14  ;;  %vm2210_vm1 = vmor %vm2208_vm15, %vm2209_vm13 }
 0x45b   : > { %v2204_v7 = vmul.f32 %v4182_v9, %v2203_v11  ;;  %v2349_v11 = vld [vmem:[%s5190_s11 + $0x20] sm:$0xff] }
 0x45c   : > { %v2246_v25 = vmul.f32 %v4782_v10, %v2214_v17 }
 0x45d   : > { %v2205_v13 = vmul.f32 0.5, %v2204_v7 }
 0x45e   : > { %v2270_v32 = vadd.f32 %v2261_v30, %v2246_v25  ;;  %v2351_v30 = vld [vmem:[%s5190_s11 + $0x30] sm:$0xff] }
 0x45f   : > { %v2206_v16 = vsub.f32 1.5, %v2205_v13 }
 0x461   : > { %v2207_v19 = vmul.f32 %v4182_v9, %v2206_v16 }
 0x463   : > { %v2211_v23 = vsel %vm2210_vm1, %v4182_v9, %v2207_v19  ;;  %v2350_v19 = vld [vmem:[%s5190_s11 + $0x28] sm:$0xff] }
 0x464   : > { %v2215_v24 = vmul.f32 %v2211_v23, %v2167_v22 }
 0x466   : > { %v2247_v27 = vmul.f32 %v2242_v26, %v2215_v24 }
 0x468   : > { %v2271_v31 = vadd.f32 %v2266_v29, %v2247_v27 }
 0x46a   : > { %v2273_v33 = vpack.c.bf16 %v2271_v31, %v2270_v32 }
 0x46c   : > { %3825 = vmatmul.msk.bf16.gmra.mxu1 %vm2115_vm14, %v2273_v33 }
 0x4cf   : > { %v2321_v55 = vpop.f32.mrf.mxu1 }
 0x4d0   : > { %v2331_v46 = vmul.f32 0.11111111, %v2321_v55 }
 0x4d7   : > { %v2323_v34 = vpop.f32.mrf.mxu1 }
 0x4d8   : > { %v2332_v40 = vmul.f32 0.11111111, %v2323_v34 }
 0x4da   : > { %v2343_v10 = vpack.c.bf16 %v2332_v40, %v2331_v46 }
 0x4e9   : > { %v2326_v35 = vpop.f32.mrf.mxu1 }
 0x4ea   : > { %v2333_v39 = vmul.f32 0.11111111, %v2326_v35 }
 0x4f1   : > { %v2328_v36 = vpop.f32.mrf.mxu1 }
 0x4f2   : > { %v2334_v37 = vmul.f32 0.11111111, %v2328_v36 }
 0x4f4   : > { %v2344_v43 = vpack.c.bf16 %v2334_v37, %v2333_v39  ;;  %v2352_v39 = vld [vmem:[%s5190_s11 + $0x38] sm:$0xff] }
 0x4f6   : > { %2392 = vmatpush.bf16.msrb.mxu2 %v2344_v43 }
 0x4fa   : > { %2393 = vmatpush.bf16.msrb.mxu2 %v2343_v10 }
 0x4fd   : > { %3842 = vmatmul.msk.bf16.vlgmr.msrb.gmra.mxu2 %vm2373_vm2, %v4083_v47 }
 0x50d   : > { %3843 = vmatmul.msk.bf16.gmra.mxu2 %vm2373_vm2, %v4084_v48 }
 0x51d   : > { %3844 = vmatmul.msk.bf16.gmra.mxu2 %vm2373_vm2, %v4085_v49 }
 0x52d   : > { %3845 = vmatmul.msk.bf16.gmra.mxu2 %vm2373_vm2, %v4086_v20 }
 0x580   : > { %v2395_v50 = vpop.f32.mrf.mxu2 }
 0x581   : > { %v2396_v21 = vadd.f32 %v2395_v50, %v2345_v6  ;;  %v4897_v6 = vpop.permute.xlu0 %2662  ;;  %v4899_v50 = vpop.permute.xlu2 %2657 }
 0x583   : > { %v2423_v51 = vmul.f32 0.2, %v2396_v21  ;;  %vm2415_vm3 = vcmp.ge.f32.partialorder %v2396_v21, 0.0 }
 0x585   : > { %v4820_v41 = vsel %vm2415_vm3, %v2396_v21, %v2423_v51  ;;  %v2654_v21 = vld [vmem:[%s5132_s12 + $0x78] sm:$0xff] }
 0x586   : > { %v2439_v44 = vsel %vm2077_vm12, %v4820_v41, 0.0  ;;  %v2463_v38 = vmul.f32 %v4820_v41, %v4820_v41 }
 0x587   : > { %2440 = vadd.xlane.f32.xlu0 %v2439_v44  ;;  %v2646_v44 = vld [vmem:[%s5132_s12 + $0x38] sm:$0xff] }
 0x588   : > { %v2397_v42 = vpop.f32.mrf.mxu2  ;;  %v2471_v56 = vsel %vm2077_vm12, %v2463_v38, 0.0  ;;  %v4911_v38 = vpop.permute.xlu1 %2705 }
 0x589   : > { %v2398_v57 = vadd.f32 %v2397_v42, %v2346_v54  ;;  %2472 = vadd.xlane.f32.xlu2 %v2471_v56  ;;  %v4904_v51 = vpop.permute.xlu0 %2667  ;;  %v4909_v54 = vpop.permute.xlu2 %2710 }
 0x58b   : > { %v2424_v58 = vmul.f32 0.2, %v2398_v57  ;;  %vm2416_vm4 = vcmp.ge.f32.partialorder %v2398_v57, 0.0 }
 0x58d   : > { %v4830_v4 = vsel %vm2416_vm4, %v2398_v57, %v2424_v58 }
 0x58e   : > { %v2442_v59 = vsel %vm2077_vm12, %v4830_v4, 0.0  ;;  %v2464_v18 = vmul.f32 %v4830_v4, %v4830_v4 }
 0x58f   : > { %2443 = vadd.xlane.f32.xlu1 %v2442_v59 }
 0x590   : > { %v2400_v60 = vpop.f32.mrf.mxu2  ;;  %v2474_v61 = vsel %vm2077_vm12, %v2464_v18, 0.0  ;;  %v4917_v57 = vpop.permute.xlu1 %2715 }
 0x591   : > { %v2401_v62 = vadd.f32 %v2400_v60, %v2347_v45  ;;  %2475 = vadd.xlane.f32.xlu0 %v2474_v61  ;;  %v4913_v42 = vpop.permute.xlu0 %2720  ;;  %v4915_v56 = vpop.permute.xlu2 %2672 }
 0x593   : > { %v2425_v0 = vmul.f32 0.2, %v2401_v62  ;;  %vm2417_vm5 = vcmp.ge.f32.partialorder %v2401_v62, 0.0 }
 0x595   : > { %v4840_v1 = vsel %vm2417_vm5, %v2401_v62, %v2425_v0 }
 0x596   : > { %v2445_v2 = vsel %vm2077_vm12, %v4840_v1, 0.0  ;;  %v2465_v53 = vmul.f32 %v4840_v1, %v4840_v1 }
 0x597   : > { %2446 = vadd.xlane.f32.xlu2 %v2445_v2 }
 0x598   : > { %v2402_v28 = vpop.f32.mrf.mxu2  ;;  %v2477_v3 = vsel %vm2077_vm12, %v2465_v53, 0.0  ;;  %v4923_v45 = vpop.permute.xlu1 %2677 }
 0x599   : > { %v2403_v5 = vadd.f32 %v2402_v28, %v2348_v52  ;;  %2478 = vadd.xlane.f32.xlu1 %v2477_v3  ;;  %v4919_v58 = vpop.permute.xlu0 %2682  ;;  %v4921_v59 = vpop.permute.xlu2 %2725 }
 0x59b   : > { %v2426_v8 = vmul.f32 0.2, %v2403_v5  ;;  %vm2418_vm6 = vcmp.ge.f32.partialorder %v2403_v5, 0.0 }
 0x59d   : > { %v4850_v63 = vsel %vm2418_vm6, %v2403_v5, %v2426_v8 }
 0x59e   : > { %v2448_v9 = vsel %vm2077_vm12, %v4850_v63, 0.0  ;;  %v2466_v12 = vmul.f32 %v4850_v63, %v4850_v63 }
 0x59f   : > { %2449 = vadd.xlane.f32.xlu0 %v2448_v9 }
 0x5a0   : > { %v2405_v7 = vpop.f32.mrf.mxu2  ;;  %v2480_v13 = vsel %vm2077_vm12, %v2466_v12, 0.0  ;;  %v4929_v61 = vpop.permute.xlu1 %2730 }
 0x5a1   : > { %v2406_v15 = vadd.f32 %v2405_v7, %v2349_v11  ;;  %2481 = vadd.xlane.f32.xlu2 %v2480_v13  ;;  %v4925_v18 = vpop.permute.xlu0 %2735  ;;  %v4927_v60 = vpop.permute.xlu2 %2687 }
 0x5a3   : > { %v2427_v14 = vmul.f32 0.2, %v2406_v15  ;;  %vm2419_vm7 = vcmp.ge.f32.partialorder %v2406_v15, 0.0 }
 0x5a5   : > { %v4860_v16 = vsel %vm2419_vm7, %v2406_v15, %v2427_v14 }
 0x5a6   : > { %v2451_v17 = vsel %vm2077_vm12, %v4860_v16, 0.0  ;;  %v2467_v22 = vmul.f32 %v4860_v16, %v4860_v16 }
 0x5a7   : > { %2452 = vadd.xlane.f32.xlu1 %v2451_v17 }
 0x5a8   : > { %v2407_v23 = vpop.f32.mrf.mxu2  ;;  %v2483_v24 = vsel %vm2077_vm12, %v2467_v22, 0.0 }
 0x5a9   : > { %v2408_v25 = vadd.f32 %v2407_v23, %v2350_v19  ;;  %2484 = vadd.xlane.f32.xlu0 %v2483_v24 }
 0x5ab   : > { %v2428_v26 = vmul.f32 0.2, %v2408_v25  ;;  %vm2420_vm8 = vcmp.ge.f32.partialorder %v2408_v25, 0.0 }
 0x5ad   : > { %v4870_v27 = vsel %vm2420_vm8, %v2408_v25, %v2428_v26 }
 0x5ae   : > { %v2454_v29 = vsel %vm2077_vm12, %v4870_v27, 0.0  ;;  %v2468_v31 = vmul.f32 %v4870_v27, %v4870_v27 }
 0x5af   : > { %2455 = vadd.xlane.f32.xlu2 %v2454_v29 }
 0x5b0   : > { %v2410_v32 = vpop.f32.mrf.mxu2  ;;  %v2486_v33 = vsel %vm2077_vm12, %v2468_v31, 0.0 }
 0x5b1   : > { %v2411_v55 = vadd.f32 %v2410_v32, %v2351_v30  ;;  %2487 = vadd.xlane.f32.xlu1 %v2486_v33 }
 0x5b3   : > { %v2429_v34 = vmul.f32 0.2, %v2411_v55  ;;  %vm2421_vm9 = vcmp.ge.f32.partialorder %v2411_v55, 0.0 }
 0x5b5   : > { %v4880_v35 = vsel %vm2421_vm9, %v2411_v55, %v2429_v34 }
 0x5b6   : > { %v2457_v36 = vsel %vm2077_vm12, %v4880_v35, 0.0  ;;  %v2469_v37 = vmul.f32 %v4880_v35, %v4880_v35 }
 0x5b7   : > { %2458 = vadd.xlane.f32.xlu0 %v2457_v36 }
 0x5b8   : > { %v2412_v40 = vpop.f32.mrf.mxu2  ;;  %v2489_v43 = vsel %vm2077_vm12, %v2469_v37, 0.0 }
 0x5b9   : > { %v2413_v46 = vadd.f32 %v2412_v40, %v2352_v39  ;;  %2490 = vadd.xlane.f32.xlu2 %v2489_v43 }
 0x5bb   : > { %v2430_v10 = vmul.f32 0.2, %v2413_v46  ;;  %vm2422_vm10 = vcmp.ge.f32.partialorder %v2413_v46, 0.0 }
 0x5bd   : > { %v4890_v47 = vsel %vm2422_vm10, %v2413_v46, %v2430_v10 }
 0x5be   : > { %v2460_v48 = vsel %vm2077_vm12, %v4890_v47, 0.0  ;;  %v2470_v49 = vmul.f32 %v4890_v47, %v4890_v47 }
 0x5bf   : > { %2461 = vadd.xlane.f32.xlu1 %v2460_v48 }
 0x5c0   : > { %v2492_v20 = vsel %vm2077_vm12, %v2470_v49, 0.0 }
 0x5c1   : > { %2493 = vadd.xlane.f32.xlu0 %v2492_v20 }
 0x5d1   : > { %2740 = vperm.xlu2 %4166, %v2654_v21  }
 0x5d8   : > { %2692 = vperm.xlu1 %4168, %v2646_v44  }
 0x5fa   : > { %v2441_v62 = vpop.xlane.xlu0 %2440 }
 0x5fb   : > { %v2495_v0 = vmul.f32 0.0625, %v2441_v62 }
 0x5fc   : > { %v2473_v2 = vpop.xlane.xlu2 %2472 }
 0x5fd   : > { %v2511_v52 = vmul.f32 %v2495_v0, %v2495_v0  ;;  %v2503_v53 = vmul.f32 0.0625, %v2473_v2  ;;  %v2535_v43 = vsub.f32 %v4820_v41, %v2495_v0 }
 0x5ff   : > { %v2519_v28 = vsub.f32 %v2503_v53, %v2511_v52 }
 0x601   : > { %v2527_v3 = vmax.f32 %v2519_v28, 0.0 }
 0x602   : > { %v2444_v5 = vpop.xlane.xlu1 %2443 }
 0x603   : > { %v2543_v8 = vadd.f32 1e-05, %v2527_v3  ;;  %v4931_v9 = vmul.f32 0.0625, %v2444_v5 }
 0x604   : > { %v2476_v11 = vpop.xlane.xlu0 %2475 }
 0x605   : > { %4183 = vrsqrt.f32 %v2543_v8  ;;  %v2512_v12 = vmul.f32 %v4931_v9, %v4931_v9  ;;  %v2504_v7 = vmul.f32 0.0625, %v2476_v11  ;;  %vm2557_vm13 = vweird.f32 %v2543_v8 }
 0x607   : > { %v2520_v13 = vsub.f32 %v2504_v7, %v2512_v12 }
 0x609   : > { %v2528_v15 = vmax.f32 %v2520_v13, 0.0 }
 0x60a   : > { %v2447_v14 = vpop.xlane.xlu2 %2446 }
 0x60b   : > { %v4184_v17 = vpop.eup %4183  ;;  %v4935_v19 = vmul.f32 0.0625, %v2447_v14  ;;  %v2544_v23 = vadd.f32 1e-05, %v2528_v15 }
 0x60c   : > { %v2552_v22 = vmul.f32 %v4184_v17, %v2543_v8  ;;  %v2479_v24 = vpop.xlane.xlu1 %2478  ;;  %vm2558_vm11 = vweird.f32 %v4184_v17 }
 0x60d   : > { %v2513_v25 = vmul.f32 %v4935_v19, %v4935_v19  ;;  %v2505_v26 = vmul.f32 0.0625, %v2479_v24  ;;  %4185 = vrsqrt.f32 %v2544_v23  ;;  %vm2559_vm15 = vmor %vm2557_vm13, %vm2558_vm11  ;;  %vm2567_vm2 = vweird.f32 %v2544_v23 }
 0x60e   : > { %v2553_v29 = vmul.f32 %v4184_v17, %v2552_v22 }
 0x60f   : > { %v2521_v30 = vsub.f32 %v2505_v26, %v2513_v25 }
 0x610   : > { %v2554_v31 = vmul.f32 0.5, %v2553_v29 }
 0x611   : > { %v2529_v32 = vmax.f32 %v2521_v30, 0.0 }
 0x612   : > { %v2555_v33 = vsub.f32 1.5, %v2554_v31  ;;  %v2450_v55 = vpop.xlane.xlu0 %2449 }
 0x613   : > { %v2545_v34 = vadd.f32 1e-05, %v2529_v32  ;;  %v4939_v36 = vmul.f32 0.0625, %v2450_v55  ;;  %v4186_v39 = vpop.eup %4185 }
 0x614   : > { %v2556_v37 = vmul.f32 %v4184_v17, %v2555_v33  ;;  %v2482_v40 = vpop.xlane.xlu2 %2481  ;;  %v2562_v46 = vmul.f32 %v4186_v39, %v2544_v23  ;;  %vm2568_vm1 = vweird.f32 %v4186_v39  ;;  %v2537_v33 = vsub.f32 %v4840_v1, %v4935_v19 }
 0x615   : > { %4187 = vrsqrt.f32 %v2545_v34  ;;  %v2514_v10 = vmul.f32 %v4939_v36, %v4939_v36  ;;  %v2506_v48 = vmul.f32 0.0625, %v2482_v40  ;;  %vm2569_vm3 = vmor %vm2567_vm2, %vm2568_vm1  ;;  %vm2577_vm5 = vweird.f32 %v2545_v34 }
 0x616   : > { %v2560_v49 = vsel %vm2559_vm15, %v4184_v17, %v2556_v37  ;;  %v2563_v20 = vmul.f32 %v4186_v39, %v2562_v46 }
 0x617   : > { %v2631_v21 = vmul.f32 %v2560_v49, %v2535_v43  ;;  %v2522_v44 = vsub.f32 %v2506_v48, %v2514_v10 }
 0x618   : > { %v2564_v62 = vmul.f32 0.5, %v2563_v20 }
 0x619   : > { %v2695_v2 = vmul.f32 %v4899_v50, %v2631_v21  ;;  %v2530_v52 = vmax.f32 %v2522_v44, 0.0  ;;  %v2536_v50 = vsub.f32 %v4830_v4, %v4931_v9 }
 0x61a   : > { %v2453_v53 = vpop.xlane.xlu1 %2452  ;;  %v2565_v3 = vsub.f32 1.5, %v2564_v62 }
 0x61b   : > { %v4188_v28 = vpop.eup %4187  ;;  %v4945_v41 = vmul.f32 0.0625, %v2453_v53  ;;  %v2743_v0 = vadd.f32 %v4911_v38, %v2695_v2  ;;  %v2546_v8 = vadd.f32 1e-05, %v2530_v52 }
 0x61c   : > { %v2572_v5 = vmul.f32 %v4188_v28, %v2545_v34  ;;  %v2485_v11 = vpop.xlane.xlu0 %2484  ;;  %v2566_v12 = vmul.f32 %v4186_v39, %v2565_v3  ;;  %vm2578_vm4 = vweird.f32 %v4188_v28 }
 0x61d   : > { %v2515_v7 = vmul.f32 %v4945_v41, %v4945_v41  ;;  %v2507_v13 = vmul.f32 0.0625, %v2485_v11  ;;  %2751 = vxpose.xlu0.b32.start [1/8] (short) (narrow) %v2743_v0, 16  ;;  %4189 = vrsqrt.f32 %v2546_v8  ;;  %vm2579_vm6 = vmor %vm2577_vm5, %vm2578_vm4  ;;  %vm2587_vm8 = vweird.f32 %v2546_v8 }
 0x61e   : > { %v2573_v15 = vmul.f32 %v4188_v28, %v2572_v5  ;;  %v2570_v14 = vsel %vm2569_vm3, %v4186_v39, %v2566_v12 }
 0x61f   : > { %v2523_v17 = vsub.f32 %v2507_v13, %v2515_v7  ;;  %v2632_v38 = vmul.f32 %v2570_v14, %v2536_v50 }
 0x620   : > { %v2574_v22 = vmul.f32 0.5, %v2573_v15 }
 0x621   : > { %v2531_v24 = vmax.f32 %v2523_v17, 0.0  ;;  %v2696_v23 = vmul.f32 %v4897_v6, %v2632_v38  ;;  %v2539_v17 = vsub.f32 %v4860_v16, %v4945_v41 }
 0x622   : > { %v2575_v25 = vsub.f32 1.5, %v2574_v22  ;;  %v2456_v26 = vpop.xlane.xlu2 %2455 }
 0x623   : > { %v2547_v29 = vadd.f32 1e-05, %v2531_v24  ;;  %v4953_v30 = vmul.f32 0.0625, %v2456_v26  ;;  %v4190_v31 = vpop.eup %4189  ;;  %v2744_v9 = vadd.f32 %v4909_v54, %v2696_v23 }
 0x624   : > { %v2576_v32 = vmul.f32 %v4188_v28, %v2575_v25  ;;  %v2488_v4 = vpop.xlane.xlu1 %2487  ;;  %v2582_v55 = vmul.f32 %v4190_v31, %v2546_v8  ;;  %vm2588_vm7 = vweird.f32 %v4190_v31 }
 0x625   : > { %4191 = vrsqrt.f32 %v2547_v29  ;;  %v2516_v37 = vmul.f32 %v4953_v30, %v4953_v30  ;;  %v2508_v6 = vmul.f32 0.0625, %v2488_v4  ;;  %2752 = vxpose.xlu0.b32.cont [2/8] (short) (narrow) %v2744_v9, 16  ;;  %vm2589_vm9 = vmor %vm2587_vm8, %vm2588_vm7  ;;  %vm2597_vm11 = vweird.f32 %v2547_v29 }
 0x626   : > { %v2580_v39 = vsel %vm2579_vm6, %v4188_v28, %v2576_v32  ;;  %v2583_v40 = vmul.f32 %v4190_v31, %v2582_v55  ;;  %v2540_v55 = vsub.f32 %v4870_v27, %v4953_v30 }
 0x627   : > { %v2633_v43 = vmul.f32 %v2580_v39, %v2537_v33  ;;  %v2524_v46 = vsub.f32 %v2508_v6, %v2516_v37 }
 0x628   : > { %v2584_v10 = vmul.f32 0.5, %v2583_v40 }
 0x629   : > { %v2697_v34 = vmul.f32 %v4904_v51, %v2633_v43  ;;  %v2532_v48 = vmax.f32 %v2524_v46, 0.0  ;;  %v2538_v51 = vsub.f32 %v4850_v63, %v4939_v36 }
 0x62a   : > { %v2459_v54 = vpop.xlane.xlu0 %2458  ;;  %v2585_v20 = vsub.f32 1.5, %v2584_v10 }
 0x62b   : > { %v4192_v49 = vpop.eup %4191  ;;  %v4961_v1 = vmul.f32 0.0625, %v2459_v54  ;;  %v2745_v19 = vadd.f32 %v4917_v57, %v2697_v34  ;;  %v2548_v44 = vadd.f32 1e-05, %v2532_v48 }
 0x62c   : > { %v2592_v21 = vmul.f32 %v4192_v49, %v2547_v29  ;;  %v2491_v62 = vpop.xlane.xlu2 %2490  ;;  %v2586_v2 = vmul.f32 %v4190_v31, %v2585_v20  ;;  %vm2598_vm10 = vweird.f32 %v4192_v49 }
 0x62d   : > { %v2517_v52 = vmul.f32 %v4961_v1, %v4961_v1  ;;  %v2509_v53 = vmul.f32 0.0625, %v2491_v62  ;;  %4193 = vrsqrt.f32 %v2548_v44  ;;  %2753 = vxpose.xlu0.b32.cont [3/8] (short) (narrow) %v2745_v19, 16  ;;  %vm2599_vm13 = vmor %vm2597_vm11, %vm2598_vm10  ;;  %vm2607_vm1 = vweird.f32 %v2548_v44 }
 0x62e   : > { %v2593_v28 = vmul.f32 %v4192_v49, %v2592_v21  ;;  %v2590_v3 = vsel %vm2589_vm9, %v4190_v31, %v2586_v2  ;;  %v2541_v34 = vsub.f32 %v4880_v35, %v4961_v1  ;;  %vm2900_vm10 = vcmask 1041408  }
 0x62f   : > { %v2525_v0 = vsub.f32 %v2509_v53, %v2517_v52  ;;  %v2634_v57 = vmul.f32 %v2590_v3, %v2538_v51  ;;  %v2784_v3 = vld [vmem:[%s5133_s13] sm:$0x3]  ;;  %vm2896_vm11 = vcmask 31744  }
 0x630   : > { %v2594_v5 = vmul.f32 0.5, %v2593_v28 }
 0x631   : > { %v2533_v11 = vmax.f32 %v2525_v0, 0.0  ;;  %v2698_v8 = vmul.f32 %v4915_v56, %v2634_v57  ;;  %v4087_v0 = vld [vmem:[%s5134_s14] sm:$0xff] }
 0x632   : > { %v2595_v12 = vsub.f32 1.5, %v2594_v5  ;;  %v2462_v7 = vpop.xlane.xlu1 %2461 }
 0x633   : > { %v2549_v13 = vadd.f32 1e-05, %v2533_v11  ;;  %v2502_v50 = vmul.f32 0.0625, %v2462_v7  ;;  %v4194_v15 = vpop.eup %4193  ;;  %v2746_v36 = vadd.f32 %v4913_v42, %v2698_v8  ;;  %v2811_v7 = vld [vmem:[%s5135_s15] sm:$0xf] }
 0x634   : > { %v2596_v14 = vmul.f32 %v4192_v49, %v2595_v12  ;;  %v2494_v63 = vpop.xlane.xlu0 %2493  ;;  %v2602_v22 = vmul.f32 %v4194_v15, %v2548_v44  ;;  %vm2608_vm15 = vweird.f32 %v4194_v15  ;;  %v2741_v2 = vpop.permute.xlu2 %2740 }
 0x635   : > { %4195 = vrsqrt.f32 %v2549_v13  ;;  %v2518_v24 = vmul.f32 %v2502_v50, %v2502_v50  ;;  %v2510_v25 = vmul.f32 0.0625, %v2494_v63  ;;  %2754 = vxpose.xlu0.b32.cont [4/8] (short) (narrow) %v2746_v36, 16  ;;  %vm2609_vm2 = vmor %vm2607_vm1, %vm2608_vm15  ;;  %vm2617_vm4 = vweird.f32 %v2549_v13 }
 0x636   : > { %v2600_v38 = vsel %vm2599_vm13, %v4192_v49, %v2596_v14  ;;  %v2603_v26 = vmul.f32 %v4194_v15, %v2602_v22 }
 0x637   : > { %v2635_v56 = vmul.f32 %v2600_v38, %v2539_v17  ;;  %v2526_v23 = vsub.f32 %v2510_v25, %v2518_v24 }
 0x638   : > { %v2604_v31 = vmul.f32 0.5, %v2603_v26 }
 0x639   : > { %v2699_v32 = vmul.f32 %v4923_v45, %v2635_v56  ;;  %v2534_v29 = vmax.f32 %v2526_v23, 0.0 }
 0x63a   : > { %v2605_v9 = vsub.f32 1.5, %v2604_v31 }
 0x63b   : > { %v4196_v4 = vpop.eup %4195  ;;  %v2747_v42 = vadd.f32 %v4921_v59, %v2699_v32  ;;  %v2550_v41 = vadd.f32 1e-05, %v2534_v29 }
 0x63c   : > { %v2612_v16 = vmul.f32 %v4196_v4, %v2549_v13  ;;  %v2606_v33 = vmul.f32 %v4194_v15, %v2605_v9  ;;  %vm2618_vm3 = vweird.f32 %v4196_v4 }
 0x63d   : > { %4197 = vrsqrt.f32 %v2550_v41  ;;  %2755 = vxpose.xlu0.b32.cont [5/8] (short) (narrow) %v2747_v42, 16  ;;  %vm2619_vm5 = vmor %vm2617_vm4, %vm2618_vm3  ;;  %vm2627_vm7 = vweird.f32 %v2550_v41 }
 0x63e   : > { %v2613_v39 = vmul.f32 %v4196_v4, %v2612_v16  ;;  %v2610_v37 = vsel %vm2609_vm2, %v4194_v15, %v2606_v33 }
 0x63f   : > { %v2636_v45 = vmul.f32 %v2610_v37, %v2540_v55  ;;  %v4098_v37 = vld [vmem:[%s5138_s18 + $0x38] sm:$0xff] }
 0x640   : > { %v2614_v6 = vmul.f32 0.5, %v2613_v39 }
 0x641   : > { %v2700_v43 = vmul.f32 %v4919_v58, %v2636_v45  ;;  %v4096_v45 = vld [vmem:[%s5138_s18 + $0x28] sm:$0xff] }
 0x642   : > { %v2615_v40 = vsub.f32 1.5, %v2614_v6  ;;  %v4097_v6 = vld [vmem:[%s5138_s18 + $0x30] sm:$0xff] }
 0x643   : > { %v4198_v46 = vpop.eup %4197  ;;  %v2748_v10 = vadd.f32 %v4929_v61, %v2700_v43  ;;  %v2542_v61 = vsub.f32 %v4890_v47, %v2502_v50  ;;  %v4088_v47 = vld [vmem:[%s5134_s14 + $0x8] sm:$0xff] }
 0x644   : > { %v2616_v59 = vmul.f32 %v4196_v4, %v2615_v40  ;;  %v2622_v27 = vmul.f32 %v4198_v46, %v2550_v41  ;;  %vm2628_vm6 = vweird.f32 %v4198_v46 }
 0x645   : > { %2756 = vxpose.xlu0.b32.cont [6/8] (short) (narrow) %v2748_v10, 16  ;;  %vm2629_vm8 = vmor %vm2627_vm7, %vm2628_vm6 }
 0x646   : > { %v2620_v30 = vsel %vm2619_vm5, %v4196_v4, %v2616_v59  ;;  %v2623_v48 = vmul.f32 %v4198_v46, %v2622_v27 }
 0x647   : > { %v2637_v54 = vmul.f32 %v2620_v30, %v2541_v34  ;;  %v4094_v34 = vld [vmem:[%s5138_s18 + $0x18] sm:$0xff] }
 0x648   : > { %v2624_v49 = vmul.f32 0.5, %v2623_v48 }
 0x649   : > { %v2701_v20 = vmul.f32 %v4927_v60, %v2637_v54  ;;  %v4090_v60 = vld [vmem:[%s5134_s14 + $0x18] sm:$0xff]  ;;  %v4169_v54 = vld [vmem:[%s5136_s16] ss:$0 sm:$0xff] }
 0x64a   : > { %v2625_v19 = vsub.f32 1.5, %v2624_v49  ;;  %v2693_v44 = vpop.permute.xlu1 %2692  ;;  %2843 = vmatpush.bf16.msrb.mxu0 %v4090_v60  ;;  %v4093_v49 = vld [vmem:[%s5138_s18 + $0x10] sm:$0xff] }
 0x64b   : > { %v2749_v58 = vadd.f32 %v4925_v18, %v2701_v20  ;;  %v4089_v18 = vld [vmem:[%s5134_s14 + $0x10] sm:$0xff] }
 0x64c   : > { %v2626_v21 = vmul.f32 %v4198_v46, %v2625_v19  ;;  %v4105_v60 = vld [vmem:[%s5140_s20 + $0x30] sm:$0xff] }
 0x64d   : > { %2757 = vxpose.xlu0.b32.cont [7/8] (short) (narrow) %v2749_v58, 16  ;;  %v4170_v58 = vld [vmem:[%s5136_s16 + $0x1] ss:$0 sm:$0xff] }
 0x64e   : > { %v2630_v35 = vsel %vm2629_vm8, %v4198_v46, %v2626_v21  ;;  %2844 = vmatpush.bf16.msrb.mxu0 %v4089_v18  ;;  %v4095_v46 = vld [vmem:[%s5138_s18 + $0x20] sm:$0xff]  ;;  %v4104_v18 = vld [vmem:[%s5140_s20 + $0x28] sm:$0xff] }
 0x64f   : > { %v2638_v1 = vmul.f32 %v2630_v35, %v2542_v61  ;;  %v4092_v61 = vld [vmem:[%s5138_s18 + $0x8] sm:$0xff] }
 0x651   : > { %v2702_v62 = vmul.f32 %v2693_v44, %v2638_v1 }
 0x652   : > { %2845 = vmatpush.bf16.msrb.mxu0 %v4088_v47  ;;  %v4103_v47 = vld [vmem:[%s5140_s20 + $0x20] sm:$0xff] }
 0x653   : > { %v2750_v52 = vadd.f32 %v2741_v2, %v2702_v62  ;;  %v2895_v62 = vld [vmem:[%s5137_s17] sm:$0x1] }
 0x654   : > { %v4091_v2 = vld [vmem:[%s5138_s18] sm:$0xff] }
 0x655   : > { %2758 = vxpose.xlu0.b32.end [8/8] (short) (narrow) %v2750_v52, 16  ;;  %v4106_v52 = vld [vmem:[%s5140_s20 + $0x38] sm:$0xff] }
 0x656   : > { %2846 = vmatpush.bf16.msrb.mxu0 %v4087_v0 }
 0x65a   : > { %3068 = vmatpush.bf16.msra.mxu0 %v4106_v52 }
 0x65e   : > { %3069 = vmatpush.bf16.msra.mxu0 %v4105_v60 }
 0x662   : > { %3070 = vmatpush.bf16.msra.mxu0 %v4104_v18 }
 0x666   : > { %3071 = vmatpush.bf16.msra.mxu0 %v4103_v47 }
 0x6c1   : > { %v2767_v53 = vpop.trf.xlu0 }
 0x6c9   : > { %v2768_v51 = vpop.trf.xlu0 }
 0x6ca   : > { %v2783_v28 = vpack.c.bf16 %v2768_v51, %v2767_v53  ;;  %v4102_v53 = vld [vmem:[%s5140_s20 + $0x18] sm:$0xff]  ;;  %v4101_v51 = vld [vmem:[%s5140_s20 + $0x10] sm:$0xff] }
 0x6cb   : > { %3072 = vmatpush.bf16.msra.mxu0 %v4102_v53 }
 0x6cc   : > { %2795 = vmatpush.bf16.msrb.mxu3 %v2783_v28 }
 0x6cf   : > { %3846 = vmatmul.msk.bf16.vlgmr.msrb.gmra.mxu3 %vm2077_vm12, %v2784_v3  ;;  %3073 = vmatpush.bf16.msra.mxu0 %v4101_v51 }
 0x6d0   : > { %2984 = vmatpush.bf16.msra.mxu3 %v4098_v37 }
 0x6d4   : > { %2985 = vmatpush.bf16.msra.mxu3 %v4097_v6 }
 0x6d8   : > { %2986 = vmatpush.bf16.msra.mxu3 %v4096_v45 }
 0x6dc   : > { %2987 = vmatpush.bf16.msra.mxu3 %v4095_v46 }
 0x6e0   : > { %2988 = vmatpush.bf16.msra.mxu3 %v4094_v34 }
 0x6e4   : > { %2989 = vmatpush.bf16.msra.mxu3 %v4093_v49 }
 0x6e8   : > { %2990 = vmatpush.bf16.msra.mxu3 %v4092_v61 }
 0x6ec   : > { %2991 = vmatpush.bf16.msra.mxu3 %v4091_v2 }
 0x752   : > { %v2797_v5 = vpop.f32.mrf.mxu3 }
 0x753   : > { %v2801_v57 = vmul.f32 0.11111111, %v2797_v5 }
 0x755   : > { %v2802_v11 = vpack.c.bf16 %v2801_v57, %v2801_v57  ;;  %v4100_v57 = vld [vmem:[%s5140_s20 + $0x8] sm:$0xff] }
 0x756   : > { %3074 = vmatpush.bf16.msra.mxu0 %v4100_v57 }
 0x757   : > { %3863 = vmatmul.msk.bf16.vlgmr.msrb.gmra.mxu0 %vm2115_vm14, %v2802_v11  ;;  %v4099_v11 = vld [vmem:[%s5140_s20] sm:$0xff] }
 0x75a   : > { %v2799_v12 = vpop.f32.mrf.mxu3  ;;  %3075 = vmatpush.bf16.msra.mxu0 %v4099_v11 }
 0x75b   : > { %v2935_v12 = vld [vmem:[%s5139_s19] sm:$0x1] }
 0x7d4   : > { %v2848_v8 = vpop.f32.mrf.mxu0 }
 0x7d5   : > { %v2849_v13 = vadd.f32 %v2848_v8, %v2811_v7 }
 0x7d7   : > { %vm2852_vm9 = vcmp.ge.f32.partialorder %v2849_v13, 0.0  ;;  %v2853_v50 = vmul.f32 0.2, %v2849_v13 }
 0x7d9   : > { %v2854_v15 = vsel %vm2852_vm9, %v2849_v13, %v2853_v50 }
 0x7da   : > { %v2855_v14 = vsel %vm1763_vm0, %v2854_v15, 0.0  ;;  %v2862_v63 = vmul.f32 %v2854_v15, %v2854_v15 }
 0x7db   : > { %v2856_v36 = vrot.slane %v2855_v14, 4 }
 0x7dc   : > { %v2863_v17 = vsel %vm1763_vm0, %v2862_v63, 0.0  ;;  %v2850_v22 = vpop.f32.mrf.mxu0 }
 0x7dd   : > { %v2857_v38 = vadd.f32 %v2856_v36, %v2855_v14  ;;  %v2864_v24 = vrot.slane %v2863_v17, 4 }
 0x7df   : > { %v2858_v25 = vrot.slane %v2857_v38, 2  ;;  %v2865_v26 = vadd.f32 %v2864_v24, %v2863_v17 }
 0x7e1   : > { %v2859_v56 = vadd.f32 %v2858_v25, %v2857_v38  ;;  %v2866_v23 = vrot.slane %v2865_v26, 2 }
 0x7e3   : > { %v2860_v31 = vrot.slane %v2859_v56, 1  ;;  %v2867_v32 = vadd.f32 %v2866_v23, %v2865_v26 }
 0x7e5   : > { %v2861_v29 = vadd.f32 %v2860_v31, %v2859_v56  ;;  %v2868_v4 = vrot.slane %v2867_v32, 1 }
 0x7e7   : > { %v2869_v9 = vadd.f32 %v2868_v4, %v2867_v32  ;;  %v2870_v42 = vmul.f32 0.25, %v2861_v29 }
 0x7e9   : > { %v2871_v16 = vmul.f32 0.25, %v2869_v9  ;;  %v2872_v41 = vmul.f32 %v2870_v42, %v2870_v42  ;;  %v2875_v48 = vsub.f32 %v2854_v15, %v2870_v42 }
 0x7eb   : > { %v2873_v33 = vsub.f32 %v2871_v16, %v2872_v41 }
 0x7ed   : > { %v2874_v55 = vmax.f32 %v2873_v33, 0.0 }
 0x7ef   : > { %v2876_v39 = vadd.f32 1e-05, %v2874_v55 }
 0x7f1   : > { %4199 = vrsqrt.f32 %v2876_v39  ;;  %vm2883_vm12 = vweird.f32 %v2876_v39 }
 0x7f7   : > { %v4200_v40 = vpop.eup %4199 }
 0x7f8   : > { %v2878_v43 = vmul.f32 %v4200_v40, %v2876_v39  ;;  %vm2884_vm0 = vweird.f32 %v4200_v40 }
 0x7f9   : > { %vm2885_vm14 = vmor %vm2883_vm12, %vm2884_vm0 }
 0x7fa   : > { %v2879_v59 = vmul.f32 %v4200_v40, %v2878_v43 }
 0x7fc   : > { %v2880_v10 = vmul.f32 0.5, %v2879_v59 }
 0x7fe   : > { %v2881_v27 = vsub.f32 1.5, %v2880_v10 }
 0x800   : > { %v2882_v30 = vmul.f32 %v4200_v40, %v2881_v27 }
 0x802   : > { %v2886_v20 = vsel %vm2885_vm14, %v4200_v40, %v2882_v30 }
 0x803   : > { %v2887_v19 = vmul.f32 %v2886_v20, %v2875_v48 }
 0x805   : > { %v2891_v21 = vmul.f32 %v4169_v54, %v2887_v19 }
 0x807   : > { %v2893_v35 = vadd.f32 %v4170_v58, %v2891_v21 }
 0x809   : > { %v2894_v1 = vpack.c.bf16 %v2893_v35, %v2893_v35 }
 0x80b   : > { %v2902_v44 = vsel %vm2900_vm10, %v2894_v1, 0 }
 0x80c   : > { %2911 = vmatpush.bf16.msrb.mxu1 %v2902_v44 }
 0x80f   : > { %3864 = vmatmul.msk.bf16.vlgmr.msrb.gmra.mxu1 %vm2896_vm11, %v2895_v62 }
 0x88c   : > { %v2913_v28 = vpop.f32.mrf.mxu1 }
 0x88d   : > { %v2917_v3 = vmul.f32 0.11111111, %v2913_v28 }
 0x88f   : > { %v2918_v0 = vpack.c.bf16 %v2917_v3, %v2917_v3 }
 0x891   : > { %2992 = vmatmul.bf16.vlgmr.msra.gmra.mxu3 %v2918_v0 }
 0x894   : > { %v2915_v5 = vpop.f32.mrf.mxu1 }
 0x914   : > { %v2993_v7 = vpop.f32.mrf.mxu3 }
 0x915   : > { %v2994_v8 = vadd.f32 %v2993_v7, %v2935_v12 }
 0x917   : > { %vm2997_vm13 = vcmp.ge.f32.partialorder %v2994_v8, 0.0  ;;  %v2998_v13 = vmul.f32 0.2, %v2994_v8 }
 0x919   : > { %v2999_v50 = vsel %vm2997_vm13, %v2994_v8, %v2998_v13 }
 0x91a   : > { %v3002_v15 = vpack.c.bf16 %v2999_v50, %v2999_v50  ;;  %3000 = vst [vmem:[%s729_s4] sm:$0x1] %v2999_v50 }
 0x91c   : > { %3076 = vmatmul.bf16.vlgmr.msra.gmra.mxu0 %v3002_v15  ;;  %v2995_v14 = vpop.f32.mrf.mxu3 }
 0x91d   : > { %4258 = shalt.err (!%p4255_p8)
}
 0x91e   : > { %4112 = dma.vmem_to_hbm [thread:$0]  (%p4493_p5), %s3112_s1, 16, %s3114_s24, %s3088_s27   ;;  %v3019_v63 = vld [vmem:[%s5141_s21] sm:$0x1]  ;;  %vm3081_vm15 = vcmask 16384  }
 0x91f   : > { %s3096_s26 = scalar_lea.hbm %s5142_s22, %s4476_s5  ;;  %s723_s10 = scalar_lea.vmem [#allocation5], %s5066_s3 }
 0x920   : > { %s3098_s9 = sshll.u32 %s723_s10, 4  ;;  %s3100_s11 = sshll.u32 %s3096_s26, 4  ;;  %s3099_s9 = int_to_ptr.vmem [resolvable:$true] %s3098_s9  ;;  %s3101_s11 = int_to_ptr.hbm [resolvable:$true] %s3100_s11 }
 0x921   : > { %s3084_s28 = scalar_lea.sflag [#allocation4], %s5066_s3  ;;  %s4273_s1 = sshra.s32 %s3101_s11, 4  ;;  %s4274_s1 = int_to_ptr.hbm [resolvable:$true] %s4273_s1 }
 0x922   : > { %s4275_s24 = scalar_lea.hbm %s4274_s1, 1  ;;  %s4279_s25 = scalar_lea.hbm %s5142_s22, 2 }
 0x923   : > { %p4276_p9 = scmp.ne.s32.totalorder %s4274_s1, %s4275_s24  ;;  %p4280_p12 = scmp.lt.s32.totalorder %s4274_s1, %s5142_s22 }
 0x924   : > { %p4281_p13 = scmp.lt.s32.totalorder %s4279_s25, %s4275_s24 }
 0x925   : > { %p4277_p10 = pnand %p4276_p9, %p4493_p5 }
 0x926   : > { %p4282_p0 = por %p4281_p13, %p4280_p12 }
 0x927   : > { %p4278_p11 = pneg %p4277_p10 }
 0x929   : > { %p4283_p1 = pnand %p4282_p0, %p4278_p11 }
 0x999   : > { %v3077_v36 = vpop.f32.mrf.mxu0 }
 0x99a   : > { %v3078_v17 = vadd.f32 %v3077_v36, %v3019_v63 }
 0x99c   : > { %3082 = vst.msk [vmem:[%s723_s10] sm:$0x1] %vm3081_vm15, %v3078_v17 }
 0x99d   : > { %4286 = shalt.err (!%p4283_p1)
}
 0x99e   : > { %4111 = dma.vmem_to_hbm [thread:$0]  (%p4493_p5), %s3099_s9, 16, %s3101_s11, %s3084_s28  }
 0x9a1   : > { %v3079_v22 = vpop.f32.mrf.mxu0 }
 0x9a2 PF: > { %s5191_s3 = sld [smem:[#allocation13_spill]] }
 0x9a3   : > { %s5192_s6 = sld [smem:[#allocation11_spill]] }
 0x9a8   : > { %p4128_p2 = scmp.ge.s32.totalorder %s5191_s3, 2 }
 0x9a9   : > { %s3125_s8 = sand.u32 1, %s5192_s6  }
 0x9aa   : > { %p4120_p3 = pnand %p4128_p2, %p4497_p6  ;;  %s3126_s2 = scalar_lea.sflag [#allocation4], %s3125_s8 }
 0x9ac   : > { %p4121_p4 = pneg %p4120_p3 }
 0x9ae   : > { %4308 = dma.done.wait (%p4121_p4), %s3126_s2, 16  }
 0x9af   : > { %4310 = vsyncadd (%p4121_p4), %s3126_s2, 4294967280  ;;  %s3135_s10 = scalar_lea.sflag [#allocation7], %s3125_s8 }
 0x9b0   : > { %4312 = dma.done.wait (%p4121_p4), %s3135_s10, 16  }
 0x9b1   : > { %4314 = vsyncadd (%p4121_p4), %s3135_s10, 4294967280  ;;  %s5194_s25 = sld [smem:[#allocation14_spill]]  ;;  %s5197_s4 = smov %s4321_s30 }
 0x9b2   : > { %s5195_s7 = sld [smem:[#allocation12_spill]] }
 0x9b3   : > { %s5196_s24 = sld [smem:[#allocation15_spill]] }
 0x9b7   : > { %p38_p5 = scmp.ge.s32.totalorder %s5194_s25, 4  }
 0x9b8   : > { %s5198_s30 = smov %s5195_s7 }
 0x9b9   :  { %40 = sbr.rel (!%p38_p5) target bundleno = 19 (0x13), region = 165 }
 0x9be   :  { %3140 = vsyncpa [#allocation3], 1 }
 0x9bf   :  { %3142 = vsyncpa [#allocation3 + $0x1], 1 }
 0x9c0   :  { %3143 = vsyncpa [#allocation4], 1 }
 0x9c1   :  { %3145 = vsyncpa [#allocation4 + $0x1], 1 }
 0x9c2   :  { %3146 = vsyncpa [#allocation7], 1 }
 0x9c3   :  { %3148 = vsyncpa [#allocation7 + $0x1], 1 }

</bundles_post_ra>
